<compile_context>
chip_gen: v7x
topology: tpu7x:2x2x1
jax: 0.10.0
libtpu: 0.0.40
codegen_flags: <defaults>
</compile_context>

<pallas_src>
import functools

import jax
import jax.numpy as jnp
from jax import lax
from jax.experimental import pallas as pl
from jax.experimental.pallas import tpu as pltpu

BN_EPS = 1e-5  # PyTorch BatchNorm1d default


# ----------------------------------------------------------------------------
# Pallas kernels
# ----------------------------------------------------------------------------
def _conv3_bias_relu(x, w_flat, bias, L, padding_mode):
    """x: (C, NB*L) f32, each batch element owns a contiguous run of L lanes.

    w_flat: (Cout, 3*C) im2col-flattened folded weights laid out [k0 | k1 | k2].
    bias:   (Cout, 1) folded-BN bias.
    """
    c, nl = x.shape
    col = lax.broadcasted_iota(jnp.int32, (1, nl), 1) % L

    # Shift-by-one lane moves; the per-(element)-boundary columns are fixed up
    # with a mask, so no (L+2)-wide padded buffer is ever materialized and the
    # batch boundaries inside the folded lane axis are handled uniformly.
    prev = jnp.concatenate([x[:, :1], x[:, :-1]], axis=1)   # ~ x[l-1]
    nxt = jnp.concatenate([x[:, 1:], x[:, -1:]], axis=1)    # ~ x[l+1]

    if padding_mode == "reflect":
        left = jnp.where(col == 0, nxt, prev)        # reflect pad: x[1]
        right = jnp.where(col == L - 1, prev, nxt)   # reflect pad: x[L-2]
    else:  # 'zeros' (UNet_1D default)
        left = jnp.where(col == 0, 0.0, prev)
        right = jnp.where(col == L - 1, 0.0, nxt)

    # Single im2col matmul: K = 3*C.
    stacked = jnp.concatenate([left, x, right], axis=0)     # (3*C, NB*L)
    y = jnp.dot(w_flat, stacked, preferred_element_type=jnp.float32) + bias
    return jnp.maximum(y, 0.0)


def _double_conv_kernel(x_ref, w1_ref, b1_ref, w2_ref, b2_ref, o_ref, *,
                        L, padding_mode):
    x = x_ref[...].astype(jnp.float32)                       # (Cin_p, NB*L)
    h1 = _conv3_bias_relu(x, w1_ref[...].astype(jnp.float32),
                          b1_ref[...].astype(jnp.float32), L, padding_mode)
    # TODO(synk): nn.Dropout(0.2) is identity in eval mode; training-mode RNG
    # masking (and batch-stats BatchNorm) are intentionally not reproduced.
    h2 = _conv3_bias_relu(h1, w2_ref[...].astype(jnp.float32),
                          b2_ref[...].astype(jnp.float32), L, padding_mode)
    o_ref[...] = h2.astype(o_ref.dtype)


def _matmul_bias_kernel(x_ref, w_ref, b_ref, o_ref):
    y = jnp.dot(w_ref[...].astype(jnp.float32), x_ref[...].astype(jnp.float32),
                preferred_element_type=jnp.float32) + b_ref[...].astype(jnp.float32)
    o_ref[...] = y.astype(o_ref.dtype)


# ----------------------------------------------------------------------------
# Wrappers (BN folding, layout plumbing, pallas_call plumbing)
# ----------------------------------------------------------------------------
def _round_up(n, m):
    return (n + m - 1) // m * m


def _fold_conv_bn(w, bn):
    """Fold inference BatchNorm into conv weights; flatten to im2col layout."""
    g, b, m, v = bn                                   # each (Cout,)
    scale = g * lax.rsqrt(v + BN_EPS)
    wf = (w * scale[:, None, None]).transpose(0, 2, 1).reshape(w.shape[0], -1)
    bias = (b - scale * m)[:, None]                   # (Cout, 1)
    return wf, bias                                   # (Cout, 3*Cin), (Cout, 1)


def _batch_block(N, L, lane_target=2048):
    """How many batch elements (folded into lanes) each grid step processes."""
    if N * L <= lane_target:
        return N
    for nb in range(min(N, max(lane_target // max(L, 1), 1)), 0, -1):
        if N % nb == 0 and (nb * L) % 128 == 0:
            return nb
    # TODO(synk): halo-tiled L axis (v7x 64MiB VMEM) for huge N*L that cannot be
    # lane-tiled in 128-lane multiples; fall back to one full block.
    return N


def double_conv(xt, dcp, N, L, padding_mode):
    """DoubleConv_1D on the folded layout.  xt: (Cin, N*L) -> (Cout, N*L)."""
    cin, nl = xt.shape
    assert nl == N * L

    # Zero-pad input channels to a multiple of 8 so the in-kernel K-stack
    # (concat along sublanes) stays tile-aligned.
    cin_p = _round_up(cin, 8)
    w1 = dcp["w1"]
    if cin_p != cin:
        xt = jnp.concatenate(
            [xt, jnp.zeros((cin_p - cin, nl), xt.dtype)], axis=0)
        w1 = jnp.concatenate(
            [w1, jnp.zeros((w1.shape[0], cin_p - cin, 3), w1.dtype)], axis=1)

    w1f, b1 = _fold_conv_bn(w1, dcp["bn1"])
    w2f, b2 = _fold_conv_bn(dcp["w2"], dcp["bn2"])
    c1, c2 = w1f.shape[0], w2f.shape[0]

    nb = _batch_block(N, L)
    lane = nb * L
    grid = (pl.cdiv(N, nb),)

    kernel = functools.partial(_double_conv_kernel, L=L,
                               padding_mode=padding_mode)
    return pl.pallas_call(
        kernel,
        out_shape=jax.ShapeDtypeStruct((c2, nl), xt.dtype),
        grid=grid,
        in_specs=[
            pl.BlockSpec((cin_p, lane), lambda i: (0, i)),     # activations
            pl.BlockSpec((c1, 3 * cin_p), lambda i: (0, 0)),   # folded w1
            pl.BlockSpec((c1, 1), lambda i: (0, 0)),           # folded bias1
            pl.BlockSpec((c2, 3 * c1), lambda i: (0, 0)),      # folded w2
            pl.BlockSpec((c2, 1), lambda i: (0, 0)),           # folded bias2
        ],
        out_specs=pl.BlockSpec((c2, lane), lambda i: (0, i)),
        compiler_params=pltpu.CompilerParams(
            dimension_semantics=("parallel",)),
    )(xt, w1f, b1, w2f, b2)


def matmul_bias(xt, w, b, lane_block=1024):
    """out = w @ xt + b on the folded layout (ConvTranspose taps / 1x1 conv)."""
    cin, nl = xt.shape
    cout = w.shape[0]
    if nl <= lane_block:
        lane, grid = nl, (1,)
    else:
        lane, grid = lane_block, (pl.cdiv(nl, lane_block),)
    return pl.pallas_call(
        _matmul_bias_kernel,
        out_shape=jax.ShapeDtypeStruct((cout, nl), xt.dtype),
        grid=grid,
        in_specs=[
            pl.BlockSpec((cin, lane), lambda i: (0, i)),
            pl.BlockSpec((cout, cin), lambda i: (0, 0)),
            pl.BlockSpec((cout, 1), lambda i: (0, 0)),
        ],
        out_specs=pl.BlockSpec((cout, lane), lambda i: (0, i)),
        compiler_params=pltpu.CompilerParams(
            dimension_semantics=("parallel",)),
    )(xt, w, b)


def up_block(x_small, skip, up_p, N, Ls, padding_mode):
    """Up_1D: ConvTranspose1d(k=2, s=2) -> concat skip -> DoubleConv."""
    w, b = up_p["up_w"], up_p["up_b"]                 # (Cin, Cout, 2), (Cout,)
    cout = w.shape[1]
    # The two transpose-conv taps are two pointwise matmuls; interleave lanes
    # in the wrapper (pure layout plumbing).
    w_pair = jnp.concatenate([w[:, :, 0].T, w[:, :, 1].T], axis=0)  # (2*Cout, Cin)
    b_pair = jnp.concatenate([b, b])[:, None]                       # (2*Cout, 1)
    y = matmul_bias(x_small, w_pair, b_pair)                        # (2*Cout, N*Ls)
    up = jnp.stack([y[:cout], y[cout:]], axis=-1).reshape(cout, 2 * N * Ls)
    # TODO(synk): Up_1D's odd-length diffY padding is not reproduced; the
    # wrapper enforces L % 4 == 0 so diffY == 0.
    xcat = jnp.concatenate([skip, up], axis=0)        # torch.cat([x2, x1], dim=1)
    return double_conv(xcat, up_p["conv"], N, 2 * Ls, padding_mode)


def unet1d_forward(x, params, padding_mode="zeros"):
    """x: (N, n_channels, L) -> (N, n_classes, L).  Eval-mode UNet_1D."""
    N, cn, L = x.shape
    assert L % 4 == 0, "requires L % 4 == 0 (two exact pool/upsample halvings)"

    xt = x.transpose(1, 0, 2).reshape(cn, N * L)      # channels-major, batch folded
    pool = lambda t: jnp.maximum(t[:, 0::2], t[:, 1::2])  # MaxPool1d(2), L even

    x1 = double_conv(xt, params["inc"], N, L, padding_mode)            # (32,  N*L)
    x2 = double_conv(pool(x1), params["down1"], N, L // 2, padding_mode)  # (64,  N*L/2)
    x3 = double_conv(pool(x2), params["down2"], N, L // 4, padding_mode)  # (128, N*L/4)
    u3 = up_block(x3, x2, params["up3"], N, L // 4, padding_mode)         # (64,  N*L/2)
    u4 = up_block(u3, x1, params["up4"], N, L // 2, padding_mode)         # (32,  N*L)
    out = matmul_bias(u4, params["outc_w"][:, :, 0], params["outc_b"][:, None])

    n_classes = params["outc_w"].shape[0]
    return out.reshape(n_classes, N, L).transpose(1, 0, 2)


# ----------------------------------------------------------------------------
# Pure-JAX reference (same eval-mode semantics) for validation
# ----------------------------------------------------------------------------
def _ref_double_conv(x, p, padding_mode):
    def cbr(h, w, bn):
        g, b, m, v = bn
        if padding_mode == "reflect":
            hp = jnp.pad(h, ((0, 0), (0, 0), (1, 1)), mode="reflect")
        else:
            hp = jnp.pad(h, ((0, 0), (0, 0), (1, 1)))
        y = lax.conv_general_dilated(hp, w, (1,), "VALID",
                                     dimension_numbers=("NCH", "OIH", "NCH"))
        y = (g[None, :, None] * (y - m[None, :, None])
             * lax.rsqrt(v[None, :, None] + BN_EPS) + b[None, :, None])
        return jnp.maximum(y, 0.0)

    h = cbr(x, p["w1"], p["bn1"])
    return cbr(h, p["w2"], p["bn2"])


def ref_forward(x, params, padding_mode="zeros"):
    pool = lambda t: jnp.maximum(t[..., 0::2], t[..., 1::2])

    def up(x1, x2, up_p):
        w, b = up_p["up_w"], up_p["up_b"]
        y0 = jnp.einsum("nil,io->nol", x1, w[:, :, 0])
        y1 = jnp.einsum("nil,io->nol", x1, w[:, :, 1])
        y = (jnp.stack([y0, y1], axis=-1).reshape(x1.shape[0], w.shape[1], -1)
             + b[None, :, None])
        xcat = jnp.concatenate([x2, y], axis=1)
        return _ref_double_conv(xcat, up_p["conv"], padding_mode)

    x1 = _ref_double_conv(x, params["inc"], padding_mode)
    x2 = _ref_double_conv(pool(x1), params["down1"], padding_mode)
    x3 = _ref_double_conv(pool(x2), params["down2"], padding_mode)
    u3 = up(x3, x2, params["up3"])
    u4 = up(u3, x1, params["up4"])
    return (jnp.einsum("nil,oi->nol", u4, params["outc_w"][:, :, 0])
            + params["outc_b"][None, :, None])


# ----------------------------------------------------------------------------
# Parameter init (PyTorch layouts: Conv1d (O,I,K), ConvTranspose1d (I,O,K))
# ----------------------------------------------------------------------------
def init_params(key, n_channels, n_classes):
    f32 = jnp.float32

    def conv_w(k, cout, cin, ksz):
        return jax.random.normal(k, (cout, cin, ksz), f32) / jnp.sqrt(cin * ksz * 1.0)

    def bn(k, c):
        k1, k2, k3, k4 = jax.random.split(k, 4)
        return (1.0 + 0.1 * jax.random.normal(k1, (c,), f32),        # gamma
                0.1 * jax.random.normal(k2, (c,), f32),              # beta
                0.1 * jax.random.normal(k3, (c,), f32),              # running mean
                1.0 + 0.1 * jnp.abs(jax.random.normal(k4, (c,), f32)))  # running var

    def dc(k, cin, cout):
        k1, k2, k3, k4 = jax.random.split(k, 4)
        return {"w1": conv_w(k1, cout, cin, 3), "bn1": bn(k2, cout),
                "w2": conv_w(k3, cout, cout, 3), "bn2": bn(k4, cout)}

    def up(k, cin, cout):
        k1, k2, k3 = jax.random.split(k, 3)
        return {"up_w": jax.random.normal(k1, (cin, cout, 2), f32) / jnp.sqrt(1.0 * cin),
                "up_b": 0.1 * jax.random.normal(k2, (cout,), f32),
                "conv": dc(k3, 2 * cout, cout)}

    ks = jax.random.split(key, 7)
    return {
        "inc": dc(ks[0], n_channels, 32),
        "down1": dc(ks[1], 32, 64),
        "down2": dc(ks[2], 64, 128),
        "up3": up(ks[3], 128, 64),
        "up4": up(ks[4], 64, 32),
        "outc_w": jax.random.normal(ks[5], (n_classes, 32, 1), f32) / jnp.sqrt(32.0),
        "outc_b": 0.1 * jax.random.normal(ks[6], (n_classes,), f32),
    }


# ----------------------------------------------------------------------------
if __name__ == "__main__":
    key = jax.random.PRNGKey(0)
    k_x, k_p = jax.random.split(key)

    # Small shapes consistent with UNet_1D: batch=2, n_channels=4, n_classes=3,
    # L=16 (must be divisible by 4 for the two pool/upsample halvings).
    N, n_channels, n_classes, L = 2, 4, 3, 16
    x = jax.random.normal(k_x, (N, n_channels, L), jnp.float32)
    params = init_params(k_p, n_channels, n_classes)

    fwd = jax.jit(lambda xx, pp: unet1d_forward(xx, pp, padding_mode="zeros"))
    out = jax.block_until_ready(fwd(x, params))

    ref = jax.block_until_ready(ref_forward(x, params, padding_mode="zeros"))
    assert out.shape == (N, n_classes, L)
    max_err = float(jnp.max(jnp.abs(out - ref)))
    assert jnp.allclose(out, ref, atol=5e-3, rtol=5e-3), max_err

    print("KERNEL_OK")
</pallas_src>

<mosaic_0001>
module attributes {stable_mosaic.version = 11 : i64} {
  func.func @_double_conv_kernel(%arg0: i32, %arg1: memref<32x16xf32, #tpu.memory_space<vmem>>, %arg2: memref<64x96xf32, #tpu.memory_space<vmem>>, %arg3: memref<64x1xf32, #tpu.memory_space<vmem>>, %arg4: memref<64x192xf32, #tpu.memory_space<vmem>>, %arg5: memref<64x1xf32, #tpu.memory_space<vmem>>, %arg6: memref<64x16xf32, #tpu.memory_space<vmem>>) attributes {dimension_semantics = [#tpu.dimension_semantics<parallel>], iteration_bounds = array<i64: 1>, scalar_prefetch = 0 : i64, scratch_operands = 0 : i64, tpu.core_type = #tpu.core_type<tc>, window_params = [{transform_indices = @transform_0, window_bounds = array<i64: 32, 16>}, {pipeline_mode = #tpu.pipeline_mode<synchronous>, transform_indices = @transform_1, window_bounds = array<i64: 64, 96>}, {pipeline_mode = #tpu.pipeline_mode<synchronous>, transform_indices = @transform_2, window_bounds = array<i64: 64, 1>}, {pipeline_mode = #tpu.pipeline_mode<synchronous>, transform_indices = @transform_3, window_bounds = array<i64: 64, 192>}, {pipeline_mode = #tpu.pipeline_mode<synchronous>, transform_indices = @transform_4, window_bounds = array<i64: 64, 1>}, {transform_indices = @transform_5, window_bounds = array<i64: 64, 16>}]} {
    %c0 = arith.constant 0 : index
    %c0_0 = arith.constant 0 : index
    %0 = vector.load %arg1[%c0, %c0_0] : memref<32x16xf32, #tpu.memory_space<vmem>>, vector<32x16xf32>
    %c0_1 = arith.constant 0 : index
    %c0_2 = arith.constant 0 : index
    %1 = vector.load %arg2[%c0_1, %c0_2] : memref<64x96xf32, #tpu.memory_space<vmem>>, vector<64x96xf32>
    %c0_3 = arith.constant 0 : index
    %c0_4 = arith.constant 0 : index
    %2 = vector.load %arg3[%c0_3, %c0_4] : memref<64x1xf32, #tpu.memory_space<vmem>>, vector<64x1xf32>
    %3 = tpu.iota {dimensions = array<i32: 1>} : vector<1x16xi32>
    %c8_i32 = arith.constant 8 : i32
    %c0_i32 = arith.constant 0 : i32
    %4 = arith.cmpi eq, %c8_i32, %c0_i32 : i32
    %c1_i32 = arith.constant 1 : i32
    %5 = arith.select %4, %c1_i32, %c8_i32 : i32
    %6 = vector.broadcast %5 : i32 to vector<1x16xi32>
    %7 = arith.remsi %3, %6 : vector<1x16xi32>
    %c0_i32_5 = arith.constant 0 : i32
    %8 = vector.broadcast %c0_i32_5 : i32 to vector<1x16xi32>
    %9 = arith.cmpi ne, %7, %8 : vector<1x16xi32>
    %c0_i32_6 = arith.constant 0 : i32
    %10 = vector.broadcast %c0_i32_6 : i32 to vector<1x16xi32>
    %11 = arith.cmpi slt, %7, %10 : vector<1x16xi32>
    %c0_i32_7 = arith.constant 0 : i32
    %12 = arith.cmpi slt, %5, %c0_i32_7 : i32
    %13 = vector.broadcast %12 : i1 to vector<1x16xi1>
    %14 = vector.broadcast %13 : vector<1x16xi1> to vector<1x16xi1>
    %15 = arith.xori %11, %14 : vector<1x16xi1>
    %16 = arith.andi %15, %9 : vector<1x16xi1>
    %17 = vector.broadcast %5 : i32 to vector<1x16xi32>
    %18 = arith.addi %7, %17 : vector<1x16xi32>
    %19 = arith.select %16, %18, %7 : vector<1x16xi1>, vector<1x16xi32>
    %20 = vector.extract_strided_slice %0 {offsets = [0, 0], sizes = [32, 1], strides = [1, 1]} : vector<32x16xf32> to vector<32x1xf32>
    %21 = vector.extract_strided_slice %0 {offsets = [0, 0], sizes = [32, 15], strides = [1, 1]} : vector<32x16xf32> to vector<32x15xf32>
    %22 = tpu.concatenate %20, %21 in 1 : vector<32x1xf32>, vector<32x15xf32> -> vector<32x16xf32>
    %23 = vector.extract_strided_slice %0 {offsets = [0, 1], sizes = [32, 15], strides = [1, 1]} : vector<32x16xf32> to vector<32x15xf32>
    %24 = vector.extract_strided_slice %0 {offsets = [0, 15], sizes = [32, 1], strides = [1, 1]} : vector<32x16xf32> to vector<32x1xf32>
    %25 = tpu.concatenate %23, %24 in 1 : vector<32x15xf32>, vector<32x1xf32> -> vector<32x16xf32>
    %c0_i32_8 = arith.constant 0 : i32
    %26 = vector.broadcast %c0_i32_8 : i32 to vector<1x16xi32>
    %27 = arith.cmpi eq, %19, %26 : vector<1x16xi32>
    %cst = arith.constant 0.000000e+00 : f32
    %28 = vector.shape_cast %27 : vector<1x16xi1> to vector<1x16xi1>
    %29 = vector.broadcast %28 : vector<1x16xi1> to vector<32x16xi1>
    %30 = vector.broadcast %cst : f32 to vector<32x16xf32>
    %31 = arith.select %29, %30, %22 : vector<32x16xi1>, vector<32x16xf32>
    %c7_i32 = arith.constant 7 : i32
    %32 = vector.broadcast %c7_i32 : i32 to vector<1x16xi32>
    %33 = arith.cmpi eq, %19, %32 : vector<1x16xi32>
    %cst_9 = arith.constant 0.000000e+00 : f32
    %34 = vector.shape_cast %33 : vector<1x16xi1> to vector<1x16xi1>
    %35 = vector.broadcast %34 : vector<1x16xi1> to vector<32x16xi1>
    %36 = vector.broadcast %cst_9 : f32 to vector<32x16xf32>
    %37 = arith.select %35, %36, %25 : vector<32x16xi1>, vector<32x16xf32>
    %38 = tpu.concatenate %31, %0, %37 in 0 : vector<32x16xf32>, vector<32x16xf32>, vector<32x16xf32> -> vector<96x16xf32>
    %cst_10 = arith.constant dense<0.000000e+00> : vector<64x16xf32>
    %39 = tpu.matmul %1, %38, %cst_10 {dimension_numbers = #tpu.dot_dimension_numbers<[1], [0], [0], [1], [0, 0, 1, 1], [], []>} : vector<64x96xf32>, vector<96x16xf32>, vector<64x16xf32> -> vector<64x16xf32>
    %40 = vector.broadcast %2 : vector<64x1xf32> to vector<64x16xf32>
    %41 = arith.addf %39, %40 : vector<64x16xf32>
    %cst_11 = arith.constant 0.000000e+00 : f32
    %42 = vector.broadcast %cst_11 : f32 to vector<64x16xf32>
    %43 = arith.maximumf %41, %42 : vector<64x16xf32>
    %c0_12 = arith.constant 0 : index
    %c0_13 = arith.constant 0 : index
    %44 = vector.load %arg4[%c0_12, %c0_13] : memref<64x192xf32, #tpu.memory_space<vmem>>, vector<64x192xf32>
    %c0_14 = arith.constant 0 : index
    %c0_15 = arith.constant 0 : index
    %45 = vector.load %arg5[%c0_14, %c0_15] : memref<64x1xf32, #tpu.memory_space<vmem>>, vector<64x1xf32>
    %46 = tpu.iota {dimensions = array<i32: 1>} : vector<1x16xi32>
    %c8_i32_16 = arith.constant 8 : i32
    %c0_i32_17 = arith.constant 0 : i32
    %47 = arith.cmpi eq, %c8_i32_16, %c0_i32_17 : i32
    %c1_i32_18 = arith.constant 1 : i32
    %48 = arith.select %47, %c1_i32_18, %c8_i32_16 : i32
    %49 = vector.broadcast %48 : i32 to vector<1x16xi32>
    %50 = arith.remsi %46, %49 : vector<1x16xi32>
    %c0_i32_19 = arith.constant 0 : i32
    %51 = vector.broadcast %c0_i32_19 : i32 to vector<1x16xi32>
    %52 = arith.cmpi ne, %50, %51 : vector<1x16xi32>
    %c0_i32_20 = arith.constant 0 : i32
    %53 = vector.broadcast %c0_i32_20 : i32 to vector<1x16xi32>
    %54 = arith.cmpi slt, %50, %53 : vector<1x16xi32>
    %c0_i32_21 = arith.constant 0 : i32
    %55 = arith.cmpi slt, %48, %c0_i32_21 : i32
    %56 = vector.broadcast %55 : i1 to vector<1x16xi1>
    %57 = vector.broadcast %56 : vector<1x16xi1> to vector<1x16xi1>
    %58 = arith.xori %54, %57 : vector<1x16xi1>
    %59 = arith.andi %58, %52 : vector<1x16xi1>
    %60 = vector.broadcast %48 : i32 to vector<1x16xi32>
    %61 = arith.addi %50, %60 : vector<1x16xi32>
    %62 = arith.select %59, %61, %50 : vector<1x16xi1>, vector<1x16xi32>
    %63 = vector.extract_strided_slice %43 {offsets = [0, 0], sizes = [64, 1], strides = [1, 1]} : vector<64x16xf32> to vector<64x1xf32>
    %64 = vector.extract_strided_slice %43 {offsets = [0, 0], sizes = [64, 15], strides = [1, 1]} : vector<64x16xf32> to vector<64x15xf32>
    %65 = tpu.concatenate %63, %64 in 1 : vector<64x1xf32>, vector<64x15xf32> -> vector<64x16xf32>
    %66 = vector.extract_strided_slice %43 {offsets = [0, 1], sizes = [64, 15], strides = [1, 1]} : vector<64x16xf32> to vector<64x15xf32>
    %67 = vector.extract_strided_slice %43 {offsets = [0, 15], sizes = [64, 1], strides = [1, 1]} : vector<64x16xf32> to vector<64x1xf32>
    %68 = tpu.concatenate %66, %67 in 1 : vector<64x15xf32>, vector<64x1xf32> -> vector<64x16xf32>
    %c0_i32_22 = arith.constant 0 : i32
    %69 = vector.broadcast %c0_i32_22 : i32 to vector<1x16xi32>
    %70 = arith.cmpi eq, %62, %69 : vector<1x16xi32>
    %cst_23 = arith.constant 0.000000e+00 : f32
    %71 = vector.shape_cast %70 : vector<1x16xi1> to vector<1x16xi1>
    %72 = vector.broadcast %71 : vector<1x16xi1> to vector<64x16xi1>
    %73 = vector.broadcast %cst_23 : f32 to vector<64x16xf32>
    %74 = arith.select %72, %73, %65 : vector<64x16xi1>, vector<64x16xf32>
    %c7_i32_24 = arith.constant 7 : i32
    %75 = vector.broadcast %c7_i32_24 : i32 to vector<1x16xi32>
    %76 = arith.cmpi eq, %62, %75 : vector<1x16xi32>
    %cst_25 = arith.constant 0.000000e+00 : f32
    %77 = vector.shape_cast %76 : vector<1x16xi1> to vector<1x16xi1>
    %78 = vector.broadcast %77 : vector<1x16xi1> to vector<64x16xi1>
    %79 = vector.broadcast %cst_25 : f32 to vector<64x16xf32>
    %80 = arith.select %78, %79, %68 : vector<64x16xi1>, vector<64x16xf32>
    %81 = tpu.concatenate %74, %43, %80 in 0 : vector<64x16xf32>, vector<64x16xf32>, vector<64x16xf32> -> vector<192x16xf32>
    %cst_26 = arith.constant dense<0.000000e+00> : vector<64x16xf32>
    %82 = tpu.matmul %44, %81, %cst_26 {dimension_numbers = #tpu.dot_dimension_numbers<[1], [0], [0], [1], [0, 0, 1, 1], [], []>} : vector<64x192xf32>, vector<192x16xf32>, vector<64x16xf32> -> vector<64x16xf32>
    %83 = vector.broadcast %45 : vector<64x1xf32> to vector<64x16xf32>
    %84 = arith.addf %82, %83 : vector<64x16xf32>
    %cst_27 = arith.constant 0.000000e+00 : f32
    %85 = vector.broadcast %cst_27 : f32 to vector<64x16xf32>
    %86 = arith.maximumf %84, %85 : vector<64x16xf32>
    %c0_28 = arith.constant 0 : index
    %c0_29 = arith.constant 0 : index
    %87 = vector.load %arg6[%c0_28, %c0_29] : memref<64x16xf32, #tpu.memory_space<vmem>>, vector<64x16xf32>
    tpu.vector_store %arg6[%c0_28, %c0_29], %86 {strides = array<i32>} : memref<64x16xf32, #tpu.memory_space<vmem>>, vector<64x16xf32>,
    return
  }
  func.func @transform_0(%arg0: i32) -> (i32, i32) {
    %c0_i32 = arith.constant 0 : i32
    %c0_i32_0 = arith.constant 0 : i32
    return %c0_i32, %arg0 : i32, i32
  }
  func.func @transform_1(%arg0: i32) -> (i32, i32) {
    %c0_i32 = arith.constant 0 : i32
    %c0_i32_0 = arith.constant 0 : i32
    %c0_i32_1 = arith.constant 0 : i32
    return %c0_i32, %c0_i32_0 : i32, i32
  }
  func.func @transform_2(%arg0: i32) -> (i32, i32) {
    %c0_i32 = arith.constant 0 : i32
    %c0_i32_0 = arith.constant 0 : i32
    %c0_i32_1 = arith.constant 0 : i32
    return %c0_i32, %c0_i32_0 : i32, i32
  }
  func.func @transform_3(%arg0: i32) -> (i32, i32) {
    %c0_i32 = arith.constant 0 : i32
    %c0_i32_0 = arith.constant 0 : i32
    %c0_i32_1 = arith.constant 0 : i32
    return %c0_i32, %c0_i32_0 : i32, i32
  }
  func.func @transform_4(%arg0: i32) -> (i32, i32) {
    %c0_i32 = arith.constant 0 : i32
    %c0_i32_0 = arith.constant 0 : i32
    %c0_i32_1 = arith.constant 0 : i32
    return %c0_i32, %c0_i32_0 : i32, i32
  }
  func.func @transform_5(%arg0: i32) -> (i32, i32) {
    %c0_i32 = arith.constant 0 : i32
    %c0_i32_0 = arith.constant 0 : i32
    return %c0_i32, %arg0 : i32, i32
  }
}

module attributes {stable_mosaic.version = 11 : i64} {
  func.func @_double_conv_kernel(%arg0: i32, %arg1: memref<8x32xf32, #tpu.memory_space<vmem>>, %arg2: memref<32x24xf32, #tpu.memory_space<vmem>>, %arg3: memref<32x1xf32, #tpu.memory_space<vmem>>, %arg4: memref<32x96xf32, #tpu.memory_space<vmem>>, %arg5: memref<32x1xf32, #tpu.memory_space<vmem>>, %arg6: memref<32x32xf32, #tpu.memory_space<vmem>>) attributes {dimension_semantics = [#tpu.dimension_semantics<parallel>], iteration_bounds = array<i64: 1>, scalar_prefetch = 0 : i64, scratch_operands = 0 : i64, tpu.core_type = #tpu.core_type<tc>, window_params = [{transform_indices = @transform_0, window_bounds = array<i64: 8, 32>}, {pipeline_mode = #tpu.pipeline_mode<synchronous>, transform_indices = @transform_1, window_bounds = array<i64: 32, 24>}, {pipeline_mode = #tpu.pipeline_mode<synchronous>, transform_indices = @transform_2, window_bounds = array<i64: 32, 1>}, {pipeline_mode = #tpu.pipeline_mode<synchronous>, transform_indices = @transform_3, window_bounds = array<i64: 32, 96>}, {pipeline_mode = #tpu.pipeline_mode<synchronous>, transform_indices = @transform_4, window_bounds = array<i64: 32, 1>}, {transform_indices = @transform_5, window_bounds = array<i64: 32, 32>}]} {
    %c0 = arith.constant 0 : index
    %c0_0 = arith.constant 0 : index
    %0 = vector.load %arg1[%c0, %c0_0] : memref<8x32xf32, #tpu.memory_space<vmem>>, vector<8x32xf32>
    %c0_1 = arith.constant 0 : index
    %c0_2 = arith.constant 0 : index
    %1 = vector.load %arg2[%c0_1, %c0_2] : memref<32x24xf32, #tpu.memory_space<vmem>>, vector<32x24xf32>
    %c0_3 = arith.constant 0 : index
    %c0_4 = arith.constant 0 : index
    %2 = vector.load %arg3[%c0_3, %c0_4] : memref<32x1xf32, #tpu.memory_space<vmem>>, vector<32x1xf32>
    %3 = tpu.iota {dimensions = array<i32: 1>} : vector<1x32xi32>
    %c16_i32 = arith.constant 16 : i32
    %c0_i32 = arith.constant 0 : i32
    %4 = arith.cmpi eq, %c16_i32, %c0_i32 : i32
    %c1_i32 = arith.constant 1 : i32
    %5 = arith.select %4, %c1_i32, %c16_i32 : i32
    %6 = vector.broadcast %5 : i32 to vector<1x32xi32>
    %7 = arith.remsi %3, %6 : vector<1x32xi32>
    %c0_i32_5 = arith.constant 0 : i32
    %8 = vector.broadcast %c0_i32_5 : i32 to vector<1x32xi32>
    %9 = arith.cmpi ne, %7, %8 : vector<1x32xi32>
    %c0_i32_6 = arith.constant 0 : i32
    %10 = vector.broadcast %c0_i32_6 : i32 to vector<1x32xi32>
    %11 = arith.cmpi slt, %7, %10 : vector<1x32xi32>
    %c0_i32_7 = arith.constant 0 : i32
    %12 = arith.cmpi slt, %5, %c0_i32_7 : i32
    %13 = vector.broadcast %12 : i1 to vector<1x32xi1>
    %14 = vector.broadcast %13 : vector<1x32xi1> to vector<1x32xi1>
    %15 = arith.xori %11, %14 : vector<1x32xi1>
    %16 = arith.andi %15, %9 : vector<1x32xi1>
    %17 = vector.broadcast %5 : i32 to vector<1x32xi32>
    %18 = arith.addi %7, %17 : vector<1x32xi32>
    %19 = arith.select %16, %18, %7 : vector<1x32xi1>, vector<1x32xi32>
    %20 = vector.extract_strided_slice %0 {offsets = [0, 0], sizes = [8, 1], strides = [1, 1]} : vector<8x32xf32> to vector<8x1xf32>
    %21 = vector.extract_strided_slice %0 {offsets = [0, 0], sizes = [8, 31], strides = [1, 1]} : vector<8x32xf32> to vector<8x31xf32>
    %22 = tpu.concatenate %20, %21 in 1 : vector<8x1xf32>, vector<8x31xf32> -> vector<8x32xf32>
    %23 = vector.extract_strided_slice %0 {offsets = [0, 1], sizes = [8, 31], strides = [1, 1]} : vector<8x32xf32> to vector<8x31xf32>
    %24 = vector.extract_strided_slice %0 {offsets = [0, 31], sizes = [8, 1], strides = [1, 1]} : vector<8x32xf32> to vector<8x1xf32>
    %25 = tpu.concatenate %23, %24 in 1 : vector<8x31xf32>, vector<8x1xf32> -> vector<8x32xf32>
    %c0_i32_8 = arith.constant 0 : i32
    %26 = vector.broadcast %c0_i32_8 : i32 to vector<1x32xi32>
    %27 = arith.cmpi eq, %19, %26 : vector<1x32xi32>
    %cst = arith.constant 0.000000e+00 : f32
    %28 = vector.shape_cast %27 : vector<1x32xi1> to vector<1x32xi1>
    %29 = vector.broadcast %28 : vector<1x32xi1> to vector<8x32xi1>
    %30 = vector.broadcast %cst : f32 to vector<8x32xf32>
    %31 = arith.select %29, %30, %22 : vector<8x32xi1>, vector<8x32xf32>
    %c15_i32 = arith.constant 15 : i32
    %32 = vector.broadcast %c15_i32 : i32 to vector<1x32xi32>
    %33 = arith.cmpi eq, %19, %32 : vector<1x32xi32>
    %cst_9 = arith.constant 0.000000e+00 : f32
    %34 = vector.shape_cast %33 : vector<1x32xi1> to vector<1x32xi1>
    %35 = vector.broadcast %34 : vector<1x32xi1> to vector<8x32xi1>
    %36 = vector.broadcast %cst_9 : f32 to vector<8x32xf32>
    %37 = arith.select %35, %36, %25 : vector<8x32xi1>, vector<8x32xf32>
    %38 = tpu.concatenate %31, %0, %37 in 0 : vector<8x32xf32>, vector<8x32xf32>, vector<8x32xf32> -> vector<24x32xf32>
    %cst_10 = arith.constant dense<0.000000e+00> : vector<32x32xf32>
    %39 = tpu.matmul %1, %38, %cst_10 {dimension_numbers = #tpu.dot_dimension_numbers<[1], [0], [0], [1], [0, 0, 1, 1], [], []>} : vector<32x24xf32>, vector<24x32xf32>, vector<32x32xf32> -> vector<32x32xf32>
    %40 = vector.broadcast %2 : vector<32x1xf32> to vector<32x32xf32>
    %41 = arith.addf %39, %40 : vector<32x32xf32>
    %cst_11 = arith.constant 0.000000e+00 : f32
    %42 = vector.broadcast %cst_11 : f32 to vector<32x32xf32>
    %43 = arith.maximumf %41, %42 : vector<32x32xf32>
    %c0_12 = arith.constant 0 : index
    %c0_13 = arith.constant 0 : index
    %44 = vector.load %arg4[%c0_12, %c0_13] : memref<32x96xf32, #tpu.memory_space<vmem>>, vector<32x96xf32>
    %c0_14 = arith.constant 0 : index
    %c0_15 = arith.constant 0 : index
    %45 = vector.load %arg5[%c0_14, %c0_15] : memref<32x1xf32, #tpu.memory_space<vmem>>, vector<32x1xf32>
    %46 = tpu.iota {dimensions = array<i32: 1>} : vector<1x32xi32>
    %c16_i32_16 = arith.constant 16 : i32
    %c0_i32_17 = arith.constant 0 : i32
    %47 = arith.cmpi eq, %c16_i32_16, %c0_i32_17 : i32
    %c1_i32_18 = arith.constant 1 : i32
    %48 = arith.select %47, %c1_i32_18, %c16_i32_16 : i32
    %49 = vector.broadcast %48 : i32 to vector<1x32xi32>
    %50 = arith.remsi %46, %49 : vector<1x32xi32>
    %c0_i32_19 = arith.constant 0 : i32
    %51 = vector.broadcast %c0_i32_19 : i32 to vector<1x32xi32>
    %52 = arith.cmpi ne, %50, %51 : vector<1x32xi32>
    %c0_i32_20 = arith.constant 0 : i32
    %53 = vector.broadcast %c0_i32_20 : i32 to vector<1x32xi32>
    %54 = arith.cmpi slt, %50, %53 : vector<1x32xi32>
    %c0_i32_21 = arith.constant 0 : i32
    %55 = arith.cmpi slt, %48, %c0_i32_21 : i32
    %56 = vector.broadcast %55 : i1 to vector<1x32xi1>
    %57 = vector.broadcast %56 : vector<1x32xi1> to vector<1x32xi1>
    %58 = arith.xori %54, %57 : vector<1x32xi1>
    %59 = arith.andi %58, %52 : vector<1x32xi1>
    %60 = vector.broadcast %48 : i32 to vector<1x32xi32>
    %61 = arith.addi %50, %60 : vector<1x32xi32>
    %62 = arith.select %59, %61, %50 : vector<1x32xi1>, vector<1x32xi32>
    %63 = vector.extract_strided_slice %43 {offsets = [0, 0], sizes = [32, 1], strides = [1, 1]} : vector<32x32xf32> to vector<32x1xf32>
    %64 = vector.extract_strided_slice %43 {offsets = [0, 0], sizes = [32, 31], strides = [1, 1]} : vector<32x32xf32> to vector<32x31xf32>
    %65 = tpu.concatenate %63, %64 in 1 : vector<32x1xf32>, vector<32x31xf32> -> vector<32x32xf32>
    %66 = vector.extract_strided_slice %43 {offsets = [0, 1], sizes = [32, 31], strides = [1, 1]} : vector<32x32xf32> to vector<32x31xf32>
    %67 = vector.extract_strided_slice %43 {offsets = [0, 31], sizes = [32, 1], strides = [1, 1]} : vector<32x32xf32> to vector<32x1xf32>
    %68 = tpu.concatenate %66, %67 in 1 : vector<32x31xf32>, vector<32x1xf32> -> vector<32x32xf32>
    %c0_i32_22 = arith.constant 0 : i32
    %69 = vector.broadcast %c0_i32_22 : i32 to vector<1x32xi32>
    %70 = arith.cmpi eq, %62, %69 : vector<1x32xi32>
    %cst_23 = arith.constant 0.000000e+00 : f32
    %71 = vector.shape_cast %70 : vector<1x32xi1> to vector<1x32xi1>
    %72 = vector.broadcast %71 : vector<1x32xi1> to vector<32x32xi1>
    %73 = vector.broadcast %cst_23 : f32 to vector<32x32xf32>
    %74 = arith.select %72, %73, %65 : vector<32x32xi1>, vector<32x32xf32>
    %c15_i32_24 = arith.constant 15 : i32
    %75 = vector.broadcast %c15_i32_24 : i32 to vector<1x32xi32>
    %76 = arith.cmpi eq, %62, %75 : vector<1x32xi32>
    %cst_25 = arith.constant 0.000000e+00 : f32
    %77 = vector.shape_cast %76 : vector<1x32xi1> to vector<1x32xi1>
    %78 = vector.broadcast %77 : vector<1x32xi1> to vector<32x32xi1>
    %79 = vector.broadcast %cst_25 : f32 to vector<32x32xf32>
    %80 = arith.select %78, %79, %68 : vector<32x32xi1>, vector<32x32xf32>
    %81 = tpu.concatenate %74, %43, %80 in 0 : vector<32x32xf32>, vector<32x32xf32>, vector<32x32xf32> -> vector<96x32xf32>
    %cst_26 = arith.constant dense<0.000000e+00> : vector<32x32xf32>
    %82 = tpu.matmul %44, %81, %cst_26 {dimension_numbers = #tpu.dot_dimension_numbers<[1], [0], [0], [1], [0, 0, 1, 1], [], []>} : vector<32x96xf32>, vector<96x32xf32>, vector<32x32xf32> -> vector<32x32xf32>
    %83 = vector.broadcast %45 : vector<32x1xf32> to vector<32x32xf32>
    %84 = arith.addf %82, %83 : vector<32x32xf32>
    %cst_27 = arith.constant 0.000000e+00 : f32
    %85 = vector.broadcast %cst_27 : f32 to vector<32x32xf32>
    %86 = arith.maximumf %84, %85 : vector<32x32xf32>
    %c0_28 = arith.constant 0 : index
    %c0_29 = arith.constant 0 : index
    %87 = vector.load %arg6[%c0_28, %c0_29] : memref<32x32xf32, #tpu.memory_space<vmem>>, vector<32x32xf32>
    tpu.vector_store %arg6[%c0_28, %c0_29], %86 {strides = array<i32>} : memref<32x32xf32, #tpu.memory_space<vmem>>, vector<32x32xf32>,
    return
  }
  func.func @transform_0(%arg0: i32) -> (i32, i32) {
    %c0_i32 = arith.constant 0 : i32
    %c0_i32_0 = arith.constant 0 : i32
    return %c0_i32, %arg0 : i32, i32
  }
  func.func @transform_1(%arg0: i32) -> (i32, i32) {
    %c0_i32 = arith.constant 0 : i32
    %c0_i32_0 = arith.constant 0 : i32
    %c0_i32_1 = arith.constant 0 : i32
    return %c0_i32, %c0_i32_0 : i32, i32
  }
  func.func @transform_2(%arg0: i32) -> (i32, i32) {
    %c0_i32 = arith.constant 0 : i32
    %c0_i32_0 = arith.constant 0 : i32
    %c0_i32_1 = arith.constant 0 : i32
    return %c0_i32, %c0_i32_0 : i32, i32
  }
  func.func @transform_3(%arg0: i32) -> (i32, i32) {
    %c0_i32 = arith.constant 0 : i32
    %c0_i32_0 = arith.constant 0 : i32
    %c0_i32_1 = arith.constant 0 : i32
    return %c0_i32, %c0_i32_0 : i32, i32
  }
  func.func @transform_4(%arg0: i32) -> (i32, i32) {
    %c0_i32 = arith.constant 0 : i32
    %c0_i32_0 = arith.constant 0 : i32
    %c0_i32_1 = arith.constant 0 : i32
    return %c0_i32, %c0_i32_0 : i32, i32
  }
  func.func @transform_5(%arg0: i32) -> (i32, i32) {
    %c0_i32 = arith.constant 0 : i32
    %c0_i32_0 = arith.constant 0 : i32
    return %c0_i32, %arg0 : i32, i32
  }
}

module attributes {stable_mosaic.version = 11 : i64} {
  func.func @_double_conv_kernel(%arg0: i32, %arg1: memref<64x8xf32, #tpu.memory_space<vmem>>, %arg2: memref<128x192xf32, #tpu.memory_space<vmem>>, %arg3: memref<128x1xf32, #tpu.memory_space<vmem>>, %arg4: memref<128x384xf32, #tpu.memory_space<vmem>>, %arg5: memref<128x1xf32, #tpu.memory_space<vmem>>, %arg6: memref<128x8xf32, #tpu.memory_space<vmem>>) attributes {dimension_semantics = [#tpu.dimension_semantics<parallel>], iteration_bounds = array<i64: 1>, scalar_prefetch = 0 : i64, scratch_operands = 0 : i64, tpu.core_type = #tpu.core_type<tc>, window_params = [{transform_indices = @transform_0, window_bounds = array<i64: 64, 8>}, {pipeline_mode = #tpu.pipeline_mode<synchronous>, transform_indices = @transform_1, window_bounds = array<i64: 128, 192>}, {pipeline_mode = #tpu.pipeline_mode<synchronous>, transform_indices = @transform_2, window_bounds = array<i64: 128, 1>}, {pipeline_mode = #tpu.pipeline_mode<synchronous>, transform_indices = @transform_3, window_bounds = array<i64: 128, 384>}, {pipeline_mode = #tpu.pipeline_mode<synchronous>, transform_indices = @transform_4, window_bounds = array<i64: 128, 1>}, {transform_indices = @transform_5, window_bounds = array<i64: 128, 8>}]} {
    %c0 = arith.constant 0 : index
    %c0_0 = arith.constant 0 : index
    %0 = vector.load %arg1[%c0, %c0_0] : memref<64x8xf32, #tpu.memory_space<vmem>>, vector<64x8xf32>
    %c0_1 = arith.constant 0 : index
    %c0_2 = arith.constant 0 : index
    %1 = vector.load %arg2[%c0_1, %c0_2] : memref<128x192xf32, #tpu.memory_space<vmem>>, vector<128x192xf32>
    %c0_3 = arith.constant 0 : index
    %c0_4 = arith.constant 0 : index
    %2 = vector.load %arg3[%c0_3, %c0_4] : memref<128x1xf32, #tpu.memory_space<vmem>>, vector<128x1xf32>
    %3 = tpu.iota {dimensions = array<i32: 1>} : vector<1x8xi32>
    %c4_i32 = arith.constant 4 : i32
    %c0_i32 = arith.constant 0 : i32
    %4 = arith.cmpi eq, %c4_i32, %c0_i32 : i32
    %c1_i32 = arith.constant 1 : i32
    %5 = arith.select %4, %c1_i32, %c4_i32 : i32
    %6 = vector.broadcast %5 : i32 to vector<1x8xi32>
    %7 = arith.remsi %3, %6 : vector<1x8xi32>
    %c0_i32_5 = arith.constant 0 : i32
    %8 = vector.broadcast %c0_i32_5 : i32 to vector<1x8xi32>
    %9 = arith.cmpi ne, %7, %8 : vector<1x8xi32>
    %c0_i32_6 = arith.constant 0 : i32
    %10 = vector.broadcast %c0_i32_6 : i32 to vector<1x8xi32>
    %11 = arith.cmpi slt, %7, %10 : vector<1x8xi32>
    %c0_i32_7 = arith.constant 0 : i32
    %12 = arith.cmpi slt, %5, %c0_i32_7 : i32
    %13 = vector.broadcast %12 : i1 to vector<1x8xi1>
    %14 = vector.broadcast %13 : vector<1x8xi1> to vector<1x8xi1>
    %15 = arith.xori %11, %14 : vector<1x8xi1>
    %16 = arith.andi %15, %9 : vector<1x8xi1>
    %17 = vector.broadcast %5 : i32 to vector<1x8xi32>
    %18 = arith.addi %7, %17 : vector<1x8xi32>
    %19 = arith.select %16, %18, %7 : vector<1x8xi1>, vector<1x8xi32>
    %20 = vector.extract_strided_slice %0 {offsets = [0, 0], sizes = [64, 1], strides = [1, 1]} : vector<64x8xf32> to vector<64x1xf32>
    %21 = vector.extract_strided_slice %0 {offsets = [0, 0], sizes = [64, 7], strides = [1, 1]} : vector<64x8xf32> to vector<64x7xf32>
    %22 = tpu.concatenate %20, %21 in 1 : vector<64x1xf32>, vector<64x7xf32> -> vector<64x8xf32>
    %23 = vector.extract_strided_slice %0 {offsets = [0, 1], sizes = [64, 7], strides = [1, 1]} : vector<64x8xf32> to vector<64x7xf32>
    %24 = vector.extract_strided_slice %0 {offsets = [0, 7], sizes = [64, 1], strides = [1, 1]} : vector<64x8xf32> to vector<64x1xf32>
    %25 = tpu.concatenate %23, %24 in 1 : vector<64x7xf32>, vector<64x1xf32> -> vector<64x8xf32>
    %c0_i32_8 = arith.constant 0 : i32
    %26 = vector.broadcast %c0_i32_8 : i32 to vector<1x8xi32>
    %27 = arith.cmpi eq, %19, %26 : vector<1x8xi32>
    %cst = arith.constant 0.000000e+00 : f32
    %28 = vector.shape_cast %27 : vector<1x8xi1> to vector<1x8xi1>
    %29 = vector.broadcast %28 : vector<1x8xi1> to vector<64x8xi1>
    %30 = vector.broadcast %cst : f32 to vector<64x8xf32>
    %31 = arith.select %29, %30, %22 : vector<64x8xi1>, vector<64x8xf32>
    %c3_i32 = arith.constant 3 : i32
    %32 = vector.broadcast %c3_i32 : i32 to vector<1x8xi32>
    %33 = arith.cmpi eq, %19, %32 : vector<1x8xi32>
    %cst_9 = arith.constant 0.000000e+00 : f32
    %34 = vector.shape_cast %33 : vector<1x8xi1> to vector<1x8xi1>
    %35 = vector.broadcast %34 : vector<1x8xi1> to vector<64x8xi1>
    %36 = vector.broadcast %cst_9 : f32 to vector<64x8xf32>
    %37 = arith.select %35, %36, %25 : vector<64x8xi1>, vector<64x8xf32>
    %38 = tpu.concatenate %31, %0, %37 in 0 : vector<64x8xf32>, vector<64x8xf32>, vector<64x8xf32> -> vector<192x8xf32>
    %cst_10 = arith.constant dense<0.000000e+00> : vector<128x8xf32>
    %39 = tpu.matmul %1, %38, %cst_10 {dimension_numbers = #tpu.dot_dimension_numbers<[1], [0], [0], [1], [0, 0, 1, 1], [], []>} : vector<128x192xf32>, vector<192x8xf32>, vector<128x8xf32> -> vector<128x8xf32>
    %40 = vector.broadcast %2 : vector<128x1xf32> to vector<128x8xf32>
    %41 = arith.addf %39, %40 : vector<128x8xf32>
    %cst_11 = arith.constant 0.000000e+00 : f32
    %42 = vector.broadcast %cst_11 : f32 to vector<128x8xf32>
    %43 = arith.maximumf %41, %42 : vector<128x8xf32>
    %c0_12 = arith.constant 0 : index
    %c0_13 = arith.constant 0 : index
    %44 = vector.load %arg4[%c0_12, %c0_13] : memref<128x384xf32, #tpu.memory_space<vmem>>, vector<128x384xf32>
    %c0_14 = arith.constant 0 : index
    %c0_15 = arith.constant 0 : index
    %45 = vector.load %arg5[%c0_14, %c0_15] : memref<128x1xf32, #tpu.memory_space<vmem>>, vector<128x1xf32>
    %46 = tpu.iota {dimensions = array<i32: 1>} : vector<1x8xi32>
    %c4_i32_16 = arith.constant 4 : i32
    %c0_i32_17 = arith.constant 0 : i32
    %47 = arith.cmpi eq, %c4_i32_16, %c0_i32_17 : i32
    %c1_i32_18 = arith.constant 1 : i32
    %48 = arith.select %47, %c1_i32_18, %c4_i32_16 : i32
    %49 = vector.broadcast %48 : i32 to vector<1x8xi32>
    %50 = arith.remsi %46, %49 : vector<1x8xi32>
    %c0_i32_19 = arith.constant 0 : i32
    %51 = vector.broadcast %c0_i32_19 : i32 to vector<1x8xi32>
    %52 = arith.cmpi ne, %50, %51 : vector<1x8xi32>
    %c0_i32_20 = arith.constant 0 : i32
    %53 = vector.broadcast %c0_i32_20 : i32 to vector<1x8xi32>
    %54 = arith.cmpi slt, %50, %53 : vector<1x8xi32>
    %c0_i32_21 = arith.constant 0 : i32
    %55 = arith.cmpi slt, %48, %c0_i32_21 : i32
    %56 = vector.broadcast %55 : i1 to vector<1x8xi1>
    %57 = vector.broadcast %56 : vector<1x8xi1> to vector<1x8xi1>
    %58 = arith.xori %54, %57 : vector<1x8xi1>
    %59 = arith.andi %58, %52 : vector<1x8xi1>
    %60 = vector.broadcast %48 : i32 to vector<1x8xi32>
    %61 = arith.addi %50, %60 : vector<1x8xi32>
    %62 = arith.select %59, %61, %50 : vector<1x8xi1>, vector<1x8xi32>
    %63 = vector.extract_strided_slice %43 {offsets = [0, 0], sizes = [128, 1], strides = [1, 1]} : vector<128x8xf32> to vector<128x1xf32>
    %64 = vector.extract_strided_slice %43 {offsets = [0, 0], sizes = [128, 7], strides = [1, 1]} : vector<128x8xf32> to vector<128x7xf32>
    %65 = tpu.concatenate %63, %64 in 1 : vector<128x1xf32>, vector<128x7xf32> -> vector<128x8xf32>
    %66 = vector.extract_strided_slice %43 {offsets = [0, 1], sizes = [128, 7], strides = [1, 1]} : vector<128x8xf32> to vector<128x7xf32>
    %67 = vector.extract_strided_slice %43 {offsets = [0, 7], sizes = [128, 1], strides = [1, 1]} : vector<128x8xf32> to vector<128x1xf32>
    %68 = tpu.concatenate %66, %67 in 1 : vector<128x7xf32>, vector<128x1xf32> -> vector<128x8xf32>
    %c0_i32_22 = arith.constant 0 : i32
    %69 = vector.broadcast %c0_i32_22 : i32 to vector<1x8xi32>
    %70 = arith.cmpi eq, %62, %69 : vector<1x8xi32>
    %cst_23 = arith.constant 0.000000e+00 : f32
    %71 = vector.shape_cast %70 : vector<1x8xi1> to vector<1x8xi1>
    %72 = vector.broadcast %71 : vector<1x8xi1> to vector<128x8xi1>
    %73 = vector.broadcast %cst_23 : f32 to vector<128x8xf32>
    %74 = arith.select %72, %73, %65 : vector<128x8xi1>, vector<128x8xf32>
    %c3_i32_24 = arith.constant 3 : i32
    %75 = vector.broadcast %c3_i32_24 : i32 to vector<1x8xi32>
    %76 = arith.cmpi eq, %62, %75 : vector<1x8xi32>
    %cst_25 = arith.constant 0.000000e+00 : f32
    %77 = vector.shape_cast %76 : vector<1x8xi1> to vector<1x8xi1>
    %78 = vector.broadcast %77 : vector<1x8xi1> to vector<128x8xi1>
    %79 = vector.broadcast %cst_25 : f32 to vector<128x8xf32>
    %80 = arith.select %78, %79, %68 : vector<128x8xi1>, vector<128x8xf32>
    %81 = tpu.concatenate %74, %43, %80 in 0 : vector<128x8xf32>, vector<128x8xf32>, vector<128x8xf32> -> vector<384x8xf32>
    %cst_26 = arith.constant dense<0.000000e+00> : vector<128x8xf32>
    %82 = tpu.matmul %44, %81, %cst_26 {dimension_numbers = #tpu.dot_dimension_numbers<[1], [0], [0], [1], [0, 0, 1, 1], [], []>} : vector<128x384xf32>, vector<384x8xf32>, vector<128x8xf32> -> vector<128x8xf32>
    %83 = vector.broadcast %45 : vector<128x1xf32> to vector<128x8xf32>
    %84 = arith.addf %82, %83 : vector<128x8xf32>
    %cst_27 = arith.constant 0.000000e+00 : f32
    %85 = vector.broadcast %cst_27 : f32 to vector<128x8xf32>
    %86 = arith.maximumf %84, %85 : vector<128x8xf32>
    %c0_28 = arith.constant 0 : index
    %c0_29 = arith.constant 0 : index
    %87 = vector.load %arg6[%c0_28, %c0_29] : memref<128x8xf32, #tpu.memory_space<vmem>>, vector<128x8xf32>
    tpu.vector_store %arg6[%c0_28, %c0_29], %86 {strides = array<i32>} : memref<128x8xf32, #tpu.memory_space<vmem>>, vector<128x8xf32>,
    return
  }
  func.func @transform_0(%arg0: i32) -> (i32, i32) {
    %c0_i32 = arith.constant 0 : i32
    %c0_i32_0 = arith.constant 0 : i32
    return %c0_i32, %arg0 : i32, i32
  }
  func.func @transform_1(%arg0: i32) -> (i32, i32) {
    %c0_i32 = arith.constant 0 : i32
    %c0_i32_0 = arith.constant 0 : i32
    %c0_i32_1 = arith.constant 0 : i32
    return %c0_i32, %c0_i32_0 : i32, i32
  }
  func.func @transform_2(%arg0: i32) -> (i32, i32) {
    %c0_i32 = arith.constant 0 : i32
    %c0_i32_0 = arith.constant 0 : i32
    %c0_i32_1 = arith.constant 0 : i32
    return %c0_i32, %c0_i32_0 : i32, i32
  }
  func.func @transform_3(%arg0: i32) -> (i32, i32) {
    %c0_i32 = arith.constant 0 : i32
    %c0_i32_0 = arith.constant 0 : i32
    %c0_i32_1 = arith.constant 0 : i32
    return %c0_i32, %c0_i32_0 : i32, i32
  }
  func.func @transform_4(%arg0: i32) -> (i32, i32) {
    %c0_i32 = arith.constant 0 : i32
    %c0_i32_0 = arith.constant 0 : i32
    %c0_i32_1 = arith.constant 0 : i32
    return %c0_i32, %c0_i32_0 : i32, i32
  }
  func.func @transform_5(%arg0: i32) -> (i32, i32) {
    %c0_i32 = arith.constant 0 : i32
    %c0_i32_0 = arith.constant 0 : i32
    return %c0_i32, %arg0 : i32, i32
  }
}

module attributes {stable_mosaic.version = 11 : i64} {
  func.func @_matmul_bias_kernel(%arg0: i32, %arg1: memref<128x8xf32, #tpu.memory_space<vmem>>, %arg2: memref<128x128xf32, #tpu.memory_space<vmem>>, %arg3: memref<128x1xf32, #tpu.memory_space<vmem>>, %arg4: memref<128x8xf32, #tpu.memory_space<vmem>>) attributes {dimension_semantics = [#tpu.dimension_semantics<parallel>], iteration_bounds = array<i64: 1>, scalar_prefetch = 0 : i64, scratch_operands = 0 : i64, tpu.core_type = #tpu.core_type<tc>, window_params = [{transform_indices = @transform_0, window_bounds = array<i64: 128, 8>}, {pipeline_mode = #tpu.pipeline_mode<synchronous>, transform_indices = @transform_1, window_bounds = array<i64: 128, 128>}, {pipeline_mode = #tpu.pipeline_mode<synchronous>, transform_indices = @transform_2, window_bounds = array<i64: 128, 1>}, {transform_indices = @transform_3, window_bounds = array<i64: 128, 8>}]} {
    %c0 = arith.constant 0 : index
    %c0_0 = arith.constant 0 : index
    %0 = vector.load %arg2[%c0, %c0_0] : memref<128x128xf32, #tpu.memory_space<vmem>>, vector<128x128xf32>
    %c0_1 = arith.constant 0 : index
    %c0_2 = arith.constant 0 : index
    %1 = vector.load %arg1[%c0_1, %c0_2] : memref<128x8xf32, #tpu.memory_space<vmem>>, vector<128x8xf32>
    %cst = arith.constant dense<0.000000e+00> : vector<128x8xf32>
    %2 = tpu.matmul %0, %1, %cst {dimension_numbers = #tpu.dot_dimension_numbers<[1], [0], [0], [1], [0, 0, 1, 1], [], []>} : vector<128x128xf32>, vector<128x8xf32>, vector<128x8xf32> -> vector<128x8xf32>
    %c0_3 = arith.constant 0 : index
    %c0_4 = arith.constant 0 : index
    %3 = vector.load %arg3[%c0_3, %c0_4] : memref<128x1xf32, #tpu.memory_space<vmem>>, vector<128x1xf32>
    %4 = vector.broadcast %3 : vector<128x1xf32> to vector<128x8xf32>
    %5 = arith.addf %2, %4 : vector<128x8xf32>
    %c0_5 = arith.constant 0 : index
    %c0_6 = arith.constant 0 : index
    %6 = vector.load %arg4[%c0_5, %c0_6] : memref<128x8xf32, #tpu.memory_space<vmem>>, vector<128x8xf32>
    tpu.vector_store %arg4[%c0_5, %c0_6], %5 {strides = array<i32>} : memref<128x8xf32, #tpu.memory_space<vmem>>, vector<128x8xf32>,
    return
  }
  func.func @transform_0(%arg0: i32) -> (i32, i32) {
    %c0_i32 = arith.constant 0 : i32
    %c0_i32_0 = arith.constant 0 : i32
    return %c0_i32, %arg0 : i32, i32
  }
  func.func @transform_1(%arg0: i32) -> (i32, i32) {
    %c0_i32 = arith.constant 0 : i32
    %c0_i32_0 = arith.constant 0 : i32
    %c0_i32_1 = arith.constant 0 : i32
    return %c0_i32, %c0_i32_0 : i32, i32
  }
  func.func @transform_2(%arg0: i32) -> (i32, i32) {
    %c0_i32 = arith.constant 0 : i32
    %c0_i32_0 = arith.constant 0 : i32
    %c0_i32_1 = arith.constant 0 : i32
    return %c0_i32, %c0_i32_0 : i32, i32
  }
  func.func @transform_3(%arg0: i32) -> (i32, i32) {
    %c0_i32 = arith.constant 0 : i32
    %c0_i32_0 = arith.constant 0 : i32
    return %c0_i32, %arg0 : i32, i32
  }
}

module attributes {stable_mosaic.version = 11 : i64} {
  func.func @_double_conv_kernel(%arg0: i32, %arg1: memref<128x16xf32, #tpu.memory_space<vmem>>, %arg2: memref<64x384xf32, #tpu.memory_space<vmem>>, %arg3: memref<64x1xf32, #tpu.memory_space<vmem>>, %arg4: memref<64x192xf32, #tpu.memory_space<vmem>>, %arg5: memref<64x1xf32, #tpu.memory_space<vmem>>, %arg6: memref<64x16xf32, #tpu.memory_space<vmem>>) attributes {dimension_semantics = [#tpu.dimension_semantics<parallel>], iteration_bounds = array<i64: 1>, scalar_prefetch = 0 : i64, scratch_operands = 0 : i64, tpu.core_type = #tpu.core_type<tc>, window_params = [{transform_indices = @transform_0, window_bounds = array<i64: 128, 16>}, {pipeline_mode = #tpu.pipeline_mode<synchronous>, transform_indices = @transform_1, window_bounds = array<i64: 64, 384>}, {pipeline_mode = #tpu.pipeline_mode<synchronous>, transform_indices = @transform_2, window_bounds = array<i64: 64, 1>}, {pipeline_mode = #tpu.pipeline_mode<synchronous>, transform_indices = @transform_3, window_bounds = array<i64: 64, 192>}, {pipeline_mode = #tpu.pipeline_mode<synchronous>, transform_indices = @transform_4, window_bounds = array<i64: 64, 1>}, {transform_indices = @transform_5, window_bounds = array<i64: 64, 16>}]} {
    %c0 = arith.constant 0 : index
    %c0_0 = arith.constant 0 : index
    %0 = vector.load %arg1[%c0, %c0_0] : memref<128x16xf32, #tpu.memory_space<vmem>>, vector<128x16xf32>
    %c0_1 = arith.constant 0 : index
    %c0_2 = arith.constant 0 : index
    %1 = vector.load %arg2[%c0_1, %c0_2] : memref<64x384xf32, #tpu.memory_space<vmem>>, vector<64x384xf32>
    %c0_3 = arith.constant 0 : index
    %c0_4 = arith.constant 0 : index
    %2 = vector.load %arg3[%c0_3, %c0_4] : memref<64x1xf32, #tpu.memory_space<vmem>>, vector<64x1xf32>
    %3 = tpu.iota {dimensions = array<i32: 1>} : vector<1x16xi32>
    %c8_i32 = arith.constant 8 : i32
    %c0_i32 = arith.constant 0 : i32
    %4 = arith.cmpi eq, %c8_i32, %c0_i32 : i32
    %c1_i32 = arith.constant 1 : i32
    %5 = arith.select %4, %c1_i32, %c8_i32 : i32
    %6 = vector.broadcast %5 : i32 to vector<1x16xi32>
    %7 = arith.remsi %3, %6 : vector<1x16xi32>
    %c0_i32_5 = arith.constant 0 : i32
    %8 = vector.broadcast %c0_i32_5 : i32 to vector<1x16xi32>
    %9 = arith.cmpi ne, %7, %8 : vector<1x16xi32>
    %c0_i32_6 = arith.constant 0 : i32
    %10 = vector.broadcast %c0_i32_6 : i32 to vector<1x16xi32>
    %11 = arith.cmpi slt, %7, %10 : vector<1x16xi32>
    %c0_i32_7 = arith.constant 0 : i32
    %12 = arith.cmpi slt, %5, %c0_i32_7 : i32
    %13 = vector.broadcast %12 : i1 to vector<1x16xi1>
    %14 = vector.broadcast %13 : vector<1x16xi1> to vector<1x16xi1>
    %15 = arith.xori %11, %14 : vector<1x16xi1>
    %16 = arith.andi %15, %9 : vector<1x16xi1>
    %17 = vector.broadcast %5 : i32 to vector<1x16xi32>
    %18 = arith.addi %7, %17 : vector<1x16xi32>
    %19 = arith.select %16, %18, %7 : vector<1x16xi1>, vector<1x16xi32>
    %20 = vector.extract_strided_slice %0 {offsets = [0, 0], sizes = [128, 1], strides = [1, 1]} : vector<128x16xf32> to vector<128x1xf32>
    %21 = vector.extract_strided_slice %0 {offsets = [0, 0], sizes = [128, 15], strides = [1, 1]} : vector<128x16xf32> to vector<128x15xf32>
    %22 = tpu.concatenate %20, %21 in 1 : vector<128x1xf32>, vector<128x15xf32> -> vector<128x16xf32>
    %23 = vector.extract_strided_slice %0 {offsets = [0, 1], sizes = [128, 15], strides = [1, 1]} : vector<128x16xf32> to vector<128x15xf32>
    %24 = vector.extract_strided_slice %0 {offsets = [0, 15], sizes = [128, 1], strides = [1, 1]} : vector<128x16xf32> to vector<128x1xf32>
    %25 = tpu.concatenate %23, %24 in 1 : vector<128x15xf32>, vector<128x1xf32> -> vector<128x16xf32>
    %c0_i32_8 = arith.constant 0 : i32
    %26 = vector.broadcast %c0_i32_8 : i32 to vector<1x16xi32>
    %27 = arith.cmpi eq, %19, %26 : vector<1x16xi32>
    %cst = arith.constant 0.000000e+00 : f32
    %28 = vector.shape_cast %27 : vector<1x16xi1> to vector<1x16xi1>
    %29 = vector.broadcast %28 : vector<1x16xi1> to vector<128x16xi1>
    %30 = vector.broadcast %cst : f32 to vector<128x16xf32>
    %31 = arith.select %29, %30, %22 : vector<128x16xi1>, vector<128x16xf32>
    %c7_i32 = arith.constant 7 : i32
    %32 = vector.broadcast %c7_i32 : i32 to vector<1x16xi32>
    %33 = arith.cmpi eq, %19, %32 : vector<1x16xi32>
    %cst_9 = arith.constant 0.000000e+00 : f32
    %34 = vector.shape_cast %33 : vector<1x16xi1> to vector<1x16xi1>
    %35 = vector.broadcast %34 : vector<1x16xi1> to vector<128x16xi1>
    %36 = vector.broadcast %cst_9 : f32 to vector<128x16xf32>
    %37 = arith.select %35, %36, %25 : vector<128x16xi1>, vector<128x16xf32>
    %38 = tpu.concatenate %31, %0, %37 in 0 : vector<128x16xf32>, vector<128x16xf32>, vector<128x16xf32> -> vector<384x16xf32>
    %cst_10 = arith.constant dense<0.000000e+00> : vector<64x16xf32>
    %39 = tpu.matmul %1, %38, %cst_10 {dimension_numbers = #tpu.dot_dimension_numbers<[1], [0], [0], [1], [0, 0, 1, 1], [], []>} : vector<64x384xf32>, vector<384x16xf32>, vector<64x16xf32> -> vector<64x16xf32>
    %40 = vector.broadcast %2 : vector<64x1xf32> to vector<64x16xf32>
    %41 = arith.addf %39, %40 : vector<64x16xf32>
    %cst_11 = arith.constant 0.000000e+00 : f32
    %42 = vector.broadcast %cst_11 : f32 to vector<64x16xf32>
    %43 = arith.maximumf %41, %42 : vector<64x16xf32>
    %c0_12 = arith.constant 0 : index
    %c0_13 = arith.constant 0 : index
    %44 = vector.load %arg4[%c0_12, %c0_13] : memref<64x192xf32, #tpu.memory_space<vmem>>, vector<64x192xf32>
    %c0_14 = arith.constant 0 : index
    %c0_15 = arith.constant 0 : index
    %45 = vector.load %arg5[%c0_14, %c0_15] : memref<64x1xf32, #tpu.memory_space<vmem>>, vector<64x1xf32>
    %46 = tpu.iota {dimensions = array<i32: 1>} : vector<1x16xi32>
    %c8_i32_16 = arith.constant 8 : i32
    %c0_i32_17 = arith.constant 0 : i32
    %47 = arith.cmpi eq, %c8_i32_16, %c0_i32_17 : i32
    %c1_i32_18 = arith.constant 1 : i32
    %48 = arith.select %47, %c1_i32_18, %c8_i32_16 : i32
    %49 = vector.broadcast %48 : i32 to vector<1x16xi32>
    %50 = arith.remsi %46, %49 : vector<1x16xi32>
    %c0_i32_19 = arith.constant 0 : i32
    %51 = vector.broadcast %c0_i32_19 : i32 to vector<1x16xi32>
    %52 = arith.cmpi ne, %50, %51 : vector<1x16xi32>
    %c0_i32_20 = arith.constant 0 : i32
    %53 = vector.broadcast %c0_i32_20 : i32 to vector<1x16xi32>
    %54 = arith.cmpi slt, %50, %53 : vector<1x16xi32>
    %c0_i32_21 = arith.constant 0 : i32
    %55 = arith.cmpi slt, %48, %c0_i32_21 : i32
    %56 = vector.broadcast %55 : i1 to vector<1x16xi1>
    %57 = vector.broadcast %56 : vector<1x16xi1> to vector<1x16xi1>
    %58 = arith.xori %54, %57 : vector<1x16xi1>
    %59 = arith.andi %58, %52 : vector<1x16xi1>
    %60 = vector.broadcast %48 : i32 to vector<1x16xi32>
    %61 = arith.addi %50, %60 : vector<1x16xi32>
    %62 = arith.select %59, %61, %50 : vector<1x16xi1>, vector<1x16xi32>
    %63 = vector.extract_strided_slice %43 {offsets = [0, 0], sizes = [64, 1], strides = [1, 1]} : vector<64x16xf32> to vector<64x1xf32>
    %64 = vector.extract_strided_slice %43 {offsets = [0, 0], sizes = [64, 15], strides = [1, 1]} : vector<64x16xf32> to vector<64x15xf32>
    %65 = tpu.concatenate %63, %64 in 1 : vector<64x1xf32>, vector<64x15xf32> -> vector<64x16xf32>
    %66 = vector.extract_strided_slice %43 {offsets = [0, 1], sizes = [64, 15], strides = [1, 1]} : vector<64x16xf32> to vector<64x15xf32>
    %67 = vector.extract_strided_slice %43 {offsets = [0, 15], sizes = [64, 1], strides = [1, 1]} : vector<64x16xf32> to vector<64x1xf32>
    %68 = tpu.concatenate %66, %67 in 1 : vector<64x15xf32>, vector<64x1xf32> -> vector<64x16xf32>
    %c0_i32_22 = arith.constant 0 : i32
    %69 = vector.broadcast %c0_i32_22 : i32 to vector<1x16xi32>
    %70 = arith.cmpi eq, %62, %69 : vector<1x16xi32>
    %cst_23 = arith.constant 0.000000e+00 : f32
    %71 = vector.shape_cast %70 : vector<1x16xi1> to vector<1x16xi1>
    %72 = vector.broadcast %71 : vector<1x16xi1> to vector<64x16xi1>
    %73 = vector.broadcast %cst_23 : f32 to vector<64x16xf32>
    %74 = arith.select %72, %73, %65 : vector<64x16xi1>, vector<64x16xf32>
    %c7_i32_24 = arith.constant 7 : i32
    %75 = vector.broadcast %c7_i32_24 : i32 to vector<1x16xi32>
    %76 = arith.cmpi eq, %62, %75 : vector<1x16xi32>
    %cst_25 = arith.constant 0.000000e+00 : f32
    %77 = vector.shape_cast %76 : vector<1x16xi1> to vector<1x16xi1>
    %78 = vector.broadcast %77 : vector<1x16xi1> to vector<64x16xi1>
    %79 = vector.broadcast %cst_25 : f32 to vector<64x16xf32>
    %80 = arith.select %78, %79, %68 : vector<64x16xi1>, vector<64x16xf32>
    %81 = tpu.concatenate %74, %43, %80 in 0 : vector<64x16xf32>, vector<64x16xf32>, vector<64x16xf32> -> vector<192x16xf32>
    %cst_26 = arith.constant dense<0.000000e+00> : vector<64x16xf32>
    %82 = tpu.matmul %44, %81, %cst_26 {dimension_numbers = #tpu.dot_dimension_numbers<[1], [0], [0], [1], [0, 0, 1, 1], [], []>} : vector<64x192xf32>, vector<192x16xf32>, vector<64x16xf32> -> vector<64x16xf32>
    %83 = vector.broadcast %45 : vector<64x1xf32> to vector<64x16xf32>
    %84 = arith.addf %82, %83 : vector<64x16xf32>
    %cst_27 = arith.constant 0.000000e+00 : f32
    %85 = vector.broadcast %cst_27 : f32 to vector<64x16xf32>
    %86 = arith.maximumf %84, %85 : vector<64x16xf32>
    %c0_28 = arith.constant 0 : index
    %c0_29 = arith.constant 0 : index
    %87 = vector.load %arg6[%c0_28, %c0_29] : memref<64x16xf32, #tpu.memory_space<vmem>>, vector<64x16xf32>
    tpu.vector_store %arg6[%c0_28, %c0_29], %86 {strides = array<i32>} : memref<64x16xf32, #tpu.memory_space<vmem>>, vector<64x16xf32>,
    return
  }
  func.func @transform_0(%arg0: i32) -> (i32, i32) {
    %c0_i32 = arith.constant 0 : i32
    %c0_i32_0 = arith.constant 0 : i32
    return %c0_i32, %arg0 : i32, i32
  }
  func.func @transform_1(%arg0: i32) -> (i32, i32) {
    %c0_i32 = arith.constant 0 : i32
    %c0_i32_0 = arith.constant 0 : i32
    %c0_i32_1 = arith.constant 0 : i32
    return %c0_i32, %c0_i32_0 : i32, i32
  }
  func.func @transform_2(%arg0: i32) -> (i32, i32) {
    %c0_i32 = arith.constant 0 : i32
    %c0_i32_0 = arith.constant 0 : i32
    %c0_i32_1 = arith.constant 0 : i32
    return %c0_i32, %c0_i32_0 : i32, i32
  }
  func.func @transform_3(%arg0: i32) -> (i32, i32) {
    %c0_i32 = arith.constant 0 : i32
    %c0_i32_0 = arith.constant 0 : i32
    %c0_i32_1 = arith.constant 0 : i32
    return %c0_i32, %c0_i32_0 : i32, i32
  }
  func.func @transform_4(%arg0: i32) -> (i32, i32) {
    %c0_i32 = arith.constant 0 : i32
    %c0_i32_0 = arith.constant 0 : i32
    %c0_i32_1 = arith.constant 0 : i32
    return %c0_i32, %c0_i32_0 : i32, i32
  }
  func.func @transform_5(%arg0: i32) -> (i32, i32) {
    %c0_i32 = arith.constant 0 : i32
    %c0_i32_0 = arith.constant 0 : i32
    return %c0_i32, %arg0 : i32, i32
  }
}

module attributes {stable_mosaic.version = 11 : i64} {
  func.func @_matmul_bias_kernel(%arg0: i32, %arg1: memref<64x16xf32, #tpu.memory_space<vmem>>, %arg2: memref<64x64xf32, #tpu.memory_space<vmem>>, %arg3: memref<64x1xf32, #tpu.memory_space<vmem>>, %arg4: memref<64x16xf32, #tpu.memory_space<vmem>>) attributes {dimension_semantics = [#tpu.dimension_semantics<parallel>], iteration_bounds = array<i64: 1>, scalar_prefetch = 0 : i64, scratch_operands = 0 : i64, tpu.core_type = #tpu.core_type<tc>, window_params = [{transform_indices = @transform_0, window_bounds = array<i64: 64, 16>}, {pipeline_mode = #tpu.pipeline_mode<synchronous>, transform_indices = @transform_1, window_bounds = array<i64: 64, 64>}, {pipeline_mode = #tpu.pipeline_mode<synchronous>, transform_indices = @transform_2, window_bounds = array<i64: 64, 1>}, {transform_indices = @transform_3, window_bounds = array<i64: 64, 16>}]} {
    %c0 = arith.constant 0 : index
    %c0_0 = arith.constant 0 : index
    %0 = vector.load %arg2[%c0, %c0_0] : memref<64x64xf32, #tpu.memory_space<vmem>>, vector<64x64xf32>
    %c0_1 = arith.constant 0 : index
    %c0_2 = arith.constant 0 : index
    %1 = vector.load %arg1[%c0_1, %c0_2] : memref<64x16xf32, #tpu.memory_space<vmem>>, vector<64x16xf32>
    %cst = arith.constant dense<0.000000e+00> : vector<64x16xf32>
    %2 = tpu.matmul %0, %1, %cst {dimension_numbers = #tpu.dot_dimension_numbers<[1], [0], [0], [1], [0, 0, 1, 1], [], []>} : vector<64x64xf32>, vector<64x16xf32>, vector<64x16xf32> -> vector<64x16xf32>
    %c0_3 = arith.constant 0 : index
    %c0_4 = arith.constant 0 : index
    %3 = vector.load %arg3[%c0_3, %c0_4] : memref<64x1xf32, #tpu.memory_space<vmem>>, vector<64x1xf32>
    %4 = vector.broadcast %3 : vector<64x1xf32> to vector<64x16xf32>
    %5 = arith.addf %2, %4 : vector<64x16xf32>
    %c0_5 = arith.constant 0 : index
    %c0_6 = arith.constant 0 : index
    %6 = vector.load %arg4[%c0_5, %c0_6] : memref<64x16xf32, #tpu.memory_space<vmem>>, vector<64x16xf32>
    tpu.vector_store %arg4[%c0_5, %c0_6], %5 {strides = array<i32>} : memref<64x16xf32, #tpu.memory_space<vmem>>, vector<64x16xf32>,
    return
  }
  func.func @transform_0(%arg0: i32) -> (i32, i32) {
    %c0_i32 = arith.constant 0 : i32
    %c0_i32_0 = arith.constant 0 : i32
    return %c0_i32, %arg0 : i32, i32
  }
  func.func @transform_1(%arg0: i32) -> (i32, i32) {
    %c0_i32 = arith.constant 0 : i32
    %c0_i32_0 = arith.constant 0 : i32
    %c0_i32_1 = arith.constant 0 : i32
    return %c0_i32, %c0_i32_0 : i32, i32
  }
  func.func @transform_2(%arg0: i32) -> (i32, i32) {
    %c0_i32 = arith.constant 0 : i32
    %c0_i32_0 = arith.constant 0 : i32
    %c0_i32_1 = arith.constant 0 : i32
    return %c0_i32, %c0_i32_0 : i32, i32
  }
  func.func @transform_3(%arg0: i32) -> (i32, i32) {
    %c0_i32 = arith.constant 0 : i32
    %c0_i32_0 = arith.constant 0 : i32
    return %c0_i32, %arg0 : i32, i32
  }
}

module attributes {stable_mosaic.version = 11 : i64} {
  func.func @_matmul_bias_kernel(%arg0: i32, %arg1: memref<32x32xf32, #tpu.memory_space<vmem>>, %arg2: memref<3x32xf32, #tpu.memory_space<vmem>>, %arg3: memref<3x1xf32, #tpu.memory_space<vmem>>, %arg4: memref<3x32xf32, #tpu.memory_space<vmem>>) attributes {dimension_semantics = [#tpu.dimension_semantics<parallel>], iteration_bounds = array<i64: 1>, scalar_prefetch = 0 : i64, scratch_operands = 0 : i64, tpu.core_type = #tpu.core_type<tc>, window_params = [{transform_indices = @transform_0, window_bounds = array<i64: 32, 32>}, {pipeline_mode = #tpu.pipeline_mode<synchronous>, transform_indices = @transform_1, window_bounds = array<i64: 3, 32>}, {pipeline_mode = #tpu.pipeline_mode<synchronous>, transform_indices = @transform_2, window_bounds = array<i64: 3, 1>}, {transform_indices = @transform_3, window_bounds = array<i64: 3, 32>}]} {
    %c0 = arith.constant 0 : index
    %c0_0 = arith.constant 0 : index
    %0 = vector.load %arg2[%c0, %c0_0] : memref<3x32xf32, #tpu.memory_space<vmem>>, vector<3x32xf32>
    %c0_1 = arith.constant 0 : index
    %c0_2 = arith.constant 0 : index
    %1 = vector.load %arg1[%c0_1, %c0_2] : memref<32x32xf32, #tpu.memory_space<vmem>>, vector<32x32xf32>
    %cst = arith.constant dense<0.000000e+00> : vector<3x32xf32>
    %2 = tpu.matmul %0, %1, %cst {dimension_numbers = #tpu.dot_dimension_numbers<[1], [0], [0], [1], [0, 0, 1, 1], [], []>} : vector<3x32xf32>, vector<32x32xf32>, vector<3x32xf32> -> vector<3x32xf32>
    %c0_3 = arith.constant 0 : index
    %c0_4 = arith.constant 0 : index
    %3 = vector.load %arg3[%c0_3, %c0_4] : memref<3x1xf32, #tpu.memory_space<vmem>>, vector<3x1xf32>
    %4 = vector.broadcast %3 : vector<3x1xf32> to vector<3x32xf32>
    %5 = arith.addf %2, %4 : vector<3x32xf32>
    %c0_5 = arith.constant 0 : index
    %c0_6 = arith.constant 0 : index
    %6 = vector.load %arg4[%c0_5, %c0_6] : memref<3x32xf32, #tpu.memory_space<vmem>>, vector<3x32xf32>
    tpu.vector_store %arg4[%c0_5, %c0_6], %5 {strides = array<i32>} : memref<3x32xf32, #tpu.memory_space<vmem>>, vector<3x32xf32>,
    return
  }
  func.func @transform_0(%arg0: i32) -> (i32, i32) {
    %c0_i32 = arith.constant 0 : i32
    %c0_i32_0 = arith.constant 0 : i32
    return %c0_i32, %arg0 : i32, i32
  }
  func.func @transform_1(%arg0: i32) -> (i32, i32) {
    %c0_i32 = arith.constant 0 : i32
    %c0_i32_0 = arith.constant 0 : i32
    %c0_i32_1 = arith.constant 0 : i32
    return %c0_i32, %c0_i32_0 : i32, i32
  }
  func.func @transform_2(%arg0: i32) -> (i32, i32) {
    %c0_i32 = arith.constant 0 : i32
    %c0_i32_0 = arith.constant 0 : i32
    %c0_i32_1 = arith.constant 0 : i32
    return %c0_i32, %c0_i32_0 : i32, i32
  }
  func.func @transform_3(%arg0: i32) -> (i32, i32) {
    %c0_i32 = arith.constant 0 : i32
    %c0_i32_0 = arith.constant 0 : i32
    return %c0_i32, %arg0 : i32, i32
  }
}

module attributes {stable_mosaic.version = 11 : i64} {
  func.func @_double_conv_kernel(%arg0: i32, %arg1: memref<64x32xf32, #tpu.memory_space<vmem>>, %arg2: memref<32x192xf32, #tpu.memory_space<vmem>>, %arg3: memref<32x1xf32, #tpu.memory_space<vmem>>, %arg4: memref<32x96xf32, #tpu.memory_space<vmem>>, %arg5: memref<32x1xf32, #tpu.memory_space<vmem>>, %arg6: memref<32x32xf32, #tpu.memory_space<vmem>>) attributes {dimension_semantics = [#tpu.dimension_semantics<parallel>], iteration_bounds = array<i64: 1>, scalar_prefetch = 0 : i64, scratch_operands = 0 : i64, tpu.core_type = #tpu.core_type<tc>, window_params = [{transform_indices = @transform_0, window_bounds = array<i64: 64, 32>}, {pipeline_mode = #tpu.pipeline_mode<synchronous>, transform_indices = @transform_1, window_bounds = array<i64: 32, 192>}, {pipeline_mode = #tpu.pipeline_mode<synchronous>, transform_indices = @transform_2, window_bounds = array<i64: 32, 1>}, {pipeline_mode = #tpu.pipeline_mode<synchronous>, transform_indices = @transform_3, window_bounds = array<i64: 32, 96>}, {pipeline_mode = #tpu.pipeline_mode<synchronous>, transform_indices = @transform_4, window_bounds = array<i64: 32, 1>}, {transform_indices = @transform_5, window_bounds = array<i64: 32, 32>}]} {
    %c0 = arith.constant 0 : index
    %c0_0 = arith.constant 0 : index
    %0 = vector.load %arg1[%c0, %c0_0] : memref<64x32xf32, #tpu.memory_space<vmem>>, vector<64x32xf32>
    %c0_1 = arith.constant 0 : index
    %c0_2 = arith.constant 0 : index
    %1 = vector.load %arg2[%c0_1, %c0_2] : memref<32x192xf32, #tpu.memory_space<vmem>>, vector<32x192xf32>
    %c0_3 = arith.constant 0 : index
    %c0_4 = arith.constant 0 : index
    %2 = vector.load %arg3[%c0_3, %c0_4] : memref<32x1xf32, #tpu.memory_space<vmem>>, vector<32x1xf32>
    %3 = tpu.iota {dimensions = array<i32: 1>} : vector<1x32xi32>
    %c16_i32 = arith.constant 16 : i32
    %c0_i32 = arith.constant 0 : i32
    %4 = arith.cmpi eq, %c16_i32, %c0_i32 : i32
    %c1_i32 = arith.constant 1 : i32
    %5 = arith.select %4, %c1_i32, %c16_i32 : i32
    %6 = vector.broadcast %5 : i32 to vector<1x32xi32>
    %7 = arith.remsi %3, %6 : vector<1x32xi32>
    %c0_i32_5 = arith.constant 0 : i32
    %8 = vector.broadcast %c0_i32_5 : i32 to vector<1x32xi32>
    %9 = arith.cmpi ne, %7, %8 : vector<1x32xi32>
    %c0_i32_6 = arith.constant 0 : i32
    %10 = vector.broadcast %c0_i32_6 : i32 to vector<1x32xi32>
    %11 = arith.cmpi slt, %7, %10 : vector<1x32xi32>
    %c0_i32_7 = arith.constant 0 : i32
    %12 = arith.cmpi slt, %5, %c0_i32_7 : i32
    %13 = vector.broadcast %12 : i1 to vector<1x32xi1>
    %14 = vector.broadcast %13 : vector<1x32xi1> to vector<1x32xi1>
    %15 = arith.xori %11, %14 : vector<1x32xi1>
    %16 = arith.andi %15, %9 : vector<1x32xi1>
    %17 = vector.broadcast %5 : i32 to vector<1x32xi32>
    %18 = arith.addi %7, %17 : vector<1x32xi32>
    %19 = arith.select %16, %18, %7 : vector<1x32xi1>, vector<1x32xi32>
    %20 = vector.extract_strided_slice %0 {offsets = [0, 0], sizes = [64, 1], strides = [1, 1]} : vector<64x32xf32> to vector<64x1xf32>
    %21 = vector.extract_strided_slice %0 {offsets = [0, 0], sizes = [64, 31], strides = [1, 1]} : vector<64x32xf32> to vector<64x31xf32>
    %22 = tpu.concatenate %20, %21 in 1 : vector<64x1xf32>, vector<64x31xf32> -> vector<64x32xf32>
    %23 = vector.extract_strided_slice %0 {offsets = [0, 1], sizes = [64, 31], strides = [1, 1]} : vector<64x32xf32> to vector<64x31xf32>
    %24 = vector.extract_strided_slice %0 {offsets = [0, 31], sizes = [64, 1], strides = [1, 1]} : vector<64x32xf32> to vector<64x1xf32>
    %25 = tpu.concatenate %23, %24 in 1 : vector<64x31xf32>, vector<64x1xf32> -> vector<64x32xf32>
    %c0_i32_8 = arith.constant 0 : i32
    %26 = vector.broadcast %c0_i32_8 : i32 to vector<1x32xi32>
    %27 = arith.cmpi eq, %19, %26 : vector<1x32xi32>
    %cst = arith.constant 0.000000e+00 : f32
    %28 = vector.shape_cast %27 : vector<1x32xi1> to vector<1x32xi1>
    %29 = vector.broadcast %28 : vector<1x32xi1> to vector<64x32xi1>
    %30 = vector.broadcast %cst : f32 to vector<64x32xf32>
    %31 = arith.select %29, %30, %22 : vector<64x32xi1>, vector<64x32xf32>
    %c15_i32 = arith.constant 15 : i32
    %32 = vector.broadcast %c15_i32 : i32 to vector<1x32xi32>
    %33 = arith.cmpi eq, %19, %32 : vector<1x32xi32>
    %cst_9 = arith.constant 0.000000e+00 : f32
    %34 = vector.shape_cast %33 : vector<1x32xi1> to vector<1x32xi1>
    %35 = vector.broadcast %34 : vector<1x32xi1> to vector<64x32xi1>
    %36 = vector.broadcast %cst_9 : f32 to vector<64x32xf32>
    %37 = arith.select %35, %36, %25 : vector<64x32xi1>, vector<64x32xf32>
    %38 = tpu.concatenate %31, %0, %37 in 0 : vector<64x32xf32>, vector<64x32xf32>, vector<64x32xf32> -> vector<192x32xf32>
    %cst_10 = arith.constant dense<0.000000e+00> : vector<32x32xf32>
    %39 = tpu.matmul %1, %38, %cst_10 {dimension_numbers = #tpu.dot_dimension_numbers<[1], [0], [0], [1], [0, 0, 1, 1], [], []>} : vector<32x192xf32>, vector<192x32xf32>, vector<32x32xf32> -> vector<32x32xf32>
    %40 = vector.broadcast %2 : vector<32x1xf32> to vector<32x32xf32>
    %41 = arith.addf %39, %40 : vector<32x32xf32>
    %cst_11 = arith.constant 0.000000e+00 : f32
    %42 = vector.broadcast %cst_11 : f32 to vector<32x32xf32>
    %43 = arith.maximumf %41, %42 : vector<32x32xf32>
    %c0_12 = arith.constant 0 : index
    %c0_13 = arith.constant 0 : index
    %44 = vector.load %arg4[%c0_12, %c0_13] : memref<32x96xf32, #tpu.memory_space<vmem>>, vector<32x96xf32>
    %c0_14 = arith.constant 0 : index
    %c0_15 = arith.constant 0 : index
    %45 = vector.load %arg5[%c0_14, %c0_15] : memref<32x1xf32, #tpu.memory_space<vmem>>, vector<32x1xf32>
    %46 = tpu.iota {dimensions = array<i32: 1>} : vector<1x32xi32>
    %c16_i32_16 = arith.constant 16 : i32
    %c0_i32_17 = arith.constant 0 : i32
    %47 = arith.cmpi eq, %c16_i32_16, %c0_i32_17 : i32
    %c1_i32_18 = arith.constant 1 : i32
    %48 = arith.select %47, %c1_i32_18, %c16_i32_16 : i32
    %49 = vector.broadcast %48 : i32 to vector<1x32xi32>
    %50 = arith.remsi %46, %49 : vector<1x32xi32>
    %c0_i32_19 = arith.constant 0 : i32
    %51 = vector.broadcast %c0_i32_19 : i32 to vector<1x32xi32>
    %52 = arith.cmpi ne, %50, %51 : vector<1x32xi32>
    %c0_i32_20 = arith.constant 0 : i32
    %53 = vector.broadcast %c0_i32_20 : i32 to vector<1x32xi32>
    %54 = arith.cmpi slt, %50, %53 : vector<1x32xi32>
    %c0_i32_21 = arith.constant 0 : i32
    %55 = arith.cmpi slt, %48, %c0_i32_21 : i32
    %56 = vector.broadcast %55 : i1 to vector<1x32xi1>
    %57 = vector.broadcast %56 : vector<1x32xi1> to vector<1x32xi1>
    %58 = arith.xori %54, %57 : vector<1x32xi1>
    %59 = arith.andi %58, %52 : vector<1x32xi1>
    %60 = vector.broadcast %48 : i32 to vector<1x32xi32>
    %61 = arith.addi %50, %60 : vector<1x32xi32>
    %62 = arith.select %59, %61, %50 : vector<1x32xi1>, vector<1x32xi32>
    %63 = vector.extract_strided_slice %43 {offsets = [0, 0], sizes = [32, 1], strides = [1, 1]} : vector<32x32xf32> to vector<32x1xf32>
    %64 = vector.extract_strided_slice %43 {offsets = [0, 0], sizes = [32, 31], strides = [1, 1]} : vector<32x32xf32> to vector<32x31xf32>
    %65 = tpu.concatenate %63, %64 in 1 : vector<32x1xf32>, vector<32x31xf32> -> vector<32x32xf32>
    %66 = vector.extract_strided_slice %43 {offsets = [0, 1], sizes = [32, 31], strides = [1, 1]} : vector<32x32xf32> to vector<32x31xf32>
    %67 = vector.extract_strided_slice %43 {offsets = [0, 31], sizes = [32, 1], strides = [1, 1]} : vector<32x32xf32> to vector<32x1xf32>
    %68 = tpu.concatenate %66, %67 in 1 : vector<32x31xf32>, vector<32x1xf32> -> vector<32x32xf32>
    %c0_i32_22 = arith.constant 0 : i32
    %69 = vector.broadcast %c0_i32_22 : i32 to vector<1x32xi32>
    %70 = arith.cmpi eq, %62, %69 : vector<1x32xi32>
    %cst_23 = arith.constant 0.000000e+00 : f32
    %71 = vector.shape_cast %70 : vector<1x32xi1> to vector<1x32xi1>
    %72 = vector.broadcast %71 : vector<1x32xi1> to vector<32x32xi1>
    %73 = vector.broadcast %cst_23 : f32 to vector<32x32xf32>
    %74 = arith.select %72, %73, %65 : vector<32x32xi1>, vector<32x32xf32>
    %c15_i32_24 = arith.constant 15 : i32
    %75 = vector.broadcast %c15_i32_24 : i32 to vector<1x32xi32>
    %76 = arith.cmpi eq, %62, %75 : vector<1x32xi32>
    %cst_25 = arith.constant 0.000000e+00 : f32
    %77 = vector.shape_cast %76 : vector<1x32xi1> to vector<1x32xi1>
    %78 = vector.broadcast %77 : vector<1x32xi1> to vector<32x32xi1>
    %79 = vector.broadcast %cst_25 : f32 to vector<32x32xf32>
    %80 = arith.select %78, %79, %68 : vector<32x32xi1>, vector<32x32xf32>
    %81 = tpu.concatenate %74, %43, %80 in 0 : vector<32x32xf32>, vector<32x32xf32>, vector<32x32xf32> -> vector<96x32xf32>
    %cst_26 = arith.constant dense<0.000000e+00> : vector<32x32xf32>
    %82 = tpu.matmul %44, %81, %cst_26 {dimension_numbers = #tpu.dot_dimension_numbers<[1], [0], [0], [1], [0, 0, 1, 1], [], []>} : vector<32x96xf32>, vector<96x32xf32>, vector<32x32xf32> -> vector<32x32xf32>
    %83 = vector.broadcast %45 : vector<32x1xf32> to vector<32x32xf32>
    %84 = arith.addf %82, %83 : vector<32x32xf32>
    %cst_27 = arith.constant 0.000000e+00 : f32
    %85 = vector.broadcast %cst_27 : f32 to vector<32x32xf32>
    %86 = arith.maximumf %84, %85 : vector<32x32xf32>
    %c0_28 = arith.constant 0 : index
    %c0_29 = arith.constant 0 : index
    %87 = vector.load %arg6[%c0_28, %c0_29] : memref<32x32xf32, #tpu.memory_space<vmem>>, vector<32x32xf32>
    tpu.vector_store %arg6[%c0_28, %c0_29], %86 {strides = array<i32>} : memref<32x32xf32, #tpu.memory_space<vmem>>, vector<32x32xf32>,
    return
  }
  func.func @transform_0(%arg0: i32) -> (i32, i32) {
    %c0_i32 = arith.constant 0 : i32
    %c0_i32_0 = arith.constant 0 : i32
    return %c0_i32, %arg0 : i32, i32
  }
  func.func @transform_1(%arg0: i32) -> (i32, i32) {
    %c0_i32 = arith.constant 0 : i32
    %c0_i32_0 = arith.constant 0 : i32
    %c0_i32_1 = arith.constant 0 : i32
    return %c0_i32, %c0_i32_0 : i32, i32
  }
  func.func @transform_2(%arg0: i32) -> (i32, i32) {
    %c0_i32 = arith.constant 0 : i32
    %c0_i32_0 = arith.constant 0 : i32
    %c0_i32_1 = arith.constant 0 : i32
    return %c0_i32, %c0_i32_0 : i32, i32
  }
  func.func @transform_3(%arg0: i32) -> (i32, i32) {
    %c0_i32 = arith.constant 0 : i32
    %c0_i32_0 = arith.constant 0 : i32
    %c0_i32_1 = arith.constant 0 : i32
    return %c0_i32, %c0_i32_0 : i32, i32
  }
  func.func @transform_4(%arg0: i32) -> (i32, i32) {
    %c0_i32 = arith.constant 0 : i32
    %c0_i32_0 = arith.constant 0 : i32
    %c0_i32_1 = arith.constant 0 : i32
    return %c0_i32, %c0_i32_0 : i32, i32
  }
  func.func @transform_5(%arg0: i32) -> (i32, i32) {
    %c0_i32 = arith.constant 0 : i32
    %c0_i32_0 = arith.constant 0 : i32
    return %c0_i32, %arg0 : i32, i32
  }
}

</mosaic_0001>

<bundles_post_ra>
// kernel: _lambda_.9
= control target key start
LH: loop header
LB: loop body
LE: loop exit
PB: predicated region body
PF: predicated region fallthrough
CT: control target
= control target key end

     0   :  { %s875_s26 = smov 1   ;;  %s876_s27 = smov 127   ;;  %vm146_vm0 = vcmask 785408   ;;  %v877_v7 = vmov 0   ;;  %v40_v16 = vlaneseq  ;;  %vm70_vm1 = vcmask 7168   ;;  %s1277_s0 = inlined_call_operand.vmem [shape: f32[32,16], index: 0, kind: input, shape index: {}]   ;;  %s1278_s1 = inlined_call_operand.vmem [shape: f32[64,96], index: 1, kind: input, shape index: {}]   ;;  %s1279_s2 = inlined_call_operand.vmem [shape: f32[64,1], index: 2, kind: input, shape index: {}]   ;;  %s1280_s4 = inlined_call_operand.vmem [shape: f32[64,1], index: 4, kind: input, shape index: {}]   ;;  %s1281_s3 = inlined_call_operand.vmem [shape: f32[64,192], index: 3, kind: input, shape index: {}]   ;;  %s1282_s5 = inlined_call_operand.vmem [shape: f32[64,16], index: 5, kind: output, shape index: {}]  }
   0x1   :  { %v912_v0 = vld [vmem:[%s1277_s0] sm:$0xff]  ;;  %v917_v1 = vld [vmem:[%s1277_s0 + $0x8] sm:$0xff]  ;;  %v922_v2 = vld [vmem:[%s1277_s0 + $0x10] sm:$0xff]  ;;  %834 = vset.pattern.permute.xlu1 %v877_v7  ;;  %833 = vset.pattern.permute.xlu0 %v877_v7  ;;  %vm87_vm4 = vcmask 121856   ;;  %v878_v56 = vmov 0.0|0.0   ;;  %vm436_vm7 = vcmask 523264  }
   0x2   :  { %v813_v3 = vpack.i.bf16 %v917_v1, %v912_v0  ;;  %v929_v4 = vld [vmem:[%s1277_s0 + $0x18] sm:$0xff]  ;;  %v24_v6 = vld [vmem:[%s1278_s1] sm:$0xff]  ;;  %v33_v8 = vld [vmem:[%s1279_s2 + $0x8] sm:$0xff]  ;;  %v41_v17 = vand.u32 127, %v40_v16  ;;  %v721_v33 = vpack.c.bf16 %v917_v1, %v912_v0  ;;  %785 = vmatprep.subr.bf16.mxu1 %v878_v56  ;;  %vm574_vm8 = vcmask 130048  }
   0x3   :  { %v818_v5 = vpack.i.bf16 %v929_v4, %v922_v2  ;;  %697 = vmatprep.mubr.msk.f32.mxu0 %vm146_vm0, %v24_v6  ;;  %v32_v9 = vld [vmem:[%s1279_s2] sm:$0xff]  ;;  %v34_v10 = vld [vmem:[%s1279_s2 + $0x10] sm:$0xff]  ;;  %v35_v11 = vld [vmem:[%s1279_s2 + $0x18] sm:$0xff]  ;;  %v725_v37 = vpack.c.bf16 %v929_v4, %v922_v2 }
   0x4   :  { %814 = vrot.lane.b32.xlu0 %v813_v3, %s875_s26  ;;  %824 = vrot.lane.b32.xlu1 %v813_v3, %s876_s27  ;;  %v36_v12 = vld [vmem:[%s1279_s2 + $0x20] sm:$0xff]  ;;  %v37_v13 = vld [vmem:[%s1279_s2 + $0x28] sm:$0xff]  ;;  %v46_v18 = vand.u32 7, %v41_v17 }
   0x5   :  { %v38_v14 = vld [vmem:[%s1279_s2 + $0x30] sm:$0xff]  ;;  %v39_v15 = vld [vmem:[%s1279_s2 + $0x38] sm:$0xff]  ;;  %v25_v47 = vld [vmem:[%s1278_s1 + $0x8] sm:$0xff] }
   0x6   :  { %vm651_vm2 = vcmp.ne.s32.totalorder %v46_v18, 0  ;;  %vm652_vm5 = vcmp.ne.s32.totalorder %v46_v18, 7  ;;  %v26_v48 = vld [vmem:[%s1278_s1 + $0x10] sm:$0xff]  ;;  %v27_v49 = vld [vmem:[%s1278_s1 + $0x18] sm:$0xff]  ;;  %v28_v50 = vld [vmem:[%s1278_s1 + $0x20] sm:$0xff] }
   0x7   :  { %vm969_vm3 = vmpackc.low %vm651_vm2, %vm651_vm2  ;;  %v29_v51 = vld [vmem:[%s1278_s1 + $0x28] sm:$0xff]  ;;  %v30_v52 = vld [vmem:[%s1278_s1 + $0x30] sm:$0xff] }
   0x8   :  { %819 = vrot.lane.b32.xlu0 %v818_v5, %s875_s26  ;;  %829 = vrot.lane.b32.xlu1 %v818_v5, %s876_s27  ;;  %vm997_vm6 = vmpackc.low %vm652_vm5, %vm652_vm5  ;;  %v31_v53 = vld [vmem:[%s1278_s1 + $0x38] sm:$0xff]  ;;  %v288_v45 = vld [vmem:[%s1281_s3 + $0x20] sm:$0xff] }
   0xc   :  { %113 = vperm.xlu1 %834, %v33_v8   ;;  %108 = vperm.xlu0 %833, %v32_v9  }
  0x10   :  { %118 = vperm.xlu1 %834, %v34_v10   ;;  %123 = vperm.xlu0 %833, %v35_v11  }
  0x14   :  { %128 = vperm.xlu1 %834, %v36_v12   ;;  %133 = vperm.xlu0 %833, %v37_v13  }
  0x18   :  { %138 = vperm.xlu1 %834, %v38_v14   ;;  %143 = vperm.xlu0 %833, %v39_v15  }
  0x76   :  { %v815_v19 = vpop.permute.xlu0 %814  ;;  %v825_v27 = vpop.permute.xlu1 %824 }
  0x77   :  { %v817_v20 = vunpack.i.h.bf16 %v815_v19  ;;  %v816_v21 = vunpack.i.l.bf16 %v815_v19  ;;  %v827_v34 = vunpack.i.h.bf16 %v825_v27  ;;  %v826_v35 = vunpack.i.l.bf16 %v825_v27 }
  0x79   :  { %v71_v22 = vsel %vm70_vm1, %v912_v0, %v816_v21  ;;  %v72_v23 = vsel %vm70_vm1, %v917_v1, %v817_v20  ;;  %v89_v38 = vsel %vm87_vm4, %v827_v34, %v917_v1  ;;  %v88_v39 = vsel %vm87_vm4, %v826_v35, %v912_v0  ;;  %v306_v34 = vld [vmem:[%s1280_s4 + $0x30] sm:$0xff]  ;;  %v307_v35 = vld [vmem:[%s1280_s4 + $0x38] sm:$0xff] }
  0x7a   :  { %v820_v25 = vpop.permute.xlu0 %819  ;;  %v709_v26 = vpack.c.bf16 %v72_v23, %v71_v22  ;;  %v830_v36 = vpop.permute.xlu1 %829  ;;  %v729_v42 = vpack.c.bf16 %v89_v38, %v88_v39 }
  0x7b   :  { %v822_v28 = vunpack.i.h.bf16 %v820_v25  ;;  %v821_v29 = vunpack.i.l.bf16 %v820_v25  ;;  %v832_v40 = vunpack.i.h.bf16 %v830_v36  ;;  %v831_v41 = vunpack.i.l.bf16 %v830_v36  ;;  %v285_v36 = vld [vmem:[%s1281_s3 + $0x8] sm:$0xff] }
  0x7c   :  { %711 = vmatprep.subr.msk.bf16.mxu0 %vm969_vm3, %v709_v26 }
  0x7d   :  { %v74_v30 = vsel %vm70_vm1, %v929_v4, %v822_v28  ;;  %v73_v31 = vsel %vm70_vm1, %v922_v2, %v821_v29  ;;  %714 = vmatpush3.bf16.msk.msra.mxu0 %vm969_vm3, %v709_v26  ;;  %v91_v43 = vsel %vm87_vm4, %v832_v40, %v929_v4  ;;  %v90_v44 = vsel %vm87_vm4, %v831_v41, %v922_v2  ;;  %v300_v28 = vld [vmem:[%s1280_s4] sm:$0xff]  ;;  %v301_v29 = vld [vmem:[%s1280_s4 + $0x8] sm:$0xff] }
  0x7e   :  { %v715_v32 = vpack.c.bf16 %v74_v30, %v73_v31  ;;  %v735_v46 = vpack.c.bf16 %v91_v43, %v90_v44  ;;  %v302_v30 = vld [vmem:[%s1280_s4 + $0x10] sm:$0xff]  ;;  %v303_v31 = vld [vmem:[%s1280_s4 + $0x18] sm:$0xff] }
  0x80   :  { %717 = vmatprep.subr.msk.bf16.mxu0 %vm969_vm3, %v715_v32 }
  0x81   :  { %720 = vmatpush3.bf16.msk.msra.mxu0 %vm969_vm3, %v715_v32  ;;  %v304_v32 = vld [vmem:[%s1280_s4 + $0x20] sm:$0xff] }
  0x82   :  { %722 = vmatprep.subr.bf16.mxu0 %v721_v33 }
  0x85   :  { %724 = vmatpush3.bf16.msra.mxu0 %v721_v33  ;;  %v305_v33 = vld [vmem:[%s1280_s4 + $0x28] sm:$0xff] }
  0x86   :  { %726 = vmatprep.subr.bf16.mxu0 %v725_v37 }
  0x89   :  { %728 = vmatpush3.bf16.msra.mxu0 %v725_v37  ;;  %v287_v37 = vld [vmem:[%s1281_s3 + $0x18] sm:$0xff] }
  0x8a   :  { %731 = vmatprep.subr.msk.bf16.mxu0 %vm997_vm6, %v729_v42  ;;  %644 = vmatprep.mubr.msk.f32.mxu1 %vm436_vm7, %v287_v37  ;;  %v296_v37 = vld [vmem:[%s1281_s3 + $0x60] sm:$0xff] }
  0x8b   :  { %v109_v54 = vpop.permute.xlu0 %108  ;;  %v114_v55 = vpop.permute.xlu1 %113 }
  0x8d   :  { %734 = vmatpush3.bf16.msk.msra.mxu0 %vm997_vm6, %v729_v42 }
  0x8e   :  { %737 = vmatprep.subr.msk.bf16.mxu0 %vm997_vm6, %v735_v46 }
  0x8f   :  { %v124_v57 = vpop.permute.xlu0 %123  ;;  %v119_v59 = vpop.permute.xlu1 %118 }
  0x91   :  { %740 = vmatpush3.bf16.msk.msra.mxu0 %vm997_vm6, %v735_v46 }
  0x92   :  { %741 = vmatprep.subr.bf16.mxu0 %v878_v56 }
  0x93   :  { %v134_v4 = vpop.permute.xlu0 %133  ;;  %v129_v7 = vpop.permute.xlu1 %128 }
  0x94   :  { %698 = vmatmul.mubr.msk.f32.vlgmr.msra.gmra.mrb[0].mxu0 %vm146_vm0, %v25_v47 }
  0x95   :  { %700 = vmatprep.mubr.msk.f32.mxu0 %vm146_vm0, %v26_v48 }
  0x97   :  { %v144_v16 = vpop.permute.xlu0 %143  ;;  %v139_v19 = vpop.permute.xlu1 %138 }
  0x98   :  { %701 = vmatmul.mubr.msk.f32.gmra.mrb[2].mxu0 %vm146_vm0, %v27_v49 }
  0x99   :  { %703 = vmatprep.mubr.msk.f32.mxu0 %vm146_vm0, %v28_v50 }
  0x9c   :  { %704 = vmatmul.mubr.msk.f32.gmra.mrb[4].mxu0 %vm146_vm0, %v29_v51 }
  0x9d   :  { %706 = vmatprep.mubr.msk.f32.mxu0 %vm146_vm0, %v30_v52 }
  0xa0   :  { %707 = vmatmul.mubr.msk.f32.gmra.mrb[6].mxu0 %vm146_vm0, %v31_v53 }
  0xa1   :  { %643 = vmatprep.mubr.msk.f32.mxu0 %vm436_vm7, %v285_v36  ;;  %v297_v36 = vld [vmem:[%s1281_s3 + $0x68] sm:$0xff] }
 0x167   :  { %v699_v58 = vpop.f32.mrb[0].mxu0 }
 0x168   :  { %v243_v60 = vadd.f32 %v699_v58, %v114_v55  ;;  %v237_v61 = vpop.f32.mrb[1].mxu0 }
 0x169   :  { %v238_v62 = vadd.f32 %v237_v61, %v109_v54 }
 0x16a   :  { %v1039_v63 = vmax.f32 %v243_v60, 0.0 }
 0x16b   :  { %v1041_v0 = vmax.f32 %v238_v62, 0.0  ;;  %v702_v1 = vpop.f32.mrb[2].mxu0 }
 0x16c   :  { %v253_v2 = vadd.f32 %v702_v1, %v124_v57  ;;  %v247_v3 = vpop.f32.mrb[3].mxu0 }
 0x16d   :  { %v248_v5 = vadd.f32 %v247_v3, %v119_v59  ;;  %v835_v6 = vpack.i.bf16 %v1039_v63, %v1041_v0 }
 0x16e   :  { %v1045_v8 = vmax.f32 %v253_v2, 0.0  ;;  %v758_v2 = vpack.c.bf16 %v1039_v63, %v1041_v0 }
 0x16f   :  { %v1047_v9 = vmax.f32 %v248_v5, 0.0  ;;  %v705_v10 = vpop.f32.mrb[4].mxu0  ;;  %836 = vrot.lane.b32.xlu1 %v835_v6, %s875_s26 }
 0x170   :  { %v263_v11 = vadd.f32 %v705_v10, %v134_v4  ;;  %v257_v12 = vpop.f32.mrb[5].mxu0 }
 0x171   :  { %v258_v13 = vadd.f32 %v257_v12, %v129_v7  ;;  %v840_v14 = vpack.i.bf16 %v1045_v8, %v1047_v9  ;;  %v761_v3 = vpack.c.bf16 %v1045_v8, %v1047_v9 }
 0x172   :  { %v1052_v15 = vmax.f32 %v263_v11, 0.0 }
 0x173   :  { %v1054_v17 = vmax.f32 %v258_v13, 0.0  ;;  %v708_v18 = vpop.f32.mrb[6].mxu0  ;;  %841 = vrot.lane.b32.xlu0 %v840_v14, %s875_s26 }
 0x174   :  { %v273_v20 = vadd.f32 %v708_v18, %v144_v16  ;;  %v267_v21 = vpop.f32.mrb[7].mxu0 }
 0x175   :  { %v268_v22 = vadd.f32 %v267_v21, %v139_v19  ;;  %v845_v23 = vpack.i.bf16 %v1052_v15, %v1054_v17  ;;  %v764_v24 = vpack.c.bf16 %v1052_v15, %v1054_v17 }
 0x176   :  { %v1059_v25 = vmax.f32 %v273_v20, 0.0 }
 0x177   :  { %v1061_v26 = vmax.f32 %v268_v22, 0.0  ;;  %846 = vrot.lane.b32.xlu1 %v845_v23, %s875_s26 }
 0x179   :  { %v850_v27 = vpack.i.bf16 %v1059_v25, %v1061_v26  ;;  %v767_v10 = vpack.c.bf16 %v1059_v25, %v1061_v26 }
 0x17b   :  { %851 = vrot.lane.b32.xlu0 %v850_v27, %s875_s26  ;;  %856 = vrot.lane.b32.xlu1 %v835_v6, %s876_s27 }
 0x17f   :  { %861 = vrot.lane.b32.xlu0 %v840_v14, %s876_s27  ;;  %866 = vrot.lane.b32.xlu1 %v845_v23, %s876_s27 }
 0x183   :  { %871 = vrot.lane.b32.xlu0 %v850_v27, %s876_s27  ;;  %398 = vperm.xlu1 %834, %v300_v28  }
 0x187   :  { %403 = vperm.xlu0 %833, %v301_v29   ;;  %408 = vperm.xlu1 %834, %v302_v30   ;;  %v289_v30 = vld [vmem:[%s1281_s3 + $0x28] sm:$0xff] }
 0x18b   :  { %413 = vperm.xlu0 %833, %v303_v31   ;;  %418 = vperm.xlu1 %834, %v304_v32   ;;  %v290_v31 = vld [vmem:[%s1281_s3 + $0x30] sm:$0xff]  ;;  %v293_v32 = vld [vmem:[%s1281_s3 + $0x48] sm:$0xff] }
 0x18f   :  { %423 = vperm.xlu0 %833, %v305_v33   ;;  %428 = vperm.xlu1 %834, %v306_v34   ;;  %v292_v33 = vld [vmem:[%s1281_s3 + $0x40] sm:$0xff]  ;;  %v295_v34 = vld [vmem:[%s1281_s3 + $0x58] sm:$0xff] }
 0x193   :  { %433 = vperm.xlu0 %833, %v307_v35   ;;  %v294_v35 = vld [vmem:[%s1281_s3 + $0x50] sm:$0xff] }
 0x1e1   :  { %v837_v38 = vpop.permute.xlu1 %836 }
 0x1e2   :  { %v839_v39 = vunpack.i.h.bf16 %v837_v38  ;;  %v838_v40 = vunpack.i.l.bf16 %v837_v38  ;;  %v299_v38 = vld [vmem:[%s1281_s3 + $0x78] sm:$0xff] }
 0x1e4   :  { %v341_v41 = vsel %vm70_vm1, %v1039_v63, %v839_v39  ;;  %v340_v42 = vsel %vm70_vm1, %v1041_v0, %v838_v40  ;;  %v298_v39 = vld [vmem:[%s1281_s3 + $0x70] sm:$0xff] }
 0x1e5   :  { %v742_v43 = vpack.c.bf16 %v341_v41, %v340_v42  ;;  %v842_v44 = vpop.permute.xlu0 %841 }
 0x1e6   :  { %v844_v46 = vunpack.i.h.bf16 %v842_v44  ;;  %v843_v47 = vunpack.i.l.bf16 %v842_v44 }
 0x1e7   :  { %744 = vmatpush1.bf16.msk.msra.mxu0 %vm969_vm3, %v742_v43  ;;  %797 = vmatpush1.bf16.msk.msra.mxu1 %vm969_vm3, %v742_v43 }
 0x1e8   :  { %v343_v48 = vsel %vm70_vm1, %v1045_v8, %v844_v46  ;;  %v342_v49 = vsel %vm70_vm1, %v1047_v9, %v843_v47  ;;  %745 = vmatprep.subr.bf16.mxu0 %v878_v56  ;;  %786 = vmatprep.subr.bf16.mxu1 %v878_v56 }
 0x1e9   :  { %v746_v50 = vpack.c.bf16 %v343_v48, %v342_v49  ;;  %v847_v51 = vpop.permute.xlu1 %846 }
 0x1ea   :  { %v849_v52 = vunpack.i.h.bf16 %v847_v51  ;;  %v848_v53 = vunpack.i.l.bf16 %v847_v51 }
 0x1eb   :  { %748 = vmatpush1.bf16.msk.msra.mxu0 %vm969_vm3, %v746_v50  ;;  %798 = vmatpush1.bf16.msk.msra.mxu1 %vm969_vm3, %v746_v50 }
 0x1ec   :  { %v345_v54 = vsel %vm70_vm1, %v1052_v15, %v849_v52  ;;  %v344_v55 = vsel %vm70_vm1, %v1054_v17, %v848_v53  ;;  %749 = vmatprep.subr.bf16.mxu0 %v878_v56  ;;  %787 = vmatprep.subr.bf16.mxu1 %v878_v56 }
 0x1ed   :  { %v750_v57 = vpack.c.bf16 %v345_v54, %v344_v55  ;;  %v852_v58 = vpop.permute.xlu0 %851  ;;  %v857_v4 = vpop.permute.xlu1 %856 }
 0x1ee   :  { %v854_v59 = vunpack.i.h.bf16 %v852_v58  ;;  %v853_v60 = vunpack.i.l.bf16 %v852_v58  ;;  %v859_v5 = vunpack.i.h.bf16 %v857_v4  ;;  %v858_v6 = vunpack.i.l.bf16 %v857_v4 }
 0x1ef   :  { %752 = vmatpush1.bf16.msk.msra.mxu0 %vm969_vm3, %v750_v57  ;;  %799 = vmatpush1.bf16.msk.msra.mxu1 %vm969_vm3, %v750_v57 }
 0x1f0   :  { %v347_v61 = vsel %vm70_vm1, %v1059_v25, %v854_v59  ;;  %v346_v62 = vsel %vm70_vm1, %v1061_v26, %v853_v60  ;;  %753 = vmatprep.subr.bf16.mxu0 %v878_v56  ;;  %788 = vmatprep.subr.bf16.mxu1 %v878_v56  ;;  %v373_v11 = vsel %vm87_vm4, %v859_v5, %v1039_v63 }
 0x1f1   :  { %v754_v1 = vpack.c.bf16 %v347_v61, %v346_v62  ;;  %v862_v7 = vpop.permute.xlu0 %861  ;;  %v372_v12 = vsel %vm87_vm4, %v858_v6, %v1041_v0  ;;  %v867_v16 = vpop.permute.xlu1 %866 }
 0x1f2   :  { %v864_v13 = vunpack.i.h.bf16 %v862_v7  ;;  %v863_v14 = vunpack.i.l.bf16 %v862_v7  ;;  %v770_v18 = vpack.c.bf16 %v373_v11, %v372_v12  ;;  %v869_v63 = vunpack.i.h.bf16 %v867_v16 }
 0x1f3   :  { %756 = vmatpush1.bf16.msk.msra.mxu0 %vm969_vm3, %v754_v1  ;;  %800 = vmatpush1.bf16.msk.msra.mxu1 %vm969_vm3, %v754_v1  ;;  %v868_v21 = vunpack.i.l.bf16 %v867_v16 }
 0x1f4   :  { %757 = vmatprep.subr.bf16.mxu0 %v878_v56  ;;  %789 = vmatprep.subr.bf16.mxu1 %v878_v56  ;;  %v375_v19 = vsel %vm87_vm4, %v864_v13, %v1045_v8  ;;  %v374_v20 = vsel %vm87_vm4, %v863_v14, %v1047_v9  ;;  %v377_v8 = vsel %vm87_vm4, %v869_v63, %v1052_v15 }
 0x1f5   :  { %v872_v22 = vpop.permute.xlu0 %871  ;;  %v774_v0 = vpack.c.bf16 %v375_v19, %v374_v20  ;;  %v376_v9 = vsel %vm87_vm4, %v868_v21, %v1054_v17 }
 0x1f6   :  { %v874_v23 = vunpack.i.h.bf16 %v872_v22  ;;  %v873_v27 = vunpack.i.l.bf16 %v872_v22  ;;  %v778_v28 = vpack.c.bf16 %v377_v8, %v376_v9 }
 0x1f7   :  { %759 = vmatpush1.bf16.msra.mxu0 %v758_v2  ;;  %801 = vmatpush1.bf16.msra.mxu1 %v758_v2 }
 0x1f8   :  { %760 = vmatprep.subr.bf16.mxu0 %v878_v56  ;;  %790 = vmatprep.subr.bf16.mxu1 %v878_v56  ;;  %v379_v29 = vsel %vm87_vm4, %v874_v23, %v1059_v25  ;;  %v378_v15 = vsel %vm87_vm4, %v873_v27, %v1061_v26  ;;  %v284_v25 = vld [vmem:[%s1281_s3] sm:$0xff]  ;;  %v286_v26 = vld [vmem:[%s1281_s3 + $0x10] sm:$0xff] }
 0x1f9   :  { %v782_v17 = vpack.c.bf16 %v379_v29, %v378_v15 }
 0x1fb   :  { %762 = vmatpush1.bf16.msra.mxu0 %v761_v3  ;;  %802 = vmatpush1.bf16.msra.mxu1 %v761_v3 }
 0x1fc   :  { %763 = vmatprep.subr.bf16.mxu0 %v878_v56  ;;  %791 = vmatprep.subr.bf16.mxu1 %v878_v56 }
 0x1ff   :  { %765 = vmatpush1.bf16.msra.mxu0 %v764_v24  ;;  %803 = vmatpush1.bf16.msra.mxu1 %v764_v24 }
 0x200   :  { %766 = vmatprep.subr.bf16.mxu0 %v878_v56  ;;  %792 = vmatprep.subr.bf16.mxu1 %v878_v56 }
 0x202   :  { %v399_v40 = vpop.permute.xlu1 %398 }
 0x203   :  { %768 = vmatpush1.bf16.msra.mxu0 %v767_v10  ;;  %804 = vmatpush1.bf16.msra.mxu1 %v767_v10 }
 0x204   :  { %769 = vmatprep.subr.bf16.mxu0 %v878_v56  ;;  %793 = vmatprep.subr.bf16.mxu1 %v878_v56 }
 0x206   :  { %v404_v41 = vpop.permute.xlu0 %403  ;;  %v409_v51 = vpop.permute.xlu1 %408 }
 0x207   :  { %772 = vmatpush1.bf16.msk.msra.mxu0 %vm997_vm6, %v770_v18  ;;  %805 = vmatpush1.bf16.msk.msra.mxu1 %vm997_vm6, %v770_v18 }
 0x208   :  { %773 = vmatprep.subr.bf16.mxu0 %v878_v56  ;;  %794 = vmatprep.subr.bf16.mxu1 %v878_v56 }
 0x20a   :  { %v414_v57 = vpop.permute.xlu0 %413  ;;  %v419_v62 = vpop.permute.xlu1 %418 }
 0x20b   :  { %776 = vmatpush1.bf16.msk.msra.mxu0 %vm997_vm6, %v774_v0  ;;  %806 = vmatpush1.bf16.msk.msra.mxu1 %vm997_vm6, %v774_v0 }
 0x20c   :  { %777 = vmatprep.subr.bf16.mxu0 %v878_v56  ;;  %795 = vmatprep.subr.bf16.mxu1 %v878_v56 }
 0x20e   :  { %v424_v24 = vpop.permute.xlu0 %423  ;;  %v429_v11 = vpop.permute.xlu1 %428 }
 0x20f   :  { %780 = vmatpush1.bf16.msk.msra.mxu0 %vm997_vm6, %v778_v28  ;;  %807 = vmatpush1.bf16.msk.msra.mxu1 %vm997_vm6, %v778_v28 }
 0x210   :  { %781 = vmatprep.subr.bf16.mxu0 %v878_v56  ;;  %796 = vmatprep.subr.bf16.mxu1 %v878_v56  ;;  %v291_v56 = vld [vmem:[%s1281_s3 + $0x38] sm:$0xff] }
 0x212   :  { %v434_v18 = vpop.permute.xlu0 %433 }
 0x213   :  { %784 = vmatpush1.bf16.msk.msra.mxu0 %vm997_vm6, %v782_v17  ;;  %808 = vmatpush1.bf16.msk.msra.mxu1 %vm997_vm6, %v782_v17 }
 0x216   :  { %526 = vmatmul.mubr.f32.vlgmr.msra.gmra.mrb[8].mxu0 %v284_v25  ;;  %531 = vmatmul.mubr.f32.vlgmr.msra.gmra.mrb[0].mxu1 %v286_v26 }
 0x217   :  { %645 = vmatprep.mubr.msk.f32.mxu1 %vm436_vm7, %v289_v30 }
 0x21a   :  { %536 = vmatmul.mubr.f32.gmra.mrb[2].mxu1 %v288_v45 }
 0x21b   :  { %646 = vmatprep.mubr.msk.f32.mxu1 %vm436_vm7, %v291_v56 }
 0x21e   :  { %541 = vmatmul.mubr.f32.gmra.mrb[4].mxu1 %v290_v31 }
 0x21f   :  { %647 = vmatprep.mubr.msk.f32.mxu1 %vm436_vm7, %v293_v32 }
 0x222   :  { %546 = vmatmul.mubr.f32.gmra.mrb[6].mxu1 %v292_v33 }
 0x223   :  { %648 = vmatprep.mubr.msk.f32.mxu1 %vm436_vm7, %v295_v34 }
 0x226   :  { %551 = vmatmul.mubr.f32.gmra.mrb[8].mxu1 %v294_v35 }
 0x227   :  { %649 = vmatprep.mubr.msk.f32.mxu1 %vm436_vm7, %v297_v36 }
 0x22a   :  { %556 = vmatmul.mubr.f32.gmra.mrb[10].mxu1 %v296_v37 }
 0x22b   :  { %650 = vmatprep.mubr.msk.f32.mxu1 %vm436_vm7, %v299_v38 }
 0x22e   :  { %561 = vmatmul.mubr.f32.gmra.mrb[12].mxu1 %v298_v39 }
 0x2e9   :  { %v527_v42 = vpop.f32.mrb[8].mxu0  ;;  %v532_v43 = vpop.f32.mrb[0].mxu1 }
 0x2ea   :  { %v528_v44 = vadd.f32 %v527_v42, %v399_v40  ;;  %v533_v46 = vadd.f32 %v532_v43, %v404_v41  ;;  %v534_v47 = vpop.f32.mrb[1].mxu1  ;;  %v529_v48 = vpop.f32.mrb[9].mxu0 }
 0x2ec   :  { %v566_v49 = vmax.f32 %v528_v44, 0.0  ;;  %v567_v50 = vmax.f32 %v533_v46, 0.0 }
 0x2ed   :  { %v537_v52 = vpop.f32.mrb[2].mxu1 }
 0x2ee   :  { %575 = vst.msk [vmem:[%s1282_s5] sm:$0xff] %vm574_vm8, %v566_v49  ;;  %576 = vst.msk [vmem:[%s1282_s5 + $0x8] sm:$0xff] %vm574_vm8, %v567_v50  ;;  %v538_v53 = vadd.f32 %v537_v52, %v409_v51  ;;  %v539_v54 = vpop.f32.mrb[3].mxu1 }
 0x2f0   :  { %v568_v55 = vmax.f32 %v538_v53, 0.0 }
 0x2f1   :  { %v542_v58 = vpop.f32.mrb[4].mxu1 }
 0x2f2   :  { %577 = vst.msk [vmem:[%s1282_s5 + $0x10] sm:$0xff] %vm574_vm8, %v568_v55  ;;  %v543_v59 = vadd.f32 %v542_v58, %v414_v57  ;;  %v544_v60 = vpop.f32.mrb[5].mxu1 }
 0x2f4   :  { %v569_v61 = vmax.f32 %v543_v59, 0.0 }
 0x2f5   :  { %v547_v1 = vpop.f32.mrb[6].mxu1 }
 0x2f6   :  { %578 = vst.msk [vmem:[%s1282_s5 + $0x18] sm:$0xff] %vm574_vm8, %v569_v61  ;;  %v548_v2 = vadd.f32 %v547_v1, %v419_v62  ;;  %v549_v3 = vpop.f32.mrb[7].mxu1 }
 0x2f8   :  { %v570_v4 = vmax.f32 %v548_v2, 0.0 }
 0x2f9   :  { %v552_v5 = vpop.f32.mrb[8].mxu1 }
 0x2fa   :  { %579 = vst.msk [vmem:[%s1282_s5 + $0x20] sm:$0xff] %vm574_vm8, %v570_v4  ;;  %v553_v6 = vadd.f32 %v552_v5, %v424_v24  ;;  %v554_v7 = vpop.f32.mrb[9].mxu1 }
 0x2fc   :  { %v571_v10 = vmax.f32 %v553_v6, 0.0 }
 0x2fd   :  { %v557_v12 = vpop.f32.mrb[10].mxu1 }
 0x2fe   :  { %580 = vst.msk [vmem:[%s1282_s5 + $0x28] sm:$0xff] %vm574_vm8, %v571_v10  ;;  %v558_v13 = vadd.f32 %v557_v12, %v429_v11  ;;  %v559_v14 = vpop.f32.mrb[11].mxu1 }
 0x300   :  { %v572_v16 = vmax.f32 %v558_v13, 0.0 }
 0x301   :  { %v562_v19 = vpop.f32.mrb[12].mxu1 }
 0x302   :  { %581 = vst.msk [vmem:[%s1282_s5 + $0x30] sm:$0xff] %vm574_vm8, %v572_v16  ;;  %v563_v20 = vadd.f32 %v562_v19, %v434_v18  ;;  %v564_v63 = vpop.f32.mrb[13].mxu1 }
 0x304   :  { %v573_v21 = vmax.f32 %v563_v20, 0.0 }
 0x306   :  { %582 = vst.msk [vmem:[%s1282_s5 + $0x38] sm:$0xff] %vm574_vm8, %v573_v21 }

// kernel: _lambda_.8
= control target key start
LH: loop header
LB: loop body
LE: loop exit
PB: predicated region body
PF: predicated region fallthrough
CT: control target
= control target key end

     0   :  { %vm82_vm0 = vcmask 195584   ;;  %s526_s22 = smov 1   ;;  %v527_v2 = vmov 0   ;;  %s528_s26 = smov 127   ;;  %v29_v7 = vlaneseq  ;;  %vm47_vm1 = vcmask 7168   ;;  %s679_s0 = inlined_call_operand.vmem [shape: f32[8,32], index: 0, kind: input, shape index: {}]   ;;  %s680_s1 = inlined_call_operand.vmem [shape: f32[32,24], index: 1, kind: input, shape index: {}]   ;;  %s681_s2 = inlined_call_operand.vmem [shape: f32[32,1], index: 2, kind: input, shape index: {}]   ;;  %s682_s4 = inlined_call_operand.vmem [shape: f32[32,1], index: 4, kind: input, shape index: {}]   ;;  %s683_s3 = inlined_call_operand.vmem [shape: f32[32,96], index: 3, kind: input, shape index: {}]   ;;  %s684_s5 = inlined_call_operand.vmem [shape: f32[32,32], index: 5, kind: output, shape index: {}]  }
   0x1   :  { %v20_v0 = vld [vmem:[%s679_s0] sm:$0xff]  ;;  %504 = vset.pattern.permute.xlu1 %v527_v2  ;;  %505 = vset.pattern.permute.xlu0 %v527_v2  ;;  %v26_v4 = vld [vmem:[%s681_s2 + $0x8] sm:$0xff]  ;;  %v27_v5 = vld [vmem:[%s681_s2 + $0x10] sm:$0xff]  ;;  %vm529_vm3 = vmmov 1   ;;  %vm52_vm5 = vcmask 252928   ;;  %vm256_vm7 = vcmask 785408  }
   0x2   :  { %v21_v1 = vld [vmem:[%s680_s1] sm:$0xff]  ;;  %44 = vrot.lane.b32.xlu0 %v20_v0, %s526_s22  ;;  %v28_v6 = vld [vmem:[%s681_s2 + $0x18] sm:$0xff]  ;;  %v30_v8 = vand.u32 127, %v29_v7  ;;  %v22_v17 = vld [vmem:[%s680_s1 + $0x8] sm:$0xff]  ;;  %vm358_vm10 = vcmask 261120  }
   0x3   :  { %426 = vmatprep.mubr.msk.f32.mxu0 %vm82_vm0, %v21_v1  ;;  %v25_v3 = vld [vmem:[%s681_s2] sm:$0xff]  ;;  %v23_v18 = vld [vmem:[%s680_s1 + $0x10] sm:$0xff]  ;;  %v24_v19 = vld [vmem:[%s680_s1 + $0x18] sm:$0xff] }
   0x4   :  { %64 = vperm.xlu1 %504, %v25_v3   ;;  %v35_v9 = vand.u32 15, %v30_v8  ;;  %v188_v38 = vld [vmem:[%s682_s4] sm:$0xff]  ;;  %v190_v39 = vld [vmem:[%s682_s4 + $0x10] sm:$0xff]  ;;  %v189_v40 = vld [vmem:[%s682_s4 + $0x8] sm:$0xff] }
   0x5   :  { %v191_v41 = vld [vmem:[%s682_s4 + $0x18] sm:$0xff]  ;;  %v184_v42 = vld [vmem:[%s683_s3] sm:$0xff]  ;;  %v186_v7 = vld [vmem:[%s683_s3 + $0x10] sm:$0xff] }
   0x6   :  { %49 = vrot.lane.b32.xlu0 %v20_v0, %s528_s26  ;;  %vm581_vm2 = vcmp.ne.s32.totalorder %v35_v9, 0  ;;  %vm588_vm6 = vcmp.ne.s32.totalorder %v35_v9, 15  ;;  %456 = vmatprep.mubr.msk.f32.mxu1 %vm256_vm7, %v184_v42  ;;  %v187_v8 = vld [vmem:[%s683_s3 + $0x18] sm:$0xff] }
   0x7   :  { %vm463_vm4 = vmpackc.low %vm529_vm3, %vm581_vm2 }
   0x8   :  { %69 = vperm.xlu1 %504, %v26_v4   ;;  %vm632_vm8 = vmpackc.low %vm581_vm2, %vm581_vm2 }
   0x9   :  { %vm489_vm9 = vmpackc.low %vm588_vm6, %vm588_vm6 }
   0xa   :  { %74 = vperm.xlu0 %505, %v27_v5  }
   0xc   :  { %79 = vperm.xlu1 %504, %v28_v6   ;;  %v185_v6 = vld [vmem:[%s683_s3 + $0x8] sm:$0xff] }
  0x74   :  { %v45_v11 = vpop.permute.xlu0 %44 }
  0x75   :  { %v48_v12 = vsel %vm47_vm1, %v20_v0, %v45_v11 }
  0x76   :  { %v462_v13 = vpack.c.bf16 %v20_v0, %v48_v12 }
  0x78   :  { %464 = vmatprep.subr.msk.bf16.mxu0 %vm463_vm4, %v462_v13  ;;  %v50_v15 = vpop.permute.xlu0 %49 }
  0x79   :  { %467 = vmatpush3.bf16.msk.msra.mxu0 %vm463_vm4, %v462_v13  ;;  %v53_v16 = vsel %vm52_vm5, %v50_v15, %v20_v0 }
  0x7a   :  { %424 = vmatprep.subr.msk.mxu0 %vm588_vm6, %v53_v16 }
  0x7d   :  { %425 = vmatpush3.msk.msra.mxu0 %vm588_vm6, %v53_v16 }
  0x7e   :  { %427 = vmatmul.mubr.msk.f32.vlgmr.msra.gmra.mrb[0].mxu0 %vm82_vm0, %v22_v17 }
  0x7f   :  { %429 = vmatprep.mubr.msk.f32.mxu0 %vm82_vm0, %v23_v18 }
  0x82   :  { %430 = vmatmul.mubr.msk.f32.gmra.mrb[2].mxu0 %vm82_vm0, %v24_v19 }
  0x83   :  { %v65_v20 = vpop.permute.xlu1 %64 }
  0x87   :  { %v70_v21 = vpop.permute.xlu1 %69 }
  0x89   :  { %v75_v27 = vpop.permute.xlu0 %74 }
  0x8b   :  { %v80_v28 = vpop.permute.xlu1 %79 }
 0x151   :  { %v428_v22 = vpop.f32.mrb[0].mxu0 }
 0x152   :  { %v167_v23 = vadd.f32 %v428_v22, %v70_v21  ;;  %v161_v24 = vpop.f32.mrb[1].mxu0 }
 0x153   :  { %v162_v25 = vadd.f32 %v161_v24, %v65_v20 }
 0x154   :  { %v181_v26 = vmax.f32 %v167_v23, 0.0 }
 0x155   :  { %v180_v29 = vmax.f32 %v162_v25, 0.0  ;;  %v431_v30 = vpop.f32.mrb[2].mxu0 }
 0x156   :  { %v177_v31 = vadd.f32 %v431_v30, %v80_v28  ;;  %v171_v32 = vpop.f32.mrb[3].mxu0 }
 0x157   :  { %v172_v33 = vadd.f32 %v171_v32, %v75_v27  ;;  %v506_v34 = vpack.i.bf16 %v181_v26, %v180_v29  ;;  %v480_v57 = vpack.c.bf16 %v181_v26, %v180_v29 }
 0x158   :  { %v183_v35 = vmax.f32 %v177_v31, 0.0 }
 0x159   :  { %v182_v36 = vmax.f32 %v172_v33, 0.0  ;;  %507 = vrot.lane.b32.xlu1 %v506_v34, %s526_s22 }
 0x15b   :  { %v511_v37 = vpack.i.bf16 %v183_v35, %v182_v36  ;;  %v484_v61 = vpack.c.bf16 %v183_v35, %v182_v36 }
 0x15d   :  { %517 = vrot.lane.b32.xlu1 %v506_v34, %s528_s26  ;;  %512 = vrot.lane.b32.xlu0 %v511_v37, %s526_s22 }
 0x161   :  { %238 = vperm.xlu1 %504, %v188_v38   ;;  %522 = vrot.lane.b32.xlu0 %v511_v37, %s528_s26 }
 0x165   :  { %248 = vperm.xlu1 %504, %v190_v39   ;;  %243 = vperm.xlu0 %505, %v189_v40  }
 0x169   :  { %253 = vperm.xlu0 %505, %v191_v41  }
 0x1cb   :  { %v508_v43 = vpop.permute.xlu1 %507 }
 0x1cc   :  { %v510_v44 = vunpack.i.h.bf16 %v508_v43  ;;  %v509_v45 = vunpack.i.l.bf16 %v508_v43 }
 0x1ce   :  { %v208_v47 = vsel %vm47_vm1, %v180_v29, %v509_v45  ;;  %v209_v48 = vsel %vm47_vm1, %v181_v26, %v510_v44 }
 0x1cf   :  { %v513_v49 = vpop.permute.xlu0 %512  ;;  %v468_v50 = vpack.c.bf16 %v209_v48, %v208_v47  ;;  %v518_v55 = vpop.permute.xlu1 %517 }
 0x1d0   :  { %v515_v51 = vunpack.i.h.bf16 %v513_v49  ;;  %v514_v52 = vunpack.i.l.bf16 %v513_v49  ;;  %v520_v58 = vunpack.i.h.bf16 %v518_v55  ;;  %v519_v59 = vunpack.i.l.bf16 %v518_v55 }
 0x1d1   :  { %470 = vmatprep.subr.msk.bf16.mxu1 %vm632_vm8, %v468_v50 }
 0x1d2   :  { %v211_v53 = vsel %vm47_vm1, %v183_v35, %v515_v51  ;;  %v210_v54 = vsel %vm47_vm1, %v182_v36, %v514_v52  ;;  %473 = vmatpush3.bf16.msk.msra.mxu1 %vm632_vm8, %v468_v50  ;;  %v225_v62 = vsel %vm52_vm5, %v520_v58, %v181_v26  ;;  %v224_v63 = vsel %vm52_vm5, %v519_v59, %v180_v29 }
 0x1d3   :  { %v474_v56 = vpack.c.bf16 %v211_v53, %v210_v54  ;;  %v523_v60 = vpop.permute.xlu0 %522  ;;  %v488_v2 = vpack.c.bf16 %v225_v62, %v224_v63 }
 0x1d4   :  { %v525_v0 = vunpack.i.h.bf16 %v523_v60  ;;  %v524_v1 = vunpack.i.l.bf16 %v523_v60 }
 0x1d5   :  { %476 = vmatprep.subr.msk.bf16.mxu1 %vm632_vm8, %v474_v56 }
 0x1d6   :  { %479 = vmatpush3.bf16.msk.msra.mxu1 %vm632_vm8, %v474_v56  ;;  %v227_v3 = vsel %vm52_vm5, %v525_v0, %v183_v35  ;;  %v226_v4 = vsel %vm52_vm5, %v524_v1, %v182_v36 }
 0x1d7   :  { %481 = vmatprep.subr.bf16.mxu1 %v480_v57  ;;  %v494_v5 = vpack.c.bf16 %v227_v3, %v226_v4 }
 0x1da   :  { %483 = vmatpush3.bf16.msra.mxu1 %v480_v57 }
 0x1db   :  { %485 = vmatprep.subr.bf16.mxu1 %v484_v61 }
 0x1de   :  { %487 = vmatpush3.bf16.msra.mxu1 %v484_v61 }
 0x1df   :  { %490 = vmatprep.subr.msk.bf16.mxu1 %vm489_vm9, %v488_v2 }
 0x1e0   :  { %v239_v10 = vpop.permute.xlu1 %238 }
 0x1e2   :  { %493 = vmatpush3.bf16.msk.msra.mxu1 %vm489_vm9, %v488_v2 }
 0x1e3   :  { %496 = vmatprep.subr.msk.bf16.mxu1 %vm489_vm9, %v494_v5 }
 0x1e4   :  { %v244_v9 = vpop.permute.xlu0 %243  ;;  %v249_v19 = vpop.permute.xlu1 %248 }
 0x1e6   :  { %499 = vmatpush3.bf16.msk.msra.mxu1 %vm489_vm9, %v494_v5 }
 0x1e8   :  { %v254_v16 = vpop.permute.xlu0 %253 }
 0x1e9   :  { %457 = vmatmul.mubr.msk.f32.vlgmr.msra.gmra.mrb[0].mxu1 %vm256_vm7, %v185_v6 }
 0x1ea   :  { %459 = vmatprep.mubr.msk.f32.mxu1 %vm256_vm7, %v186_v7 }
 0x1ed   :  { %460 = vmatmul.mubr.msk.f32.gmra.mrb[2].mxu1 %vm256_vm7, %v187_v8 }
 0x2bc   :  { %v458_v11 = vpop.f32.mrb[0].mxu1 }
 0x2bd   :  { %v341_v12 = vadd.f32 %v458_v11, %v244_v9  ;;  %v335_v13 = vpop.f32.mrb[1].mxu1 }
 0x2be   :  { %v336_v14 = vadd.f32 %v335_v13, %v239_v10 }
 0x2bf   :  { %v355_v15 = vmax.f32 %v341_v12, 0.0 }
 0x2c0   :  { %v354_v17 = vmax.f32 %v336_v14, 0.0  ;;  %v461_v18 = vpop.f32.mrb[2].mxu1 }
 0x2c1   :  { %360 = vst.msk [vmem:[%s684_s5 + $0x8] sm:$0xff] %vm358_vm10, %v355_v15  ;;  %v351_v20 = vadd.f32 %v461_v18, %v254_v16  ;;  %v345_v21 = vpop.f32.mrb[3].mxu1 }
 0x2c2   :  { %359 = vst.msk [vmem:[%s684_s5] sm:$0xff] %vm358_vm10, %v354_v17  ;;  %v346_v22 = vadd.f32 %v345_v21, %v249_v19 }
 0x2c3   :  { %v357_v23 = vmax.f32 %v351_v20, 0.0 }
 0x2c4   :  { %v356_v24 = vmax.f32 %v346_v22, 0.0 }
 0x2c5   :  { %362 = vst.msk [vmem:[%s684_s5 + $0x18] sm:$0xff] %vm358_vm10, %v357_v23 }
 0x2c6   :  { %361 = vst.msk [vmem:[%s684_s5 + $0x10] sm:$0xff] %vm358_vm10, %v356_v24 }

// kernel: _lambda_.11
= control target key start
LH: loop header
LB: loop body
LE: loop exit
PB: predicated region body
PF: predicated region fallthrough
CT: control target
= control target key end

     0   :  { %v447_v3 = vmov 0   ;;  %vm287_vm0 = vcmask 64512   ;;  %s676_s0 = inlined_call_operand.vmem [shape: f32[128,8], index: 0, kind: input, shape index: {}]   ;;  %s677_s1 = inlined_call_operand.vmem [shape: f32[128,128], index: 1, kind: input, shape index: {}]   ;;  %s678_s2 = inlined_call_operand.vmem [shape: f32[128,1], index: 2, kind: input, shape index: {}]   ;;  %s679_s3 = inlined_call_operand.vmem [shape: f32[128,8], index: 3, kind: output, shape index: {}]  }
   0x1   :  { %v30_v0 = vld [vmem:[%s676_s0] sm:$0xff]  ;;  %v31_v1 = vld [vmem:[%s676_s0 + $0x8] sm:$0xff]  ;;  %v32_v2 = vld [vmem:[%s676_s0 + $0x10] sm:$0xff]  ;;  %446 = vset.pattern.permute.xlu1 %v447_v3  ;;  %445 = vset.pattern.permute.xlu0 %v447_v3 }
   0x2   :  { %v396_v4 = vpack.c.bf16 %v31_v1, %v30_v0  ;;  %v33_v5 = vld [vmem:[%s676_s0 + $0x18] sm:$0xff]  ;;  %v34_v7 = vld [vmem:[%s676_s0 + $0x20] sm:$0xff]  ;;  %v35_v8 = vld [vmem:[%s676_s0 + $0x28] sm:$0xff] }
   0x3   :  { %v400_v6 = vpack.c.bf16 %v33_v5, %v32_v2  ;;  %v404_v9 = vpack.c.bf16 %v35_v8, %v34_v7  ;;  %v14_v10 = vld [vmem:[%s677_s1] sm:$0xff]  ;;  %v36_v12 = vld [vmem:[%s676_s0 + $0x30] sm:$0xff]  ;;  %v37_v13 = vld [vmem:[%s676_s0 + $0x38] sm:$0xff] }
   0x4   :  { %397 = vmatprep.subr.bf16.mxu0 %v396_v4  ;;  %428 = vmatprep.subr.bf16.mxu1 %v396_v4  ;;  %v22_v11 = vld [vmem:[%s677_s1 + $0x40] sm:$0xff]  ;;  %v408_v14 = vpack.c.bf16 %v37_v13, %v36_v12  ;;  %v39_v16 = vld [vmem:[%s676_s0 + $0x48] sm:$0xff]  ;;  %v48_v17 = vld [vmem:[%s678_s2 + $0x10] sm:$0xff] }
   0x5   :  { %399 = vmatpush3.bf16.msra.mxu0 %v396_v4  ;;  %436 = vmatpush3.bf16.msra.mxu1 %v396_v4  ;;  %v38_v15 = vld [vmem:[%s676_s0 + $0x40] sm:$0xff]  ;;  %v49_v19 = vld [vmem:[%s678_s2 + $0x18] sm:$0xff]  ;;  %v40_v21 = vld [vmem:[%s676_s0 + $0x50] sm:$0xff] }
   0x6   :  { %401 = vmatprep.subr.bf16.mxu0 %v400_v6  ;;  %429 = vmatprep.subr.bf16.mxu1 %v400_v6  ;;  %v46_v18 = vld [vmem:[%s678_s2] sm:$0xff]  ;;  %v412_v20 = vpack.c.bf16 %v39_v16, %v38_v15  ;;  %v41_v22 = vld [vmem:[%s676_s0 + $0x58] sm:$0xff]  ;;  %v47_v23 = vld [vmem:[%s678_s2 + $0x8] sm:$0xff] }
   0x7   :  { %372 = vmatprep.mubr.f32.mxu0 %v14_v10  ;;  %384 = vmatprep.mubr.f32.mxu1 %v22_v11  ;;  %v51_v24 = vld [vmem:[%s678_s2 + $0x28] sm:$0xff]  ;;  %v416_v25 = vpack.c.bf16 %v41_v22, %v40_v21  ;;  %v42_v26 = vld [vmem:[%s676_s0 + $0x60] sm:$0xff]  ;;  %v53_v29 = vld [vmem:[%s678_s2 + $0x38] sm:$0xff] }
   0x8   :  { %74 = vperm.xlu1 %446, %v48_v17   ;;  %64 = vperm.xlu0 %445, %v46_v18   ;;  %v43_v27 = vld [vmem:[%s676_s0 + $0x68] sm:$0xff]  ;;  %v50_v28 = vld [vmem:[%s678_s2 + $0x20] sm:$0xff]  ;;  %v44_v31 = vld [vmem:[%s676_s0 + $0x70] sm:$0xff] }
   0x9   :  { %403 = vmatpush3.bf16.msra.mxu0 %v400_v6  ;;  %437 = vmatpush3.bf16.msra.mxu1 %v400_v6  ;;  %v420_v30 = vpack.c.bf16 %v43_v27, %v42_v26  ;;  %v45_v32 = vld [vmem:[%s676_s0 + $0x78] sm:$0xff]  ;;  %v52_v33 = vld [vmem:[%s678_s2 + $0x30] sm:$0xff]  ;;  %v55_v34 = vld [vmem:[%s678_s2 + $0x48] sm:$0xff] }
   0xa   :  { %405 = vmatprep.subr.bf16.mxu0 %v404_v9  ;;  %430 = vmatprep.subr.bf16.mxu1 %v404_v9  ;;  %v424_v35 = vpack.c.bf16 %v45_v32, %v44_v31  ;;  %v54_v36 = vld [vmem:[%s678_s2 + $0x40] sm:$0xff]  ;;  %v57_v37 = vld [vmem:[%s678_s2 + $0x58] sm:$0xff]  ;;  %v56_v38 = vld [vmem:[%s678_s2 + $0x50] sm:$0xff] }
   0xb   :  { %v15_v39 = vld [vmem:[%s677_s1 + $0x8] sm:$0xff]  ;;  %v16_v41 = vld [vmem:[%s677_s1 + $0x10] sm:$0xff]  ;;  %v58_v44 = vld [vmem:[%s678_s2 + $0x60] sm:$0xff] }
   0xc   :  { %79 = vperm.xlu1 %446, %v49_v19   ;;  %69 = vperm.xlu0 %445, %v47_v23   ;;  %v23_v40 = vld [vmem:[%s677_s1 + $0x48] sm:$0xff]  ;;  %v24_v42 = vld [vmem:[%s677_s1 + $0x50] sm:$0xff]  ;;  %v17_v45 = vld [vmem:[%s677_s1 + $0x18] sm:$0xff] }
   0xd   :  { %407 = vmatpush3.bf16.msra.mxu0 %v404_v9  ;;  %438 = vmatpush3.bf16.msra.mxu1 %v404_v9  ;;  %v59_v43 = vld [vmem:[%s678_s2 + $0x68] sm:$0xff]  ;;  %v25_v46 = vld [vmem:[%s677_s1 + $0x58] sm:$0xff]  ;;  %v18_v47 = vld [vmem:[%s677_s1 + $0x20] sm:$0xff] }
   0xe   :  { %409 = vmatprep.subr.bf16.mxu0 %v408_v14  ;;  %431 = vmatprep.subr.bf16.mxu1 %v408_v14  ;;  %v26_v48 = vld [vmem:[%s677_s1 + $0x60] sm:$0xff]  ;;  %v61_v49 = vld [vmem:[%s678_s2 + $0x78] sm:$0xff]  ;;  %v60_v50 = vld [vmem:[%s678_s2 + $0x70] sm:$0xff] }
   0xf   :  { %v19_v51 = vld [vmem:[%s677_s1 + $0x28] sm:$0xff]  ;;  %v20_v53 = vld [vmem:[%s677_s1 + $0x30] sm:$0xff]  ;;  %v21_v55 = vld [vmem:[%s677_s1 + $0x38] sm:$0xff] }
  0x10   :  { %89 = vperm.xlu1 %446, %v51_v24   ;;  %84 = vperm.xlu0 %445, %v50_v28   ;;  %v27_v52 = vld [vmem:[%s677_s1 + $0x68] sm:$0xff]  ;;  %v28_v54 = vld [vmem:[%s677_s1 + $0x70] sm:$0xff]  ;;  %v29_v56 = vld [vmem:[%s677_s1 + $0x78] sm:$0xff] }
  0x11   :  { %411 = vmatpush3.bf16.msra.mxu0 %v408_v14  ;;  %439 = vmatpush3.bf16.msra.mxu1 %v408_v14 }
  0x12   :  { %413 = vmatprep.subr.bf16.mxu0 %v412_v20  ;;  %432 = vmatprep.subr.bf16.mxu1 %v412_v20 }
  0x14   :  { %99 = vperm.xlu1 %446, %v53_v29   ;;  %94 = vperm.xlu0 %445, %v52_v33  }
  0x15   :  { %415 = vmatpush3.bf16.msra.mxu0 %v412_v20  ;;  %440 = vmatpush3.bf16.msra.mxu1 %v412_v20 }
  0x16   :  { %417 = vmatprep.subr.bf16.mxu0 %v416_v25  ;;  %433 = vmatprep.subr.bf16.mxu1 %v416_v25 }
  0x18   :  { %109 = vperm.xlu1 %446, %v55_v34   ;;  %104 = vperm.xlu0 %445, %v54_v36  }
  0x19   :  { %419 = vmatpush3.bf16.msra.mxu0 %v416_v25  ;;  %441 = vmatpush3.bf16.msra.mxu1 %v416_v25 }
  0x1a   :  { %421 = vmatprep.subr.bf16.mxu0 %v420_v30  ;;  %434 = vmatprep.subr.bf16.mxu1 %v420_v30 }
  0x1c   :  { %119 = vperm.xlu1 %446, %v57_v37   ;;  %114 = vperm.xlu0 %445, %v56_v38  }
  0x1d   :  { %423 = vmatpush3.bf16.msra.mxu0 %v420_v30  ;;  %442 = vmatpush3.bf16.msra.mxu1 %v420_v30 }
  0x1e   :  { %425 = vmatprep.subr.bf16.mxu0 %v424_v35  ;;  %435 = vmatprep.subr.bf16.mxu1 %v424_v35 }
  0x20   :  { %129 = vperm.xlu1 %446, %v59_v43   ;;  %124 = vperm.xlu0 %445, %v58_v44  }
  0x21   :  { %427 = vmatpush3.bf16.msra.mxu0 %v424_v35  ;;  %443 = vmatpush3.bf16.msra.mxu1 %v424_v35 }
  0x24   :  { %373 = vmatmul.mubr.f32.vlgmr.msra.gmra.mrb[0].mxu0 %v15_v39  ;;  %385 = vmatmul.mubr.f32.vlgmr.msra.gmra.mrb[0].mxu1 %v23_v40 }
  0x25   :  { %375 = vmatprep.mubr.f32.mxu0 %v16_v41  ;;  %387 = vmatprep.mubr.f32.mxu1 %v24_v42 }
  0x26   :  { %139 = vperm.xlu1 %446, %v61_v49   ;;  %134 = vperm.xlu0 %445, %v60_v50  }
  0x28   :  { %376 = vmatmul.mubr.f32.gmra.mrb[2].mxu0 %v17_v45  ;;  %388 = vmatmul.mubr.f32.gmra.mrb[2].mxu1 %v25_v46 }
  0x29   :  { %378 = vmatprep.mubr.f32.mxu0 %v18_v47  ;;  %390 = vmatprep.mubr.f32.mxu1 %v26_v48 }
  0x2c   :  { %379 = vmatmul.mubr.f32.gmra.mrb[4].mxu0 %v19_v51  ;;  %391 = vmatmul.mubr.f32.gmra.mrb[4].mxu1 %v27_v52 }
  0x2d   :  { %381 = vmatprep.mubr.f32.mxu0 %v20_v53  ;;  %393 = vmatprep.mubr.f32.mxu1 %v28_v54 }
  0x30   :  { %382 = vmatmul.mubr.f32.gmra.mrb[6].mxu0 %v21_v55  ;;  %394 = vmatmul.mubr.f32.gmra.mrb[6].mxu1 %v29_v56 }
  0x87   :  { %v75_v57 = vpop.permute.xlu1 %74  ;;  %v65_v58 = vpop.permute.xlu0 %64 }
  0x8b   :  { %v80_v59 = vpop.permute.xlu1 %79  ;;  %v70_v60 = vpop.permute.xlu0 %69 }
  0x8f   :  { %v90_v61 = vpop.permute.xlu1 %89  ;;  %v85_v62 = vpop.permute.xlu0 %84 }
  0x93   :  { %v100_v63 = vpop.permute.xlu1 %99  ;;  %v95_v0 = vpop.permute.xlu0 %94 }
  0x97   :  { %v110_v1 = vpop.permute.xlu1 %109  ;;  %v105_v2 = vpop.permute.xlu0 %104 }
  0x9b   :  { %v120_v3 = vpop.permute.xlu1 %119  ;;  %v115_v4 = vpop.permute.xlu0 %114 }
  0x9f   :  { %v130_v13 = vpop.permute.xlu1 %129  ;;  %v125_v14 = vpop.permute.xlu0 %124 }
  0xa5   :  { %v140_v31 = vpop.permute.xlu1 %139  ;;  %v135_v32 = vpop.permute.xlu0 %134 }
  0xf7   :  { %v374_v5 = vpop.f32.mrb[0].mxu0  ;;  %v386_v6 = vpop.f32.mrb[0].mxu1 }
  0xf8   :  { %v214_v7 = vadd.f32 %v374_v5, %v70_v60  ;;  %v254_v8 = vadd.f32 %v386_v6, %v110_v1  ;;  %v208_v9 = vpop.f32.mrb[1].mxu0  ;;  %v248_v10 = vpop.f32.mrb[1].mxu1 }
  0xf9   :  { %v209_v11 = vadd.f32 %v208_v9, %v65_v58  ;;  %v249_v12 = vadd.f32 %v248_v10, %v105_v2 }
  0xfa   :  { %289 = vst.msk [vmem:[%s679_s3 + $0x8] sm:$0xff] %vm287_vm0, %v214_v7  ;;  %297 = vst.msk [vmem:[%s679_s3 + $0x48] sm:$0xff] %vm287_vm0, %v254_v8 }
  0xfb   :  { %288 = vst.msk [vmem:[%s679_s3] sm:$0xff] %vm287_vm0, %v209_v11  ;;  %296 = vst.msk [vmem:[%s679_s3 + $0x40] sm:$0xff] %vm287_vm0, %v249_v12  ;;  %v377_v15 = vpop.f32.mrb[2].mxu0  ;;  %v389_v16 = vpop.f32.mrb[2].mxu1 }
  0xfc   :  { %v224_v17 = vadd.f32 %v377_v15, %v80_v59  ;;  %v264_v18 = vadd.f32 %v389_v16, %v120_v3  ;;  %v218_v19 = vpop.f32.mrb[3].mxu0  ;;  %v258_v20 = vpop.f32.mrb[3].mxu1 }
  0xfd   :  { %v219_v21 = vadd.f32 %v218_v19, %v75_v57  ;;  %v259_v22 = vadd.f32 %v258_v20, %v115_v4 }
  0xfe   :  { %291 = vst.msk [vmem:[%s679_s3 + $0x18] sm:$0xff] %vm287_vm0, %v224_v17  ;;  %299 = vst.msk [vmem:[%s679_s3 + $0x58] sm:$0xff] %vm287_vm0, %v264_v18 }
  0xff   :  { %290 = vst.msk [vmem:[%s679_s3 + $0x10] sm:$0xff] %vm287_vm0, %v219_v21  ;;  %298 = vst.msk [vmem:[%s679_s3 + $0x50] sm:$0xff] %vm287_vm0, %v259_v22  ;;  %v380_v23 = vpop.f32.mrb[4].mxu0  ;;  %v392_v24 = vpop.f32.mrb[4].mxu1 }
 0x100   :  { %v234_v25 = vadd.f32 %v380_v23, %v90_v61  ;;  %v274_v26 = vadd.f32 %v392_v24, %v130_v13  ;;  %v228_v27 = vpop.f32.mrb[5].mxu0  ;;  %v268_v28 = vpop.f32.mrb[5].mxu1 }
 0x101   :  { %v229_v29 = vadd.f32 %v228_v27, %v85_v62  ;;  %v269_v30 = vadd.f32 %v268_v28, %v125_v14 }
 0x102   :  { %293 = vst.msk [vmem:[%s679_s3 + $0x28] sm:$0xff] %vm287_vm0, %v234_v25  ;;  %301 = vst.msk [vmem:[%s679_s3 + $0x68] sm:$0xff] %vm287_vm0, %v274_v26 }
 0x103   :  { %292 = vst.msk [vmem:[%s679_s3 + $0x20] sm:$0xff] %vm287_vm0, %v229_v29  ;;  %300 = vst.msk [vmem:[%s679_s3 + $0x60] sm:$0xff] %vm287_vm0, %v269_v30  ;;  %v383_v33 = vpop.f32.mrb[6].mxu0  ;;  %v395_v34 = vpop.f32.mrb[6].mxu1 }
 0x104   :  { %v244_v35 = vadd.f32 %v383_v33, %v100_v63  ;;  %v284_v36 = vadd.f32 %v395_v34, %v140_v31  ;;  %v238_v37 = vpop.f32.mrb[7].mxu0  ;;  %v278_v38 = vpop.f32.mrb[7].mxu1 }
 0x105   :  { %v239_v39 = vadd.f32 %v238_v37, %v95_v0  ;;  %v279_v40 = vadd.f32 %v278_v38, %v135_v32 }
 0x106   :  { %295 = vst.msk [vmem:[%s679_s3 + $0x38] sm:$0xff] %vm287_vm0, %v244_v35  ;;  %303 = vst.msk [vmem:[%s679_s3 + $0x78] sm:$0xff] %vm287_vm0, %v284_v36 }
 0x107   :  { %294 = vst.msk [vmem:[%s679_s3 + $0x30] sm:$0xff] %vm287_vm0, %v239_v39  ;;  %302 = vst.msk [vmem:[%s679_s3 + $0x70] sm:$0xff] %vm287_vm0, %v279_v40 }

// kernel: _lambda_.10
= control target key start
LH: loop header
LB: loop body
LE: loop exit
PB: predicated region body
PF: predicated region fallthrough
CT: control target
= control target key end

     0   :  { %v1679_v3 = vmov 0.0|0.0   ;;  %s1680_s9 = smov 1   ;;  %s1681_s10 = smov 127   ;;  %vm266_vm0 = vcmask 523264   ;;  %v1682_v14 = vmov 0   ;;  %v76_v17 = vlaneseq  ;;  %s2524_s0 = inlined_call_operand.vmem [shape: f32[64,8], index: 0, kind: input, shape index: {}]   ;;  %s2525_s1 = inlined_call_operand.vmem [shape: f32[128,192], index: 1, kind: input, shape index: {}]   ;;  %s2526_s2 = inlined_call_operand.vmem [shape: f32[128,1], index: 2, kind: input, shape index: {}]   ;;  %s2527_s3 = inlined_call_operand.vmem [shape: f32[128,384], index: 3, kind: input, shape index: {}]   ;;  %s2528_s4 = inlined_call_operand.vmem [shape: f32[128,1], index: 4, kind: input, shape index: {}]   ;;  %s2529_s5 = inlined_call_operand.vmem [shape: f32[128,8], index: 5, kind: output, shape index: {}]  }
   0x1   :  { %v1716_v0 = vld [vmem:[%s2524_s0] sm:$0xff]  ;;  %v1721_v1 = vld [vmem:[%s2524_s0 + $0x8] sm:$0xff]  ;;  %v1726_v2 = vld [vmem:[%s2524_s0 + $0x10] sm:$0xff]  ;;  %1405 = vmatprep.subr.bf16.mxu0 %v1679_v3  ;;  %1597 = vset.pattern.permute.xlu0 %v1682_v14  ;;  %vm122_vm1 = vcmask 7168   ;;  %vm155_vm4 = vcmask 56320   ;;  %vm1102_vm7 = vcmask 64512  }
   0x2   :  { %v1557_v4 = vpack.i.bf16 %v1721_v1, %v1716_v0  ;;  %v1734_v5 = vld [vmem:[%s2524_s0 + $0x18] sm:$0xff]  ;;  %v1739_v6 = vld [vmem:[%s2524_s0 + $0x20] sm:$0xff]  ;;  %v1744_v7 = vld [vmem:[%s2524_s0 + $0x28] sm:$0xff]  ;;  %1598 = vset.pattern.permute.xlu1 %v1682_v14  ;;  %v1786_v20 = vand.u32 127, %v76_v17  ;;  %v1422_v59 = vpack.c.bf16 %v1721_v1, %v1716_v0 }
   0x3   :  { %v1567_v8 = vpack.i.bf16 %v1744_v7, %v1739_v6  ;;  %v1751_v9 = vld [vmem:[%s2524_s0 + $0x30] sm:$0xff]  ;;  %v1756_v10 = vld [vmem:[%s2524_s0 + $0x38] sm:$0xff]  ;;  %v1562_v11 = vpack.i.bf16 %v1734_v5, %v1726_v2  ;;  %v29_v13 = vld [vmem:[%s2525_s1 + $0x8] sm:$0xff]  ;;  %v1425_v60 = vpack.c.bf16 %v1734_v5, %v1726_v2  ;;  %v1428_v62 = vpack.c.bf16 %v1744_v7, %v1739_v6 }
   0x4   :  { %1558 = vrot.lane.b32.xlu0 %v1557_v4, %s1680_s9  ;;  %v1572_v12 = vpack.i.bf16 %v1756_v10, %v1751_v9  ;;  %1155 = vmatprep.mubr.msk.f32.mxu0 %vm266_vm0, %v29_v13  ;;  %v60_v15 = vld [vmem:[%s2526_s2] sm:$0xff]  ;;  %v61_v16 = vld [vmem:[%s2526_s2 + $0x8] sm:$0xff]  ;;  %v62_v18 = vld [vmem:[%s2526_s2 + $0x10] sm:$0xff]  ;;  %v82_v23 = vand.u32 3, %v1786_v20 }
   0x5   :  { %1568 = vrot.lane.b32.xlu1 %v1567_v8, %s1680_s9  ;;  %v63_v19 = vld [vmem:[%s2526_s2 + $0x18] sm:$0xff]  ;;  %v64_v21 = vld [vmem:[%s2526_s2 + $0x20] sm:$0xff]  ;;  %v65_v22 = vld [vmem:[%s2526_s2 + $0x28] sm:$0xff] }
   0x6   :  { %v66_v24 = vld [vmem:[%s2526_s2 + $0x30] sm:$0xff]  ;;  %v67_v25 = vld [vmem:[%s2526_s2 + $0x38] sm:$0xff]  ;;  %vm1235_vm2 = vcmp.ne.s32.totalorder %v82_v23, 0  ;;  %v68_v27 = vld [vmem:[%s2526_s2 + $0x40] sm:$0xff]  ;;  %vm1236_vm5 = vcmp.ne.s32.totalorder %v82_v23, 3 }
   0x7   :  { %v69_v28 = vld [vmem:[%s2526_s2 + $0x48] sm:$0xff]  ;;  %vm1813_vm3 = vmpackc.low %vm1235_vm2, %vm1235_vm2  ;;  %v70_v39 = vld [vmem:[%s2526_s2 + $0x50] sm:$0xff] }
   0x8   :  { %1563 = vrot.lane.b32.xlu0 %v1562_v11, %s1680_s9  ;;  %v71_v43 = vld [vmem:[%s2526_s2 + $0x58] sm:$0xff]  ;;  %v72_v51 = vld [vmem:[%s2526_s2 + $0x60] sm:$0xff]  ;;  %v73_v52 = vld [vmem:[%s2526_s2 + $0x68] sm:$0xff] }
   0x9   :  { %1573 = vrot.lane.b32.xlu1 %v1572_v12, %s1680_s9  ;;  %v74_v56 = vld [vmem:[%s2526_s2 + $0x70] sm:$0xff]  ;;  %v75_v57 = vld [vmem:[%s2526_s2 + $0x78] sm:$0xff]  ;;  %vm1881_vm6 = vmpackc.low %vm1236_vm5, %vm1236_vm5 }
   0xa   :  { %v480_v36 = vld [vmem:[%s2527_s3 + $0x20] sm:$0xff] }
   0xc   :  { %1578 = vrot.lane.b32.xlu0 %v1557_v4, %s1681_s10 }
   0xd   :  { %1583 = vrot.lane.b32.xlu1 %v1562_v11, %s1681_s10  ;;  %v1431_v11 = vpack.c.bf16 %v1756_v10, %v1751_v9 }
  0x10   :  { %1588 = vrot.lane.b32.xlu0 %v1567_v8, %s1681_s10 }
  0x11   :  { %1593 = vrot.lane.b32.xlu1 %v1572_v12, %s1681_s10 }
  0x14   :  { %188 = vperm.xlu0 %1597, %v60_v15  }
  0x15   :  { %193 = vperm.xlu1 %1598, %v61_v16  }
  0x18   :  { %203 = vperm.xlu0 %1597, %v63_v19  }
  0x19   :  { %198 = vperm.xlu1 %1598, %v62_v18  }
  0x1c   :  { %213 = vperm.xlu0 %1597, %v65_v22  }
  0x1d   :  { %208 = vperm.xlu1 %1598, %v64_v21  }
  0x20   :  { %223 = vperm.xlu0 %1597, %v67_v25  }
  0x21   :  { %218 = vperm.xlu1 %1598, %v66_v24  }
  0x24   :  { %233 = vperm.xlu0 %1597, %v69_v28   ;;  %v32_v28 = vld [vmem:[%s2525_s1 + $0x20] sm:$0xff] }
  0x25   :  { %228 = vperm.xlu1 %1598, %v68_v27  }
  0x28   :  { %243 = vperm.xlu0 %1597, %v71_v43   ;;  %v46_v43 = vld [vmem:[%s2525_s1 + $0x90] sm:$0xff] }
  0x29   :  { %238 = vperm.xlu1 %1598, %v70_v39   ;;  %v42_v39 = vld [vmem:[%s2525_s1 + $0x70] sm:$0xff] }
  0x2c   :  { %253 = vperm.xlu0 %1597, %v73_v52   ;;  %v57_v52 = vld [vmem:[%s2525_s1 + $0xe8] sm:$0xff] }
  0x2d   :  { %248 = vperm.xlu1 %1598, %v72_v51   ;;  %v54_v51 = vld [vmem:[%s2525_s1 + $0xd0] sm:$0xff] }
  0x30   :  { %263 = vperm.xlu0 %1597, %v75_v57  }
  0x31   :  { %258 = vperm.xlu1 %1598, %v74_v56  }
  0x76   :  { %v1559_v26 = vpop.permute.xlu0 %1558 }
  0x77   :  { %v1561_v29 = vunpack.i.h.bf16 %v1559_v26  ;;  %v1560_v30 = vunpack.i.l.bf16 %v1559_v26  ;;  %v1569_v31 = vpop.permute.xlu1 %1568 }
  0x78   :  { %v1571_v32 = vunpack.i.h.bf16 %v1569_v31  ;;  %v1570_v33 = vunpack.i.l.bf16 %v1569_v31  ;;  %v37_v31 = vld [vmem:[%s2525_s1 + $0x48] sm:$0xff] }
  0x79   :  { %v123_v34 = vsel %vm122_vm1, %v1716_v0, %v1560_v30  ;;  %v124_v35 = vsel %vm122_vm1, %v1721_v1, %v1561_v29  ;;  %v35_v29 = vld [vmem:[%s2525_s1 + $0x38] sm:$0xff]  ;;  %v34_v30 = vld [vmem:[%s2525_s1 + $0x30] sm:$0xff] }
  0x7a   :  { %v1564_v37 = vpop.permute.xlu0 %1563  ;;  %v1406_v38 = vpack.c.bf16 %v124_v35, %v123_v34  ;;  %v128_v44 = vsel %vm122_vm1, %v1744_v7, %v1571_v32  ;;  %v127_v45 = vsel %vm122_vm1, %v1739_v6, %v1570_v33  ;;  %v36_v32 = vld [vmem:[%s2525_s1 + $0x40] sm:$0xff]  ;;  %v39_v33 = vld [vmem:[%s2525_s1 + $0x58] sm:$0xff]  ;;  %v38_v34 = vld [vmem:[%s2525_s1 + $0x50] sm:$0xff] }
  0x7b   :  { %v1566_v40 = vunpack.i.h.bf16 %v1564_v37  ;;  %v1565_v41 = vunpack.i.l.bf16 %v1564_v37  ;;  %v1574_v42 = vpop.permute.xlu1 %1573  ;;  %v1414_v53 = vpack.c.bf16 %v128_v44, %v127_v45  ;;  %v41_v35 = vld [vmem:[%s2525_s1 + $0x68] sm:$0xff]  ;;  %v40_v37 = vld [vmem:[%s2525_s1 + $0x60] sm:$0xff] }
  0x7c   :  { %1408 = vmatpush1.bf16.msk.msra.mxu0 %vm1813_vm3, %v1406_v38  ;;  %v1576_v48 = vunpack.i.h.bf16 %v1574_v42  ;;  %v1575_v49 = vunpack.i.l.bf16 %v1574_v42  ;;  %v43_v38 = vld [vmem:[%s2525_s1 + $0x78] sm:$0xff]  ;;  %v49_v44 = vld [vmem:[%s2525_s1 + $0xa8] sm:$0xff]  ;;  %v48_v45 = vld [vmem:[%s2525_s1 + $0xa0] sm:$0xff] }
  0x7d   :  { %v126_v46 = vsel %vm122_vm1, %v1734_v5, %v1566_v40  ;;  %v125_v47 = vsel %vm122_vm1, %v1726_v2, %v1565_v41  ;;  %1409 = vmatprep.subr.bf16.mxu0 %v1679_v3  ;;  %v45_v40 = vld [vmem:[%s2525_s1 + $0x88] sm:$0xff]  ;;  %v44_v41 = vld [vmem:[%s2525_s1 + $0x80] sm:$0xff]  ;;  %v47_v42 = vld [vmem:[%s2525_s1 + $0x98] sm:$0xff] }
  0x7e   :  { %v1410_v50 = vpack.c.bf16 %v126_v46, %v125_v47  ;;  %v130_v54 = vsel %vm122_vm1, %v1756_v10, %v1576_v48  ;;  %v129_v55 = vsel %vm122_vm1, %v1751_v9, %v1575_v49  ;;  %v1579_v61 = vpop.permute.xlu0 %1578  ;;  %v51_v46 = vld [vmem:[%s2525_s1 + $0xb8] sm:$0xff]  ;;  %v50_v47 = vld [vmem:[%s2525_s1 + $0xb0] sm:$0xff]  ;;  %v53_v48 = vld [vmem:[%s2525_s1 + $0xc8] sm:$0xff] }
  0x7f   :  { %v1418_v58 = vpack.c.bf16 %v130_v54, %v129_v55  ;;  %v1581_v63 = vunpack.i.h.bf16 %v1579_v61  ;;  %v1580_v4 = vunpack.i.l.bf16 %v1579_v61  ;;  %v1584_v8 = vpop.permute.xlu1 %1583  ;;  %v52_v49 = vld [vmem:[%s2525_s1 + $0xc0] sm:$0xff]  ;;  %v59_v54 = vld [vmem:[%s2525_s1 + $0xf8] sm:$0xff]  ;;  %v58_v55 = vld [vmem:[%s2525_s1 + $0xf0] sm:$0xff] }
  0x80   :  { %1412 = vmatpush1.bf16.msk.msra.mxu0 %vm1813_vm3, %v1410_v50  ;;  %v1586_v14 = vunpack.i.h.bf16 %v1584_v8  ;;  %v1585_v15 = vunpack.i.l.bf16 %v1584_v8  ;;  %v55_v50 = vld [vmem:[%s2525_s1 + $0xd8] sm:$0xff] }
  0x81   :  { %1413 = vmatprep.subr.bf16.mxu0 %v1679_v3  ;;  %v157_v12 = vsel %vm155_vm4, %v1581_v63, %v1721_v1  ;;  %v156_v13 = vsel %vm155_vm4, %v1580_v4, %v1716_v0  ;;  %v513_v0 = vld [vmem:[%s2527_s3 + $0x128] sm:$0xff] }
  0x82   :  { %v1589_v16 = vpop.permute.xlu0 %1588  ;;  %v1434_v17 = vpack.c.bf16 %v157_v12, %v156_v13  ;;  %v159_v18 = vsel %vm155_vm4, %v1586_v14, %v1734_v5  ;;  %v158_v19 = vsel %vm155_vm4, %v1585_v15, %v1726_v2 }
  0x83   :  { %v1591_v1 = vunpack.i.h.bf16 %v1589_v16  ;;  %v1590_v21 = vunpack.i.l.bf16 %v1589_v16  ;;  %v1594_v22 = vpop.permute.xlu1 %1593  ;;  %v1438_v20 = vpack.c.bf16 %v159_v18, %v158_v19 }
  0x84   :  { %1416 = vmatpush1.bf16.msk.msra.mxu0 %vm1813_vm3, %v1414_v53  ;;  %v1596_v2 = vunpack.i.h.bf16 %v1594_v22  ;;  %v1595_v24 = vunpack.i.l.bf16 %v1594_v22  ;;  %v56_v53 = vld [vmem:[%s2525_s1 + $0xe0] sm:$0xff] }
  0x85   :  { %1417 = vmatprep.subr.bf16.mxu0 %v1679_v3  ;;  %v161_v23 = vsel %vm155_vm4, %v1591_v1, %v1744_v7  ;;  %v160_v5 = vsel %vm155_vm4, %v1590_v21, %v1739_v6  ;;  %v28_v6 = vld [vmem:[%s2525_s1] sm:$0xff] }
  0x86   :  { %v1442_v25 = vpack.c.bf16 %v161_v23, %v160_v5  ;;  %v163_v26 = vsel %vm155_vm4, %v1596_v2, %v1756_v10  ;;  %v162_v27 = vsel %vm155_vm4, %v1595_v24, %v1751_v9  ;;  %v31_v10 = vld [vmem:[%s2525_s1 + $0x18] sm:$0xff]  ;;  %v30_v9 = vld [vmem:[%s2525_s1 + $0x10] sm:$0xff] }
  0x87   :  { %v1446_v7 = vpack.c.bf16 %v163_v26, %v162_v27 }
  0x88   :  { %1420 = vmatpush1.bf16.msk.msra.mxu0 %vm1813_vm3, %v1418_v58 }
  0x89   :  { %1421 = vmatprep.subr.bf16.mxu0 %v1679_v3 }
  0x8c   :  { %1423 = vmatpush1.bf16.msra.mxu0 %v1422_v59 }
  0x8d   :  { %1424 = vmatprep.subr.bf16.mxu0 %v1679_v3 }
  0x90   :  { %1426 = vmatpush1.bf16.msra.mxu0 %v1425_v60 }
  0x91   :  { %1427 = vmatprep.subr.bf16.mxu0 %v1679_v3 }
  0x93   :  { %v189_v56 = vpop.permute.xlu0 %188 }
  0x94   :  { %1429 = vmatpush1.bf16.msra.mxu0 %v1428_v62  ;;  %v194_v59 = vpop.permute.xlu1 %193 }
  0x95   :  { %1430 = vmatprep.subr.bf16.mxu0 %v1679_v3 }
  0x98   :  { %1432 = vmatpush1.bf16.msra.mxu0 %v1431_v11  ;;  %v199_v11 = vpop.permute.xlu1 %198 }
  0x99   :  { %1433 = vmatprep.subr.bf16.mxu0 %v1679_v3 }
  0x9c   :  { %1436 = vmatpush1.bf16.msk.msra.mxu0 %vm1881_vm6, %v1434_v17  ;;  %v204_v17 = vpop.permute.xlu0 %203  ;;  %v209_v2 = vpop.permute.xlu1 %208 }
  0x9d   :  { %1437 = vmatprep.subr.bf16.mxu0 %v1679_v3 }
  0xa0   :  { %1440 = vmatpush1.bf16.msk.msra.mxu0 %vm1881_vm6, %v1438_v20 }
  0xa1   :  { %1441 = vmatprep.subr.bf16.mxu0 %v1679_v3 }
  0xa4   :  { %1444 = vmatpush1.bf16.msk.msra.mxu0 %vm1881_vm6, %v1442_v25  ;;  %v214_v25 = vpop.permute.xlu0 %213 }
  0xa5   :  { %1445 = vmatprep.subr.bf16.mxu0 %v1679_v3  ;;  %v33_v3 = vld [vmem:[%s2525_s1 + $0x28] sm:$0xff] }
  0xa8   :  { %1448 = vmatpush1.bf16.msk.msra.mxu0 %vm1881_vm6, %v1446_v7 }
  0xab   :  { %380 = vmatmul.mubr.f32.vlgmr.msra.gmra.mrb[0].mxu0 %v28_v6 }
  0xac   :  { %1156 = vmatprep.mubr.msk.f32.mxu0 %vm266_vm0, %v31_v10 }
  0xaf   :  { %385 = vmatmul.mubr.f32.gmra.mrb[2].mxu0 %v30_v9 }
  0xb0   :  { %1157 = vmatprep.mubr.msk.f32.mxu0 %vm266_vm0, %v33_v3 }
  0xb3   :  { %390 = vmatmul.mubr.f32.gmra.mrb[4].mxu0 %v32_v28 }
  0xb4   :  { %1158 = vmatprep.mubr.msk.f32.mxu0 %vm266_vm0, %v35_v29  ;;  %v219_v29 = vpop.permute.xlu1 %218 }
  0xb7   :  { %395 = vmatmul.mubr.f32.gmra.mrb[6].mxu0 %v34_v30 }
  0xb8   :  { %1159 = vmatprep.mubr.msk.f32.mxu0 %vm266_vm0, %v37_v31  ;;  %v224_v31 = vpop.permute.xlu0 %223 }
  0xbb   :  { %400 = vmatmul.mubr.f32.gmra.mrb[8].mxu0 %v36_v32 }
  0xbc   :  { %1160 = vmatprep.mubr.msk.f32.mxu0 %vm266_vm0, %v39_v33 }
  0xbf   :  { %405 = vmatmul.mubr.f32.gmra.mrb[10].mxu0 %v38_v34 }
  0xc0   :  { %1161 = vmatprep.mubr.msk.f32.mxu0 %vm266_vm0, %v41_v35 }
  0xc3   :  { %410 = vmatmul.mubr.f32.gmra.mrb[12].mxu0 %v40_v37 }
  0xc4   :  { %1162 = vmatprep.mubr.msk.f32.mxu0 %vm266_vm0, %v43_v38 }
  0xc7   :  { %415 = vmatmul.mubr.f32.gmra.mrb[14].mxu0 %v42_v39 }
  0xc8   :  { %1163 = vmatprep.mubr.msk.f32.mxu0 %vm266_vm0, %v45_v40 }
  0xcb   :  { %420 = vmatmul.mubr.f32.gmra.mrb[16].mxu0 %v44_v41  ;;  %v229_v41 = vpop.permute.xlu1 %228 }
  0xcc   :  { %1164 = vmatprep.mubr.msk.f32.mxu0 %vm266_vm0, %v47_v42 }
  0xcf   :  { %425 = vmatmul.mubr.f32.gmra.mrb[18].mxu0 %v46_v43  ;;  %v234_v43 = vpop.permute.xlu0 %233 }
  0xd0   :  { %1165 = vmatprep.mubr.msk.f32.mxu0 %vm266_vm0, %v49_v44 }
  0xd3   :  { %430 = vmatmul.mubr.f32.gmra.mrb[20].mxu0 %v48_v45 }
  0xd4   :  { %1166 = vmatprep.mubr.msk.f32.mxu0 %vm266_vm0, %v51_v46 }
  0xd7   :  { %435 = vmatmul.mubr.f32.gmra.mrb[22].mxu0 %v50_v47 }
  0xd8   :  { %1167 = vmatprep.mubr.msk.f32.mxu0 %vm266_vm0, %v53_v48 }
  0xdb   :  { %440 = vmatmul.mubr.f32.gmra.mrb[24].mxu0 %v52_v49 }
  0xdc   :  { %1168 = vmatprep.mubr.msk.f32.mxu0 %vm266_vm0, %v55_v50 }
  0xdf   :  { %445 = vmatmul.mubr.f32.gmra.mrb[26].mxu0 %v54_v51 }
  0xe0   :  { %1169 = vmatprep.mubr.msk.f32.mxu0 %vm266_vm0, %v57_v52  ;;  %v239_v52 = vpop.permute.xlu1 %238 }
  0xe3   :  { %450 = vmatmul.mubr.f32.gmra.mrb[28].mxu0 %v56_v53 }
  0xe4   :  { %1170 = vmatprep.mubr.msk.f32.mxu0 %vm266_vm0, %v59_v54  ;;  %v244_v54 = vpop.permute.xlu0 %243 }
  0xe7   :  { %455 = vmatmul.mubr.f32.gmra.mrb[30].mxu0 %v58_v55 }
 0x17e   :  { %v381_v57 = vpop.f32.mrb[0].mxu0 }
 0x17f   :  { %v383_v58 = vpop.f32.mrb[1].mxu0  ;;  %v382_v60 = vadd.f32 %v381_v57, %v189_v56 }
 0x181   :  { %v2012_v4 = vmax.f32 %v382_v60, 0.0 }
 0x182   :  { %v386_v61 = vpop.f32.mrb[2].mxu0 }
 0x183   :  { %v387_v62 = vadd.f32 %v386_v61, %v194_v59  ;;  %v388_v63 = vpop.f32.mrb[3].mxu0 }
 0x184   :  { %v249_v63 = vpop.permute.xlu1 %248 }
 0x185   :  { %v2014_v8 = vmax.f32 %v387_v62, 0.0 }
 0x186   :  { %v391_v12 = vpop.f32.mrb[4].mxu0 }
 0x187   :  { %v393_v13 = vpop.f32.mrb[5].mxu0  ;;  %v2018_v14 = vpack.i.bf16 %v2014_v8, %v2012_v4  ;;  %v1449_v15 = vpack.c.bf16 %v2014_v8, %v2012_v4  ;;  %v392_v16 = vadd.f32 %v391_v12, %v199_v11  ;;  %v254_v12 = vpop.permute.xlu0 %253 }
 0x189   :  { %1600 = vrot.lane.b32.xlu1 %v2018_v14, %s1680_s9  ;;  %1450 = vmatprep.subr.bf16.mxu0 %v1449_v15  ;;  %v2024_v21 = vmax.f32 %v392_v16, 0.0 }
 0x18a   :  { %1537 = vmatprep.subr.bf16.mxu1 %v1449_v15  ;;  %v396_v18 = vpop.f32.mrb[6].mxu0 }
 0x18b   :  { %v397_v19 = vadd.f32 %v396_v18, %v204_v17  ;;  %v398_v1 = vpop.f32.mrb[7].mxu0 }
 0x18d   :  { %v2026_v22 = vmax.f32 %v397_v19, 0.0 }
 0x18e   :  { %v401_v20 = vpop.f32.mrb[8].mxu0 }
 0x18f   :  { %v403_v23 = vpop.f32.mrb[9].mxu0  ;;  %v2030_v5 = vpack.i.bf16 %v2026_v22, %v2024_v21  ;;  %v402_v24 = vadd.f32 %v401_v20, %v209_v2 }
 0x190   :  { %v259_v23 = vpop.permute.xlu1 %258 }
 0x191   :  { %1605 = vrot.lane.b32.xlu0 %v2030_v5, %s1680_s9  ;;  %v2034_v6 = vmax.f32 %v402_v24, 0.0  ;;  %v264_v24 = vpop.permute.xlu0 %263 }
 0x192   :  { %v406_v26 = vpop.f32.mrb[10].mxu0 }
 0x193   :  { %v407_v27 = vadd.f32 %v406_v26, %v214_v25  ;;  %v408_v7 = vpop.f32.mrb[11].mxu0 }
 0x194   :  { %v477_v7 = vld [vmem:[%s2527_s3 + $0x8] sm:$0xff] }
 0x195   :  { %v2036_v10 = vmax.f32 %v407_v27, 0.0  ;;  %860 = vmatprep.mubr.f32.mxu0 %v477_v7 }
 0x196   :  { %v411_v9 = vpop.f32.mrb[12].mxu0 }
 0x197   :  { %v413_v3 = vpop.f32.mrb[13].mxu0  ;;  %v2040_v28 = vpack.i.bf16 %v2036_v10, %v2034_v6  ;;  %v412_v30 = vadd.f32 %v411_v9, %v219_v29  ;;  %v483_v9 = vld [vmem:[%s2527_s3 + $0x38] sm:$0xff] }
 0x198   :  { %870 = vmatprep.mubr.f32.mxu1 %v483_v9 }
 0x199   :  { %1610 = vrot.lane.b32.xlu1 %v2040_v28, %s1680_s9  ;;  %v2044_v35 = vmax.f32 %v412_v30, 0.0 }
 0x19a   :  { %v416_v32 = vpop.f32.mrb[14].mxu0 }
 0x19b   :  { %v417_v33 = vadd.f32 %v416_v32, %v224_v31  ;;  %v418_v34 = vpop.f32.mrb[15].mxu0  ;;  %v528_v31 = vld [vmem:[%s2528_s4 + $0x20] sm:$0xff]  ;;  %v527_v32 = vld [vmem:[%s2528_s4 + $0x18] sm:$0xff] }
 0x19c   :  { %v529_v34 = vld [vmem:[%s2528_s4 + $0x28] sm:$0xff] }
 0x19d   :  { %v2046_v37 = vmax.f32 %v417_v33, 0.0  ;;  %v530_v33 = vld [vmem:[%s2528_s4 + $0x30] sm:$0xff] }
 0x19e   :  { %v421_v38 = vpop.f32.mrb[16].mxu0 }
 0x19f   :  { %v423_v39 = vpop.f32.mrb[17].mxu0  ;;  %v1614_v40 = vpack.i.bf16 %v2046_v37, %v2044_v35  ;;  %v422_v42 = vadd.f32 %v421_v38, %v229_v41  ;;  %v532_v38 = vld [vmem:[%s2528_s4 + $0x40] sm:$0xff]  ;;  %v533_v41 = vld [vmem:[%s2528_s4 + $0x48] sm:$0xff] }
 0x1a0   :  { %v531_v39 = vld [vmem:[%s2528_s4 + $0x38] sm:$0xff] }
 0x1a1   :  { %1615 = vrot.lane.b32.xlu0 %v1614_v40, %s1680_s9  ;;  %v2051_v47 = vmax.f32 %v422_v42, 0.0  ;;  %v536_v42 = vld [vmem:[%s2528_s4 + $0x60] sm:$0xff] }
 0x1a2   :  { %v426_v44 = vpop.f32.mrb[18].mxu0 }
 0x1a3   :  { %v427_v45 = vadd.f32 %v426_v44, %v234_v43  ;;  %v428_v46 = vpop.f32.mrb[19].mxu0  ;;  %v535_v43 = vld [vmem:[%s2528_s4 + $0x58] sm:$0xff]  ;;  %v538_v44 = vld [vmem:[%s2528_s4 + $0x70] sm:$0xff] }
 0x1a4   :  { %v539_v46 = vld [vmem:[%s2528_s4 + $0x78] sm:$0xff] }
 0x1a5   :  { %v2053_v48 = vmax.f32 %v427_v45, 0.0  ;;  %v537_v45 = vld [vmem:[%s2528_s4 + $0x68] sm:$0xff] }
 0x1a6   :  { %v431_v49 = vpop.f32.mrb[20].mxu0 }
 0x1a7   :  { %v433_v50 = vpop.f32.mrb[21].mxu0  ;;  %v1619_v51 = vpack.i.bf16 %v2053_v48, %v2051_v47  ;;  %v432_v53 = vadd.f32 %v431_v49, %v239_v52  ;;  %v1469_v7 = vpack.c.bf16 %v2053_v48, %v2051_v47 }
 0x1a9   :  { %1620 = vrot.lane.b32.xlu1 %v1619_v51, %s1680_s9  ;;  %v2058_v58 = vmax.f32 %v432_v53, 0.0 }
 0x1aa   :  { %v436_v55 = vpop.f32.mrb[22].mxu0 }
 0x1ab   :  { %v437_v56 = vadd.f32 %v436_v55, %v244_v54  ;;  %v438_v57 = vpop.f32.mrb[23].mxu0  ;;  %v1454_v55 = vpack.c.bf16 %v2026_v22, %v2024_v21 }
 0x1ad   :  { %v2060_v59 = vmax.f32 %v437_v56, 0.0 }
 0x1ae   :  { %v441_v60 = vpop.f32.mrb[24].mxu0 }
 0x1af   :  { %v443_v61 = vpop.f32.mrb[25].mxu0  ;;  %v1624_v62 = vpack.i.bf16 %v2060_v59, %v2058_v58  ;;  %v442_v11 = vadd.f32 %v441_v60, %v249_v63 }
 0x1b1   :  { %1625 = vrot.lane.b32.xlu0 %v1624_v62, %s1680_s9  ;;  %v2065_v17 = vmax.f32 %v442_v11, 0.0  ;;  %v1459_v11 = vpack.c.bf16 %v2036_v10, %v2034_v6 }
 0x1b2   :  { %v446_v13 = vpop.f32.mrb[26].mxu0 }
 0x1b3   :  { %v447_v15 = vadd.f32 %v446_v13, %v254_v12  ;;  %v448_v16 = vpop.f32.mrb[27].mxu0 }
 0x1b5   :  { %v2067_v18 = vmax.f32 %v447_v15, 0.0 }
 0x1b6   :  { %v451_v19 = vpop.f32.mrb[28].mxu0 }
 0x1b7   :  { %v453_v1 = vpop.f32.mrb[29].mxu0  ;;  %v1629_v20 = vpack.i.bf16 %v2067_v18, %v2065_v17  ;;  %v452_v2 = vadd.f32 %v451_v19, %v259_v23 }
 0x1b9   :  { %1630 = vrot.lane.b32.xlu1 %v1629_v20, %s1680_s9  ;;  %v2078_v3 = vmax.f32 %v452_v2, 0.0 }
 0x1ba   :  { %v456_v25 = vpop.f32.mrb[30].mxu0 }
 0x1bb   :  { %v457_v26 = vadd.f32 %v456_v25, %v264_v24  ;;  %v458_v27 = vpop.f32.mrb[31].mxu0 }
 0x1bd   :  { %v2080_v29 = vmax.f32 %v457_v26, 0.0  ;;  %1640 = vrot.lane.b32.xlu1 %v2018_v14, %s1681_s10  ;;  %v524_v14 = vld [vmem:[%s2528_s4] sm:$0xff] }
 0x1bf   :  { %v1634_v30 = vpack.i.bf16 %v2080_v29, %v2078_v3 }
 0x1c1   :  { %1635 = vrot.lane.b32.xlu0 %v1634_v30, %s1680_s9  ;;  %1650 = vrot.lane.b32.xlu1 %v2040_v28, %s1681_s10  ;;  %v526_v28 = vld [vmem:[%s2528_s4 + $0x10] sm:$0xff] }
 0x1c5   :  { %1645 = vrot.lane.b32.xlu0 %v2030_v5, %s1681_s10  ;;  %1660 = vrot.lane.b32.xlu1 %v1619_v51, %s1681_s10  ;;  %v525_v5 = vld [vmem:[%s2528_s4 + $0x8] sm:$0xff] }
 0x1c9   :  { %1655 = vrot.lane.b32.xlu0 %v1614_v40, %s1681_s10  ;;  %1670 = vrot.lane.b32.xlu1 %v1629_v20, %s1681_s10  ;;  %v534_v40 = vld [vmem:[%s2528_s4 + $0x50] sm:$0xff]  ;;  %v1464_v20 = vpack.c.bf16 %v2046_v37, %v2044_v35 }
 0x1cd   :  { %1665 = vrot.lane.b32.xlu0 %v1624_v62, %s1681_s10  ;;  %718 = vperm.xlu1 %1598, %v524_v14  }
 0x1d1   :  { %1675 = vrot.lane.b32.xlu0 %v1634_v30, %s1681_s10  ;;  %728 = vperm.xlu1 %1598, %v526_v28  }
 0x1d5   :  { %723 = vperm.xlu0 %1597, %v525_v5   ;;  %738 = vperm.xlu1 %1598, %v528_v31  }
 0x1d9   :  { %733 = vperm.xlu0 %1597, %v527_v32   ;;  %748 = vperm.xlu1 %1598, %v530_v33   ;;  %v1474_v32 = vpack.c.bf16 %v2060_v59, %v2058_v58 }
 0x1dd   :  { %743 = vperm.xlu0 %1597, %v529_v34   ;;  %758 = vperm.xlu1 %1598, %v532_v38  }
 0x1e1   :  { %753 = vperm.xlu0 %1597, %v531_v39   ;;  %768 = vperm.xlu1 %1598, %v534_v40  }
 0x1e5   :  { %763 = vperm.xlu0 %1597, %v533_v41   ;;  %778 = vperm.xlu1 %1598, %v536_v42   ;;  %v1479_v42 = vpack.c.bf16 %v2067_v18, %v2065_v17 }
 0x1e9   :  { %773 = vperm.xlu0 %1597, %v535_v43   ;;  %788 = vperm.xlu1 %1598, %v538_v44  }
 0x1ed   :  { %783 = vperm.xlu0 %1597, %v537_v45  }
 0x1f1   :  { %793 = vperm.xlu0 %1597, %v539_v46  }
 0x1fb   :  { %v1601_v49 = vpop.permute.xlu1 %1600 }
 0x1fc   :  { %v1603_v50 = vunpack.i.h.bf16 %v1601_v49  ;;  %v1602_v51 = vunpack.i.l.bf16 %v1601_v49 }
 0x1fe   :  { %v605_v52 = vsel %vm122_vm1, %v2014_v8, %v1603_v50  ;;  %v604_v53 = vsel %vm122_vm1, %v2012_v4, %v1602_v51 }
 0x1ff   :  { %v1451_v54 = vpack.c.bf16 %v605_v52, %v604_v53  ;;  %v1484_v52 = vpack.c.bf16 %v2080_v29, %v2078_v3 }
 0x201   :  { %1453 = vmatpush3.bf16.msk.msra.mxu0 %vm1813_vm3, %v1451_v54  ;;  %1545 = vmatpush3.bf16.msk.msra.mxu1 %vm1813_vm3, %v1451_v54 }
 0x202   :  { %1455 = vmatprep.subr.bf16.mxu0 %v1454_v55  ;;  %1538 = vmatprep.subr.bf16.mxu1 %v1454_v55 }
 0x203   :  { %v1606_v56 = vpop.permute.xlu0 %1605 }
 0x204   :  { %v1608_v57 = vunpack.i.h.bf16 %v1606_v56  ;;  %v1607_v60 = vunpack.i.l.bf16 %v1606_v56 }
 0x206   :  { %v607_v61 = vsel %vm122_vm1, %v2026_v22, %v1608_v57  ;;  %v606_v62 = vsel %vm122_vm1, %v2024_v21, %v1607_v60 }
 0x207   :  { %v1456_v63 = vpack.c.bf16 %v607_v61, %v606_v62 }
 0x209   :  { %1458 = vmatpush3.bf16.msk.msra.mxu0 %vm1813_vm3, %v1456_v63  ;;  %1546 = vmatpush3.bf16.msk.msra.mxu1 %vm1813_vm3, %v1456_v63 }
 0x20a   :  { %1460 = vmatprep.subr.bf16.mxu0 %v1459_v11  ;;  %1539 = vmatprep.subr.bf16.mxu1 %v1459_v11 }
 0x20b   :  { %v1611_v12 = vpop.permute.xlu1 %1610 }
 0x20c   :  { %v1613_v13 = vunpack.i.h.bf16 %v1611_v12  ;;  %v1612_v15 = vunpack.i.l.bf16 %v1611_v12 }
 0x20e   :  { %v609_v16 = vsel %vm122_vm1, %v2036_v10, %v1613_v13  ;;  %v608_v19 = vsel %vm122_vm1, %v2034_v6, %v1612_v15 }
 0x20f   :  { %v1461_v1 = vpack.c.bf16 %v609_v16, %v608_v19 }
 0x211   :  { %1463 = vmatpush3.bf16.msk.msra.mxu0 %vm1813_vm3, %v1461_v1  ;;  %1547 = vmatpush3.bf16.msk.msra.mxu1 %vm1813_vm3, %v1461_v1 }
 0x212   :  { %1465 = vmatprep.subr.bf16.mxu0 %v1464_v20  ;;  %1540 = vmatprep.subr.bf16.mxu1 %v1464_v20 }
 0x213   :  { %v1616_v23 = vpop.permute.xlu0 %1615 }
 0x214   :  { %v1618_v2 = vunpack.i.h.bf16 %v1616_v23  ;;  %v1617_v24 = vunpack.i.l.bf16 %v1616_v23 }
 0x216   :  { %v611_v25 = vsel %vm122_vm1, %v2046_v37, %v1618_v2  ;;  %v610_v26 = vsel %vm122_vm1, %v2044_v35, %v1617_v24 }
 0x217   :  { %v1466_v27 = vpack.c.bf16 %v611_v25, %v610_v26  ;;  %v486_v26 = vld [vmem:[%s2527_s3 + $0x50] sm:$0xff] }
 0x219   :  { %1468 = vmatpush3.bf16.msk.msra.mxu0 %vm1813_vm3, %v1466_v27  ;;  %1548 = vmatpush3.bf16.msk.msra.mxu1 %vm1813_vm3, %v1466_v27 }
 0x21a   :  { %1470 = vmatprep.subr.bf16.mxu0 %v1469_v7  ;;  %1541 = vmatprep.subr.bf16.mxu1 %v1469_v7 }
 0x21b   :  { %v1621_v9 = vpop.permute.xlu1 %1620 }
 0x21c   :  { %v1623_v30 = vunpack.i.h.bf16 %v1621_v9  ;;  %v1622_v14 = vunpack.i.l.bf16 %v1621_v9  ;;  %v479_v9 = vld [vmem:[%s2527_s3 + $0x18] sm:$0xff] }
 0x21e   :  { %v613_v28 = vsel %vm122_vm1, %v2053_v48, %v1623_v30  ;;  %v612_v5 = vsel %vm122_vm1, %v2051_v47, %v1622_v14  ;;  %v485_v30 = vld [vmem:[%s2527_s3 + $0x48] sm:$0xff] }
 0x21f   :  { %v1471_v31 = vpack.c.bf16 %v613_v28, %v612_v5 }
 0x221   :  { %1473 = vmatpush3.bf16.msk.msra.mxu0 %vm1813_vm3, %v1471_v31  ;;  %1549 = vmatpush3.bf16.msk.msra.mxu1 %vm1813_vm3, %v1471_v31 }
 0x222   :  { %1475 = vmatprep.subr.bf16.mxu0 %v1474_v32  ;;  %1542 = vmatprep.subr.bf16.mxu1 %v1474_v32 }
 0x223   :  { %v1626_v33 = vpop.permute.xlu0 %1625 }
 0x224   :  { %v1628_v34 = vunpack.i.h.bf16 %v1626_v33  ;;  %v1627_v38 = vunpack.i.l.bf16 %v1626_v33  ;;  %v488_v33 = vld [vmem:[%s2527_s3 + $0x60] sm:$0xff] }
 0x226   :  { %v615_v39 = vsel %vm122_vm1, %v2060_v59, %v1628_v34  ;;  %v614_v40 = vsel %vm122_vm1, %v2058_v58, %v1627_v38  ;;  %v492_v38 = vld [vmem:[%s2527_s3 + $0x80] sm:$0xff] }
 0x227   :  { %v1476_v41 = vpack.c.bf16 %v615_v39, %v614_v40 }
 0x229   :  { %1478 = vmatpush3.bf16.msk.msra.mxu0 %vm1813_vm3, %v1476_v41  ;;  %1550 = vmatpush3.bf16.msk.msra.mxu1 %vm1813_vm3, %v1476_v41 }
 0x22a   :  { %1480 = vmatprep.subr.bf16.mxu0 %v1479_v42  ;;  %1543 = vmatprep.subr.bf16.mxu1 %v1479_v42  ;;  %v491_v42 = vld [vmem:[%s2527_s3 + $0x78] sm:$0xff] }
 0x22b   :  { %v1631_v43 = vpop.permute.xlu1 %1630 }
 0x22c   :  { %v1633_v44 = vunpack.i.h.bf16 %v1631_v43  ;;  %v1632_v45 = vunpack.i.l.bf16 %v1631_v43 }
 0x22e   :  { %v617_v46 = vsel %vm122_vm1, %v2067_v18, %v1633_v44  ;;  %v616_v49 = vsel %vm122_vm1, %v2065_v17, %v1632_v45 }
 0x22f   :  { %v1481_v50 = vpack.c.bf16 %v617_v46, %v616_v49  ;;  %v1641_v51 = vpop.permute.xlu1 %1640 }
 0x230   :  { %v1643_v53 = vunpack.i.h.bf16 %v1641_v51  ;;  %v1642_v54 = vunpack.i.l.bf16 %v1641_v51 }
 0x231   :  { %1483 = vmatpush3.bf16.msk.msra.mxu0 %vm1813_vm3, %v1481_v50  ;;  %1551 = vmatpush3.bf16.msk.msra.mxu1 %vm1813_vm3, %v1481_v50  ;;  %v494_v50 = vld [vmem:[%s2527_s3 + $0x90] sm:$0xff] }
 0x232   :  { %1485 = vmatprep.subr.bf16.mxu0 %v1484_v52  ;;  %1544 = vmatprep.subr.bf16.mxu1 %v1484_v52  ;;  %v669_v60 = vsel %vm155_vm4, %v1643_v53, %v2014_v8  ;;  %v668_v61 = vsel %vm155_vm4, %v1642_v54, %v2012_v4  ;;  %v476_v4 = vld [vmem:[%s2527_s3] sm:$0xff]  ;;  %v482_v8 = vld [vmem:[%s2527_s3 + $0x30] sm:$0xff] }
 0x233   :  { %v1636_v55 = vpop.permute.xlu0 %1635  ;;  %v1651_v11 = vpop.permute.xlu1 %1650  ;;  %v1489_v15 = vpack.c.bf16 %v669_v60, %v668_v61  ;;  %v498_v52 = vld [vmem:[%s2527_s3 + $0xb0] sm:$0xff]  ;;  %v500_v61 = vld [vmem:[%s2527_s3 + $0xc0] sm:$0xff] }
 0x234   :  { %v1638_v56 = vunpack.i.h.bf16 %v1636_v55  ;;  %v1637_v57 = vunpack.i.l.bf16 %v1636_v55  ;;  %v1653_v1 = vunpack.i.h.bf16 %v1651_v11  ;;  %v1652_v20 = vunpack.i.l.bf16 %v1651_v11  ;;  %v506_v11 = vld [vmem:[%s2527_s3 + $0xf0] sm:$0xff] }
 0x236   :  { %v619_v62 = vsel %vm122_vm1, %v2080_v29, %v1638_v56  ;;  %v618_v63 = vsel %vm122_vm1, %v2078_v3, %v1637_v57  ;;  %v497_v56 = vld [vmem:[%s2527_s3 + $0xa8] sm:$0xff] }
 0x237   :  { %v1486_v12 = vpack.c.bf16 %v619_v62, %v618_v63  ;;  %v1646_v13 = vpop.permute.xlu0 %1645  ;;  %v1661_v14 = vpop.permute.xlu1 %1660  ;;  %v504_v62 = vld [vmem:[%s2527_s3 + $0xe0] sm:$0xff] }
 0x238   :  { %v1648_v16 = vunpack.i.h.bf16 %v1646_v13  ;;  %v1647_v19 = vunpack.i.l.bf16 %v1646_v13  ;;  %v1663_v28 = vunpack.i.h.bf16 %v1661_v14  ;;  %v1662_v5 = vunpack.i.l.bf16 %v1661_v14  ;;  %v509_v13 = vld [vmem:[%s2527_s3 + $0x108] sm:$0xff]  ;;  %v514_v14 = vld [vmem:[%s2527_s3 + $0x130] sm:$0xff] }
 0x239   :  { %1488 = vmatpush3.bf16.msk.msra.mxu0 %vm1813_vm3, %v1486_v12  ;;  %1552 = vmatpush3.bf16.msk.msra.mxu1 %vm1813_vm3, %v1486_v12  ;;  %v510_v12 = vld [vmem:[%s2527_s3 + $0x110] sm:$0xff] }
 0x23a   :  { %v671_v23 = vsel %vm155_vm4, %v1648_v16, %v2026_v22  ;;  %v670_v2 = vsel %vm155_vm4, %v1647_v19, %v2024_v21  ;;  %1491 = vmatprep.subr.msk.bf16.mxu1 %vm1881_vm6, %v1489_v15  ;;  %v673_v22 = vsel %vm155_vm4, %v1653_v1, %v2036_v10  ;;  %v672_v21 = vsel %vm155_vm4, %v1652_v20, %v2034_v6  ;;  %v489_v6 = vld [vmem:[%s2527_s3 + $0x68] sm:$0xff]  ;;  %v516_v16 = vld [vmem:[%s2527_s3 + $0x140] sm:$0xff]  ;;  %v515_v19 = vld [vmem:[%s2527_s3 + $0x138] sm:$0xff] }
 0x23b   :  { %v1495_v24 = vpack.c.bf16 %v671_v23, %v670_v2  ;;  %v1656_v25 = vpop.permute.xlu0 %1655  ;;  %v1501_v10 = vpack.c.bf16 %v673_v22, %v672_v21  ;;  %v676_v39 = vsel %vm155_vm4, %v1662_v5, %v2051_v47  ;;  %v1671_v43 = vpop.permute.xlu1 %1670  ;;  %v519_v1 = vld [vmem:[%s2527_s3 + $0x158] sm:$0xff]  ;;  %v518_v20 = vld [vmem:[%s2527_s3 + $0x150] sm:$0xff]  ;;  %v481_v2 = vld [vmem:[%s2527_s3 + $0x28] sm:$0xff] }
 0x23c   :  { %861 = vmatmul.mubr.f32.vlgmr.msra.gmra.mrb[32].mxu0 %v476_v4  ;;  %871 = vmatmul.mubr.f32.vlgmr.msra.gmra.mrb[0].mxu1 %v482_v8  ;;  %v1658_v27 = vunpack.i.h.bf16 %v1656_v25  ;;  %v1657_v7 = vunpack.i.l.bf16 %v1656_v25  ;;  %v1673_v47 = vunpack.i.h.bf16 %v1671_v43  ;;  %v1672_v45 = vunpack.i.l.bf16 %v1671_v43  ;;  %v522_v4 = vld [vmem:[%s2527_s3 + $0x170] sm:$0xff]  ;;  %v521_v8 = vld [vmem:[%s2527_s3 + $0x168] sm:$0xff]  ;;  %v496_v22 = vld [vmem:[%s2527_s3 + $0xa0] sm:$0xff] }
 0x23d   :  { %1494 = vmatpush3.bf16.msk.msra.mxu1 %vm1881_vm6, %v1489_v15  ;;  %865 = vmatprep.mubr.f32.mxu0 %v480_v36  ;;  %v512_v15 = vld [vmem:[%s2527_s3 + $0x120] sm:$0xff]  ;;  %v478_v23 = vld [vmem:[%s2527_s3 + $0x10] sm:$0xff]  ;;  %v499_v21 = vld [vmem:[%s2527_s3 + $0xb8] sm:$0xff] }
 0x23e   :  { %1497 = vmatprep.subr.msk.bf16.mxu1 %vm1881_vm6, %v1495_v24  ;;  %875 = vmatprep.mubr.f32.mxu1 %v486_v26  ;;  %v675_v31 = vsel %vm155_vm4, %v1658_v27, %v2046_v37  ;;  %v674_v32 = vsel %vm155_vm4, %v1657_v7, %v2044_v35  ;;  %v677_v35 = vsel %vm155_vm4, %v1663_v28, %v2053_v48  ;;  %v495_v48 = vld [vmem:[%s2527_s3 + $0x98] sm:$0xff]  ;;  %v484_v36 = vld [vmem:[%s2527_s3 + $0x40] sm:$0xff]  ;;  %v490_v25 = vld [vmem:[%s2527_s3 + $0x70] sm:$0xff] }
 0x23f   :  { %v1666_v34 = vpop.permute.xlu0 %1665  ;;  %v1507_v37 = vpack.c.bf16 %v675_v31, %v674_v32  ;;  %v1513_v44 = vpack.c.bf16 %v677_v35, %v676_v39  ;;  %v680_v53 = vsel %vm155_vm4, %v1672_v45, %v2065_v17  ;;  %v493_v26 = vld [vmem:[%s2527_s3 + $0x88] sm:$0xff]  ;;  %v502_v27 = vld [vmem:[%s2527_s3 + $0xd0] sm:$0xff]  ;;  %v523_v28 = vld [vmem:[%s2527_s3 + $0x178] sm:$0xff] }
 0x240   :  { %866 = vmatmul.mubr.f32.gmra.mrb[34].mxu0 %v479_v9  ;;  %876 = vmatmul.mubr.f32.gmra.mrb[2].mxu1 %v485_v30  ;;  %v1668_v40 = vunpack.i.h.bf16 %v1666_v34  ;;  %v1667_v41 = vunpack.i.l.bf16 %v1666_v34  ;;  %v505_v7 = vld [vmem:[%s2527_s3 + $0xe8] sm:$0xff]  ;;  %v508_v9 = vld [vmem:[%s2527_s3 + $0x100] sm:$0xff]  ;;  %v511_v30 = vld [vmem:[%s2527_s3 + $0x118] sm:$0xff] }
 0x241   :  { %1500 = vmatpush3.bf16.msk.msra.mxu1 %vm1881_vm6, %v1495_v24  ;;  %880 = vmatprep.mubr.f32.mxu1 %v489_v6  ;;  %v487_v24 = vld [vmem:[%s2527_s3 + $0x58] sm:$0xff]  ;;  %v517_v6 = vld [vmem:[%s2527_s3 + $0x148] sm:$0xff] }
 0x242   :  { %1503 = vmatprep.subr.msk.bf16.mxu1 %vm1881_vm6, %v1501_v10  ;;  %v679_v46 = vsel %vm155_vm4, %v1668_v40, %v2060_v59  ;;  %v678_v49 = vsel %vm155_vm4, %v1667_v41, %v2058_v58  ;;  %v681_v58 = vsel %vm155_vm4, %v1673_v47, %v2067_v18  ;;  %v501_v18 = vld [vmem:[%s2527_s3 + $0xc8] sm:$0xff] }
 0x243   :  { %v1676_v51 = vpop.permute.xlu0 %1675  ;;  %v1519_v59 = vpack.c.bf16 %v679_v46, %v678_v49  ;;  %v1525_v57 = vpack.c.bf16 %v681_v58, %v680_v53 }
 0x244   :  { %881 = vmatmul.mubr.f32.gmra.mrb[4].mxu1 %v488_v33  ;;  %v1678_v54 = vunpack.i.h.bf16 %v1676_v51  ;;  %v1677_v55 = vunpack.i.l.bf16 %v1676_v51 }
 0x245   :  { %1506 = vmatpush3.bf16.msk.msra.mxu1 %vm1881_vm6, %v1501_v10  ;;  %885 = vmatprep.mubr.f32.mxu1 %v492_v38  ;;  %v520_v10 = vld [vmem:[%s2527_s3 + $0x160] sm:$0xff] }
 0x246   :  { %1509 = vmatprep.subr.msk.bf16.mxu1 %vm1881_vm6, %v1507_v37  ;;  %v683_v17 = vsel %vm155_vm4, %v1678_v54, %v2080_v29  ;;  %v682_v60 = vsel %vm155_vm4, %v1677_v55, %v2078_v3  ;;  %v503_v3 = vld [vmem:[%s2527_s3 + $0xd8] sm:$0xff] }
 0x247   :  { %v1531_v63 = vpack.c.bf16 %v683_v17, %v682_v60  ;;  %v507_v29 = vld [vmem:[%s2527_s3 + $0xf8] sm:$0xff] }
 0x248   :  { %886 = vmatmul.mubr.f32.gmra.mrb[6].mxu1 %v491_v42 }
 0x249   :  { %1512 = vmatpush3.bf16.msk.msra.mxu1 %vm1881_vm6, %v1507_v37  ;;  %890 = vmatprep.mubr.f32.mxu1 %v495_v48 }
 0x24a   :  { %1515 = vmatprep.subr.msk.bf16.mxu1 %vm1881_vm6, %v1513_v44 }
 0x24c   :  { %891 = vmatmul.mubr.f32.gmra.mrb[8].mxu1 %v494_v50 }
 0x24d   :  { %1518 = vmatpush3.bf16.msk.msra.mxu1 %vm1881_vm6, %v1513_v44  ;;  %895 = vmatprep.mubr.f32.mxu1 %v498_v52 }
 0x24e   :  { %1521 = vmatprep.subr.msk.bf16.mxu1 %vm1881_vm6, %v1519_v59 }
 0x250   :  { %896 = vmatmul.mubr.f32.gmra.mrb[10].mxu1 %v497_v56 }
 0x251   :  { %1524 = vmatpush3.bf16.msk.msra.mxu1 %vm1881_vm6, %v1519_v59  ;;  %900 = vmatprep.mubr.f32.mxu1 %v501_v18 }
 0x252   :  { %1527 = vmatprep.subr.msk.bf16.mxu1 %vm1881_vm6, %v1525_v57 }
 0x254   :  { %901 = vmatmul.mubr.f32.gmra.mrb[12].mxu1 %v500_v61 }
 0x255   :  { %1530 = vmatpush3.bf16.msk.msra.mxu1 %vm1881_vm6, %v1525_v57  ;;  %905 = vmatprep.mubr.f32.mxu1 %v504_v62 }
 0x256   :  { %1533 = vmatprep.subr.msk.bf16.mxu1 %vm1881_vm6, %v1531_v63 }
 0x258   :  { %906 = vmatmul.mubr.f32.gmra.mrb[14].mxu1 %v503_v3 }
 0x259   :  { %1536 = vmatpush3.bf16.msk.msra.mxu1 %vm1881_vm6, %v1531_v63  ;;  %910 = vmatprep.mubr.f32.mxu1 %v507_v29  ;;  %v724_v29 = vpop.permute.xlu0 %723 }
 0x25c   :  { %911 = vmatmul.mubr.f32.gmra.mrb[16].mxu1 %v506_v11 }
 0x25d   :  { %915 = vmatprep.mubr.f32.mxu1 %v510_v12  ;;  %v719_v12 = vpop.permute.xlu1 %718 }
 0x260   :  { %916 = vmatmul.mubr.f32.gmra.mrb[18].mxu1 %v509_v13 }
 0x261   :  { %920 = vmatprep.mubr.f32.mxu1 %v513_v0 }
 0x264   :  { %921 = vmatmul.mubr.f32.gmra.mrb[20].mxu1 %v512_v15 }
 0x265   :  { %925 = vmatprep.mubr.f32.mxu1 %v516_v16 }
 0x268   :  { %926 = vmatmul.mubr.f32.gmra.mrb[22].mxu1 %v515_v19  ;;  %v734_v19 = vpop.permute.xlu0 %733 }
 0x269   :  { %930 = vmatprep.mubr.f32.mxu1 %v519_v1 }
 0x26c   :  { %931 = vmatmul.mubr.f32.gmra.mrb[24].mxu1 %v518_v20  ;;  %v729_v20 = vpop.permute.xlu1 %728 }
 0x26d   :  { %935 = vmatprep.mubr.f32.mxu1 %v522_v4 }
 0x270   :  { %936 = vmatmul.mubr.f32.gmra.mrb[26].mxu1 %v521_v8 }
 0x271   :  { %1381 = vmatprep.mubr.f32.mxu1 %v478_v23 }
 0x274   :  { %1382 = vmatmul.mubr.f32.vlgmr.msra.gmra.mrb[28].mxu1 %v481_v2  ;;  %v744_v2 = vpop.permute.xlu0 %743 }
 0x275   :  { %1384 = vmatprep.mubr.f32.mxu1 %v484_v36 }
 0x278   :  { %1385 = vmatmul.mubr.f32.gmra.mrb[30].mxu1 %v487_v24  ;;  %v739_v24 = vpop.permute.xlu1 %738 }
 0x279   :  { %1387 = vmatprep.mubr.f32.mxu1 %v490_v25 }
 0x27c   :  { %1388 = vmatmul.mubr.f32.gmra.mrb[32].mxu1 %v493_v26 }
 0x27d   :  { %1390 = vmatprep.mubr.f32.mxu1 %v496_v22 }
 0x280   :  { %1391 = vmatmul.mubr.f32.gmra.mrb[34].mxu1 %v499_v21 }
 0x281   :  { %1393 = vmatprep.mubr.f32.mxu1 %v502_v27 }
 0x284   :  { %1394 = vmatmul.mubr.f32.gmra.mrb[36].mxu1 %v505_v7 }
 0x285   :  { %1396 = vmatprep.mubr.f32.mxu1 %v508_v9 }
 0x288   :  { %1397 = vmatmul.mubr.f32.gmra.mrb[38].mxu1 %v511_v30  ;;  %v754_v30 = vpop.permute.xlu0 %753 }
 0x289   :  { %1399 = vmatprep.mubr.f32.mxu1 %v514_v14 }
 0x28c   :  { %1400 = vmatmul.mubr.f32.gmra.mrb[40].mxu1 %v517_v6  ;;  %v749_v6 = vpop.permute.xlu1 %748 }
 0x28d   :  { %1402 = vmatprep.mubr.f32.mxu1 %v520_v10 }
 0x290   :  { %1403 = vmatmul.mubr.f32.gmra.mrb[42].mxu1 %v523_v28 }
 0x30f   :  { %v1269_v5 = vpop.f32.mrb[32].mxu0  ;;  %v1275_v31 = vpop.f32.mrb[0].mxu1 }
 0x310   :  { %v1270_v32 = vpop.f32.mrb[33].mxu0  ;;  %v1276_v33 = vpop.f32.mrb[1].mxu1 }
 0x311   :  { %v1271_v34 = vadd.f32 %v1270_v32, %v1269_v5  ;;  %v2424_v38 = vadd.f32 %v1276_v33, %v1275_v31 }
 0x313   :  { %v1272_v37 = vpop.f32.mrb[34].mxu0  ;;  %v1278_v35 = vpop.f32.mrb[2].mxu1  ;;  %v863_v27 = vadd.f32 %v1271_v34, %v719_v12  ;;  %v873_v32 = vadd.f32 %v2424_v38, %v729_v20 }
 0x314   :  { %v1273_v39 = vpop.f32.mrb[35].mxu0  ;;  %v1279_v40 = vpop.f32.mrb[3].mxu1 }
 0x315   :  { %v1274_v41 = vadd.f32 %v1273_v39, %v1272_v37  ;;  %v1280_v42 = vadd.f32 %v1279_v40, %v1278_v35  ;;  %v764_v40 = vpop.permute.xlu0 %763 }
 0x317   :  { %v1281_v43 = vpop.f32.mrb[4].mxu1  ;;  %v868_v22 = vadd.f32 %v1274_v41, %v724_v29  ;;  %v878_v28 = vadd.f32 %v1280_v42, %v734_v19 }
 0x318   :  { %v1282_v48 = vpop.f32.mrb[5].mxu1 }
 0x319   :  { %v2426_v44 = vadd.f32 %v1282_v48, %v1281_v43  ;;  %v759_v43 = vpop.permute.xlu1 %758 }
 0x31b   :  { %v1284_v47 = vpop.f32.mrb[6].mxu1  ;;  %v883_v38 = vadd.f32 %v2426_v44, %v739_v24 }
 0x31c   :  { %v1285_v45 = vpop.f32.mrb[7].mxu1 }
 0x31d   :  { %v1286_v46 = vadd.f32 %v1285_v45, %v1284_v47 }
 0x31f   :  { %v1287_v49 = vpop.f32.mrb[8].mxu1  ;;  %v888_v39 = vadd.f32 %v1286_v46, %v744_v2 }
 0x320   :  { %v1288_v50 = vpop.f32.mrb[9].mxu1 }
 0x321   :  { %v2428_v51 = vadd.f32 %v1288_v50, %v1287_v49 }
 0x323   :  { %v1290_v52 = vpop.f32.mrb[10].mxu1  ;;  %v893_v44 = vadd.f32 %v2428_v51, %v749_v6 }
 0x324   :  { %v1291_v59 = vpop.f32.mrb[11].mxu1 }
 0x325   :  { %v2430_v58 = vadd.f32 %v1291_v59, %v1290_v52 }
 0x327   :  { %v1293_v53 = vpop.f32.mrb[12].mxu1  ;;  %v898_v49 = vadd.f32 %v2430_v58, %v754_v30 }
 0x328   :  { %v1294_v54 = vpop.f32.mrb[13].mxu1 }
 0x329   :  { %v2432_v55 = vadd.f32 %v1294_v54, %v1293_v53  ;;  %v774_v54 = vpop.permute.xlu0 %773 }
 0x32b   :  { %v1296_v56 = vpop.f32.mrb[14].mxu1 }
 0x32c   :  { %v1297_v18 = vpop.f32.mrb[15].mxu1 }
 0x32d   :  { %v2434_v57 = vadd.f32 %v1297_v18, %v1296_v56  ;;  %v769_v18 = vpop.permute.xlu1 %768 }
 0x32f   :  { %v1299_v17 = vpop.f32.mrb[16].mxu1 }
 0x330   :  { %v1300_v60 = vpop.f32.mrb[17].mxu1 }
 0x331   :  { %v2436_v61 = vadd.f32 %v1300_v60, %v1299_v17  ;;  %v908_v17 = vadd.f32 %v2434_v57, %v764_v40  ;;  %v779_v19 = vpop.permute.xlu1 %778 }
 0x333   :  { %v1302_v62 = vpop.f32.mrb[18].mxu1 }
 0x334   :  { %v1303_v63 = vpop.f32.mrb[19].mxu1 }
 0x335   :  { %v2438_v3 = vadd.f32 %v1303_v63, %v1302_v62  ;;  %v903_v62 = vadd.f32 %v2432_v55, %v759_v43  ;;  %v913_v55 = vadd.f32 %v2436_v61, %v769_v18 }
 0x337   :  { %v1305_v11 = vpop.f32.mrb[20].mxu1  ;;  %v918_v57 = vadd.f32 %v2438_v3, %v774_v54 }
 0x338   :  { %v1306_v13 = vpop.f32.mrb[21].mxu1 }
 0x339   :  { %v2440_v0 = vadd.f32 %v1306_v13, %v1305_v11  ;;  %v784_v13 = vpop.permute.xlu0 %783 }
 0x33b   :  { %v1308_v15 = vpop.f32.mrb[22].mxu1  ;;  %v923_v61 = vadd.f32 %v2440_v0, %v779_v19 }
 0x33c   :  { %v1309_v16 = vpop.f32.mrb[23].mxu1 }
 0x33d   :  { %v2442_v1 = vadd.f32 %v1309_v16, %v1308_v15 }
 0x33f   :  { %v1311_v4 = vpop.f32.mrb[24].mxu1  ;;  %v928_v2 = vadd.f32 %v2442_v1, %v784_v13 }
 0x340   :  { %v1312_v8 = vpop.f32.mrb[25].mxu1 }
 0x341   :  { %v2444_v23 = vadd.f32 %v1312_v8, %v1311_v4 }
 0x343   :  { %v1314_v36 = vpop.f32.mrb[26].mxu1 }
 0x344   :  { %v1315_v25 = vpop.f32.mrb[27].mxu1 }
 0x345   :  { %v2446_v26 = vadd.f32 %v1315_v25, %v1314_v36 }
 0x347   :  { %v1383_v21 = vpop.f32.mrb[28].mxu1 }
 0x348   :  { %v1013_v7 = vadd.f32 %v1383_v21, %v868_v22  ;;  %v1007_v9 = vpop.f32.mrb[29].mxu1  ;;  %v794_v21 = vpop.permute.xlu0 %793 }
 0x349   :  { %v1008_v14 = vadd.f32 %v1007_v9, %v863_v27  ;;  %v938_v9 = vadd.f32 %v2446_v26, %v794_v21 }
 0x34a   :  { %v1087_v10 = vmax.f32 %v1013_v7, 0.0  ;;  %v789_v7 = vpop.permute.xlu1 %788 }
 0x34b   :  { %v1086_v5 = vmax.f32 %v1008_v14, 0.0  ;;  %v1386_v31 = vpop.f32.mrb[30].mxu1  ;;  %v933_v14 = vadd.f32 %v2444_v23, %v789_v7 }
 0x34c   :  { %1104 = vst.msk [vmem:[%s2529_s5 + $0x8] sm:$0xff] %vm1102_vm7, %v1087_v10  ;;  %v1023_v33 = vadd.f32 %v1386_v31, %v878_v28  ;;  %v1017_v37 = vpop.f32.mrb[31].mxu1 }
 0x34d   :  { %1103 = vst.msk [vmem:[%s2529_s5] sm:$0xff] %vm1102_vm7, %v1086_v5  ;;  %v1018_v34 = vadd.f32 %v1017_v37, %v873_v32 }
 0x34e   :  { %v1089_v35 = vmax.f32 %v1023_v33, 0.0 }
 0x34f   :  { %v1088_v41 = vmax.f32 %v1018_v34, 0.0  ;;  %v1389_v42 = vpop.f32.mrb[32].mxu1 }
 0x350   :  { %1106 = vst.msk [vmem:[%s2529_s5 + $0x18] sm:$0xff] %vm1102_vm7, %v1089_v35  ;;  %v1033_v48 = vadd.f32 %v1389_v42, %v888_v39  ;;  %v1027_v47 = vpop.f32.mrb[33].mxu1 }
 0x351   :  { %1105 = vst.msk [vmem:[%s2529_s5 + $0x10] sm:$0xff] %vm1102_vm7, %v1088_v41  ;;  %v1028_v45 = vadd.f32 %v1027_v47, %v883_v38 }
 0x352   :  { %v1091_v46 = vmax.f32 %v1033_v48, 0.0 }
 0x353   :  { %v1090_v50 = vmax.f32 %v1028_v45, 0.0  ;;  %v1392_v52 = vpop.f32.mrb[34].mxu1 }
 0x354   :  { %1108 = vst.msk [vmem:[%s2529_s5 + $0x28] sm:$0xff] %vm1102_vm7, %v1091_v46  ;;  %v1043_v59 = vadd.f32 %v1392_v52, %v898_v49  ;;  %v1037_v53 = vpop.f32.mrb[35].mxu1 }
 0x355   :  { %1107 = vst.msk [vmem:[%s2529_s5 + $0x20] sm:$0xff] %vm1102_vm7, %v1090_v50  ;;  %v1038_v56 = vadd.f32 %v1037_v53, %v893_v44 }
 0x356   :  { %v1093_v58 = vmax.f32 %v1043_v59, 0.0 }
 0x357   :  { %v1092_v60 = vmax.f32 %v1038_v56, 0.0  ;;  %v1395_v51 = vpop.f32.mrb[36].mxu1 }
 0x358   :  { %1110 = vst.msk [vmem:[%s2529_s5 + $0x38] sm:$0xff] %vm1102_vm7, %v1093_v58  ;;  %v1053_v63 = vadd.f32 %v1395_v51, %v908_v17  ;;  %v1047_v29 = vpop.f32.mrb[37].mxu1 }
 0x359   :  { %1109 = vst.msk [vmem:[%s2529_s5 + $0x30] sm:$0xff] %vm1102_vm7, %v1092_v60  ;;  %v1048_v11 = vadd.f32 %v1047_v29, %v903_v62 }
 0x35a   :  { %v1095_v12 = vmax.f32 %v1053_v63, 0.0 }
 0x35b   :  { %v1094_v15 = vmax.f32 %v1048_v11, 0.0  ;;  %v1398_v16 = vpop.f32.mrb[38].mxu1 }
 0x35c   :  { %1112 = vst.msk [vmem:[%s2529_s5 + $0x48] sm:$0xff] %vm1102_vm7, %v1095_v12  ;;  %v1063_v20 = vadd.f32 %v1398_v16, %v918_v57  ;;  %v1057_v4 = vpop.f32.mrb[39].mxu1 }
 0x35d   :  { %1111 = vst.msk [vmem:[%s2529_s5 + $0x40] sm:$0xff] %vm1102_vm7, %v1094_v15  ;;  %v1058_v8 = vadd.f32 %v1057_v4, %v913_v55 }
 0x35e   :  { %v1097_v3 = vmax.f32 %v1063_v20, 0.0 }
 0x35f   :  { %v1096_v36 = vmax.f32 %v1058_v8, 0.0  ;;  %v1401_v24 = vpop.f32.mrb[40].mxu1 }
 0x360   :  { %1114 = vst.msk [vmem:[%s2529_s5 + $0x58] sm:$0xff] %vm1102_vm7, %v1097_v3  ;;  %v1073_v25 = vadd.f32 %v1401_v24, %v928_v2  ;;  %v1067_v22 = vpop.f32.mrb[41].mxu1 }
 0x361   :  { %1113 = vst.msk [vmem:[%s2529_s5 + $0x50] sm:$0xff] %vm1102_vm7, %v1096_v36  ;;  %v1068_v27 = vadd.f32 %v1067_v22, %v923_v61 }
 0x362   :  { %v1099_v1 = vmax.f32 %v1073_v25, 0.0 }
 0x363   :  { %v1098_v30 = vmax.f32 %v1068_v27, 0.0  ;;  %v1404_v0 = vpop.f32.mrb[42].mxu1 }
 0x364   :  { %1116 = vst.msk [vmem:[%s2529_s5 + $0x68] sm:$0xff] %vm1102_vm7, %v1099_v1  ;;  %v1083_v6 = vadd.f32 %v1404_v0, %v938_v9  ;;  %v1077_v10 = vpop.f32.mrb[43].mxu1 }
 0x365   :  { %1115 = vst.msk [vmem:[%s2529_s5 + $0x60] sm:$0xff] %vm1102_vm7, %v1098_v30  ;;  %v1078_v28 = vadd.f32 %v1077_v10, %v933_v14 }
 0x366   :  { %v1101_v5 = vmax.f32 %v1083_v6, 0.0 }
 0x367   :  { %v1100_v31 = vmax.f32 %v1078_v28, 0.0 }
 0x368   :  { %1118 = vst.msk [vmem:[%s2529_s5 + $0x78] sm:$0xff] %vm1102_vm7, %v1101_v5 }
 0x369   :  { %1117 = vst.msk [vmem:[%s2529_s5 + $0x70] sm:$0xff] %vm1102_vm7, %v1100_v31 }

// kernel: _lambda_.12
= control target key start
LH: loop header
LB: loop body
LE: loop exit
PB: predicated region body
PF: predicated region fallthrough
CT: control target
= control target key end

     0   :  { %s1315_s9 = smov 1   ;;  %s1316_s26 = smov 127   ;;  %v1317_v26 = vmov 0   ;;  %v68_v35 = vlaneseq  ;;  %vm146_vm0 = vcmask 7168   ;;  %vm211_vm3 = vcmask 121856   ;;  %s1912_s0 = inlined_call_operand.vmem [shape: f32[128,16], index: 0, kind: input, shape index: {}]   ;;  %s1913_s1 = inlined_call_operand.vmem [shape: f32[64,384], index: 1, kind: input, shape index: {}]   ;;  %s1914_s2 = inlined_call_operand.vmem [shape: f32[64,1], index: 2, kind: input, shape index: {}]   ;;  %s1915_s4 = inlined_call_operand.vmem [shape: f32[64,1], index: 4, kind: input, shape index: {}]   ;;  %s1916_s3 = inlined_call_operand.vmem [shape: f32[64,192], index: 3, kind: input, shape index: {}]   ;;  %s1917_s5 = inlined_call_operand.vmem [shape: f32[64,16], index: 5, kind: output, shape index: {}]  }
   0x1   :  { %v1352_v0 = vld [vmem:[%s1912_s0] sm:$0xff]  ;;  %v1357_v1 = vld [vmem:[%s1912_s0 + $0x8] sm:$0xff]  ;;  %v1362_v2 = vld [vmem:[%s1912_s0 + $0x10] sm:$0xff]  ;;  %1273 = vset.pattern.permute.xlu0 %v1317_v26  ;;  %1274 = vset.pattern.permute.xlu1 %v1317_v26  ;;  %vm676_vm6 = vcmask 523264   ;;  %vm814_vm7 = vcmask 130048  }
   0x2   :  { %v1193_v3 = vpack.i.bf16 %v1357_v1, %v1352_v0  ;;  %v1369_v4 = vld [vmem:[%s1912_s0 + $0x18] sm:$0xff]  ;;  %v1374_v5 = vld [vmem:[%s1912_s0 + $0x20] sm:$0xff]  ;;  %v1379_v6 = vld [vmem:[%s1912_s0 + $0x28] sm:$0xff]  ;;  %v1057_v7 = vpack.c.bf16 %v1357_v1, %v1352_v0  ;;  %v1490_v36 = vand.u32 127, %v68_v35 }
   0x3   :  { %v1203_v8 = vpack.i.bf16 %v1379_v6, %v1374_v5  ;;  %v1388_v9 = vld [vmem:[%s1912_s0 + $0x30] sm:$0xff]  ;;  %v1393_v10 = vld [vmem:[%s1912_s0 + $0x38] sm:$0xff]  ;;  %v1198_v11 = vpack.i.bf16 %v1369_v4, %v1362_v2  ;;  %v1404_v13 = vld [vmem:[%s1912_s0 + $0x40] sm:$0xff]  ;;  %v1062_v47 = vpack.c.bf16 %v1369_v4, %v1362_v2  ;;  %v1067_v55 = vpack.c.bf16 %v1379_v6, %v1374_v5 }
   0x4   :  { %1194 = vrot.lane.b32.xlu0 %v1193_v3, %s1315_s9  ;;  %1058 = vmatprep.subr.bf16.mxu1 %v1057_v7  ;;  %v1208_v12 = vpack.i.bf16 %v1393_v10, %v1388_v9  ;;  %v1409_v14 = vld [vmem:[%s1912_s0 + $0x48] sm:$0xff]  ;;  %v1414_v15 = vld [vmem:[%s1912_s0 + $0x50] sm:$0xff]  ;;  %v1419_v16 = vld [vmem:[%s1912_s0 + $0x58] sm:$0xff]  ;;  %v74_v37 = vand.u32 7, %v1490_v36  ;;  %v1072_v63 = vpack.c.bf16 %v1393_v10, %v1388_v9 }
   0x5   :  { %1204 = vrot.lane.b32.xlu1 %v1203_v8, %s1315_s9  ;;  %v1213_v17 = vpack.i.bf16 %v1409_v14, %v1404_v13  ;;  %v1218_v18 = vpack.i.bf16 %v1419_v16, %v1414_v15  ;;  %v1430_v19 = vld [vmem:[%s1912_s0 + $0x60] sm:$0xff]  ;;  %v1435_v20 = vld [vmem:[%s1912_s0 + $0x68] sm:$0xff]  ;;  %v1440_v21 = vld [vmem:[%s1912_s0 + $0x70] sm:$0xff] }
   0x6   :  { %v1445_v22 = vld [vmem:[%s1912_s0 + $0x78] sm:$0xff]  ;;  %v1223_v23 = vpack.i.bf16 %v1435_v20, %v1430_v19  ;;  %v37_v25 = vld [vmem:[%s1913_s1 + $0x8] sm:$0xff]  ;;  %v60_v27 = vld [vmem:[%s1914_s2] sm:$0xff]  ;;  %vm931_vm1 = vcmp.ne.s32.totalorder %v74_v37, 0  ;;  %vm932_vm4 = vcmp.ne.s32.totalorder %v74_v37, 7 }
   0x7   :  { %v1228_v24 = vpack.i.bf16 %v1445_v22, %v1440_v21  ;;  %370 = vmatprep.mubr.f32.mxu1 %v37_v25  ;;  %v61_v28 = vld [vmem:[%s1914_s2 + $0x8] sm:$0xff]  ;;  %v62_v29 = vld [vmem:[%s1914_s2 + $0x10] sm:$0xff]  ;;  %v63_v30 = vld [vmem:[%s1914_s2 + $0x18] sm:$0xff] }
   0x8   :  { %1199 = vrot.lane.b32.xlu0 %v1198_v11, %s1315_s9  ;;  %v64_v31 = vld [vmem:[%s1914_s2 + $0x20] sm:$0xff]  ;;  %v65_v32 = vld [vmem:[%s1914_s2 + $0x28] sm:$0xff]  ;;  %v66_v33 = vld [vmem:[%s1914_s2 + $0x30] sm:$0xff] }
   0x9   :  { %1209 = vrot.lane.b32.xlu1 %v1208_v12, %s1315_s9  ;;  %v67_v34 = vld [vmem:[%s1914_s2 + $0x38] sm:$0xff]  ;;  %vm1499_vm2 = vmpackc.low %vm931_vm1, %vm931_vm1 }
   0xa   :  { %vm1565_vm5 = vmpackc.low %vm932_vm4, %vm932_vm4 }
   0xc   :  { %1214 = vrot.lane.b32.xlu0 %v1213_v17, %s1315_s9 }
   0xd   :  { %1219 = vrot.lane.b32.xlu1 %v1218_v18, %s1315_s9 }
  0x10   :  { %1224 = vrot.lane.b32.xlu0 %v1223_v23, %s1315_s9 }
  0x11   :  { %1229 = vrot.lane.b32.xlu1 %v1228_v24, %s1315_s9 }
  0x14   :  { %1234 = vrot.lane.b32.xlu0 %v1193_v3, %s1316_s26 }
  0x15   :  { %1239 = vrot.lane.b32.xlu1 %v1198_v11, %s1316_s26 }
  0x18   :  { %1244 = vrot.lane.b32.xlu0 %v1203_v8, %s1316_s26 }
  0x19   :  { %1249 = vrot.lane.b32.xlu1 %v1208_v12, %s1316_s26 }
  0x1c   :  { %1254 = vrot.lane.b32.xlu0 %v1213_v17, %s1316_s26 }
  0x1d   :  { %1259 = vrot.lane.b32.xlu1 %v1218_v18, %s1316_s26  ;;  %v1077_v18 = vpack.c.bf16 %v1409_v14, %v1404_v13 }
  0x20   :  { %1264 = vrot.lane.b32.xlu0 %v1223_v23, %s1316_s26 }
  0x21   :  { %1269 = vrot.lane.b32.xlu1 %v1228_v24, %s1316_s26 }
  0x24   :  { %268 = vperm.xlu0 %1273, %v60_v27  }
  0x25   :  { %273 = vperm.xlu1 %1274, %v61_v28  }
  0x28   :  { %283 = vperm.xlu0 %1273, %v63_v30  }
  0x29   :  { %278 = vperm.xlu1 %1274, %v62_v29   ;;  %v1082_v29 = vpack.c.bf16 %v1419_v16, %v1414_v15 }
  0x2c   :  { %293 = vperm.xlu0 %1273, %v65_v32  }
  0x2d   :  { %288 = vperm.xlu1 %1274, %v64_v31  }
  0x30   :  { %303 = vperm.xlu0 %1273, %v67_v34  }
  0x31   :  { %298 = vperm.xlu1 %1274, %v66_v33  }
  0x76   :  { %v1195_v38 = vpop.permute.xlu0 %1194 }
  0x77   :  { %v1197_v39 = vunpack.i.h.bf16 %v1195_v38  ;;  %v1196_v40 = vunpack.i.l.bf16 %v1195_v38  ;;  %v1205_v41 = vpop.permute.xlu1 %1204 }
  0x78   :  { %v1207_v42 = vunpack.i.h.bf16 %v1205_v41  ;;  %v1206_v43 = vunpack.i.l.bf16 %v1205_v41 }
  0x79   :  { %v147_v44 = vsel %vm146_vm0, %v1352_v0, %v1196_v40  ;;  %v148_v45 = vsel %vm146_vm0, %v1357_v1, %v1197_v39  ;;  %v1087_v39 = vpack.c.bf16 %v1435_v20, %v1430_v19 }
  0x7a   :  { %v1200_v48 = vpop.permute.xlu0 %1199  ;;  %v1059_v49 = vpack.c.bf16 %v148_v45, %v147_v44  ;;  %v152_v53 = vsel %vm146_vm0, %v1379_v6, %v1207_v42  ;;  %v151_v54 = vsel %vm146_vm0, %v1374_v5, %v1206_v43 }
  0x7b   :  { %v1202_v50 = vunpack.i.h.bf16 %v1200_v48  ;;  %v1201_v51 = vunpack.i.l.bf16 %v1200_v48  ;;  %v1210_v52 = vpop.permute.xlu1 %1209  ;;  %v1069_v62 = vpack.c.bf16 %v152_v53, %v151_v54 }
  0x7c   :  { %1061 = vmatpush3.bf16.msk.msra.mxu1 %vm1499_vm2, %v1059_v49  ;;  %v1212_v58 = vunpack.i.h.bf16 %v1210_v52  ;;  %v1211_v59 = vunpack.i.l.bf16 %v1210_v52 }
  0x7d   :  { %v150_v56 = vsel %vm146_vm0, %v1369_v4, %v1202_v50  ;;  %v149_v57 = vsel %vm146_vm0, %v1362_v2, %v1201_v51  ;;  %1063 = vmatprep.subr.bf16.mxu1 %v1062_v47  ;;  %v1092_v51 = vpack.c.bf16 %v1445_v22, %v1440_v21 }
  0x7e   :  { %v1064_v60 = vpack.c.bf16 %v150_v56, %v149_v57  ;;  %v1215_v61 = vpop.permute.xlu0 %1214  ;;  %v154_v3 = vsel %vm146_vm0, %v1393_v10, %v1212_v58  ;;  %v153_v7 = vsel %vm146_vm0, %v1388_v9, %v1211_v59  ;;  %v529_v59 = vld [vmem:[%s1916_s3 + $0x28] sm:$0xff] }
  0x7f   :  { %v1217_v8 = vunpack.i.h.bf16 %v1215_v61  ;;  %v1216_v11 = vunpack.i.l.bf16 %v1215_v61  ;;  %v1220_v12 = vpop.permute.xlu1 %1219  ;;  %v1074_v17 = vpack.c.bf16 %v154_v3, %v153_v7  ;;  %v36_v61 = vld [vmem:[%s1913_s1] sm:$0xff] }
  0x80   :  { %1066 = vmatpush3.bf16.msk.msra.mxu1 %vm1499_vm2, %v1064_v60  ;;  %v1222_v25 = vunpack.i.h.bf16 %v1220_v12  ;;  %v1221_v26 = vunpack.i.l.bf16 %v1220_v12 }
  0x81   :  { %1068 = vmatprep.subr.bf16.mxu1 %v1067_v55  ;;  %v156_v23 = vsel %vm146_vm0, %v1409_v14, %v1217_v8  ;;  %v155_v24 = vsel %vm146_vm0, %v1404_v13, %v1216_v11  ;;  %v39_v11 = vld [vmem:[%s1913_s1 + $0x18] sm:$0xff] }
  0x82   :  { %v1225_v27 = vpop.permute.xlu0 %1224  ;;  %v1079_v28 = vpack.c.bf16 %v156_v23, %v155_v24  ;;  %v158_v30 = vsel %vm146_vm0, %v1419_v16, %v1222_v25  ;;  %v157_v31 = vsel %vm146_vm0, %v1414_v15, %v1221_v26  ;;  %v42_v25 = vld [vmem:[%s1913_s1 + $0x30] sm:$0xff] }
  0x83   :  { %v1227_v32 = vunpack.i.h.bf16 %v1225_v27  ;;  %v1226_v33 = vunpack.i.l.bf16 %v1225_v27  ;;  %v1230_v34 = vpop.permute.xlu1 %1229  ;;  %v1084_v38 = vpack.c.bf16 %v158_v30, %v157_v31  ;;  %v45_v31 = vld [vmem:[%s1913_s1 + $0x48] sm:$0xff] }
  0x84   :  { %1071 = vmatpush3.bf16.msk.msra.mxu1 %vm1499_vm2, %v1069_v62  ;;  %v1232_v42 = vunpack.i.h.bf16 %v1230_v34  ;;  %v1231_v43 = vunpack.i.l.bf16 %v1230_v34 }
  0x85   :  { %1073 = vmatprep.subr.bf16.mxu1 %v1072_v63  ;;  %v160_v40 = vsel %vm146_vm0, %v1435_v20, %v1227_v32  ;;  %v159_v41 = vsel %vm146_vm0, %v1430_v19, %v1226_v33 }
  0x86   :  { %v1235_v35 = vpop.permute.xlu0 %1234  ;;  %v1089_v48 = vpack.c.bf16 %v160_v40, %v159_v41  ;;  %v162_v49 = vsel %vm146_vm0, %v1445_v22, %v1232_v42  ;;  %v161_v50 = vsel %vm146_vm0, %v1440_v21, %v1231_v43 }
  0x87   :  { %v1237_v44 = vunpack.i.h.bf16 %v1235_v35  ;;  %v1236_v45 = vunpack.i.l.bf16 %v1235_v35  ;;  %v1240_v47 = vpop.permute.xlu1 %1239  ;;  %v1094_v57 = vpack.c.bf16 %v162_v49, %v161_v50  ;;  %v38_v50 = vld [vmem:[%s1913_s1 + $0x10] sm:$0xff] }
  0x88   :  { %1076 = vmatpush3.bf16.msk.msra.mxu1 %vm1499_vm2, %v1074_v17  ;;  %v1242_v54 = vunpack.i.h.bf16 %v1240_v47  ;;  %v1241_v55 = vunpack.i.l.bf16 %v1240_v47 }
  0x89   :  { %1078 = vmatprep.subr.bf16.mxu1 %v1077_v18  ;;  %v213_v52 = vsel %vm211_vm3, %v1237_v44, %v1357_v1  ;;  %v212_v53 = vsel %vm211_vm3, %v1236_v45, %v1352_v0  ;;  %v51_v44 = vld [vmem:[%s1913_s1 + $0x78] sm:$0xff] }
  0x8a   :  { %v1245_v56 = vpop.permute.xlu0 %1244  ;;  %v1097_v58 = vpack.c.bf16 %v213_v52, %v212_v53  ;;  %v215_v1 = vsel %vm211_vm3, %v1242_v54, %v1369_v4  ;;  %v214_v0 = vsel %vm211_vm3, %v1241_v55, %v1362_v2  ;;  %v40_v4 = vld [vmem:[%s1913_s1 + $0x20] sm:$0xff]  ;;  %v47_v53 = vld [vmem:[%s1913_s1 + $0x58] sm:$0xff]  ;;  %v50_v54 = vld [vmem:[%s1913_s1 + $0x70] sm:$0xff] }
  0x8b   :  { %v1247_v60 = vunpack.i.h.bf16 %v1245_v56  ;;  %v1246_v36 = vunpack.i.l.bf16 %v1245_v56  ;;  %v1250_v37 = vpop.permute.xlu1 %1249  ;;  %v1103_v62 = vpack.c.bf16 %v215_v1, %v214_v0  ;;  %v44_v52 = vld [vmem:[%s1913_s1 + $0x40] sm:$0xff]  ;;  %v53_v55 = vld [vmem:[%s1913_s1 + $0x88] sm:$0xff] }
  0x8c   :  { %1081 = vmatpush3.bf16.msk.msra.mxu1 %vm1499_vm2, %v1079_v28  ;;  %v1252_v3 = vunpack.i.h.bf16 %v1250_v37  ;;  %v1251_v7 = vunpack.i.l.bf16 %v1250_v37  ;;  %v56_v56 = vld [vmem:[%s1913_s1 + $0xa0] sm:$0xff] }
  0x8d   :  { %1083 = vmatprep.subr.bf16.mxu1 %v1082_v29  ;;  %v217_v2 = vsel %vm211_vm3, %v1247_v60, %v1379_v6  ;;  %v216_v63 = vsel %vm211_vm3, %v1246_v36, %v1374_v5  ;;  %v43_v5 = vld [vmem:[%s1913_s1 + $0x38] sm:$0xff] }
  0x8e   :  { %v1255_v8 = vpop.permute.xlu0 %1254  ;;  %v1109_v12 = vpack.c.bf16 %v217_v2, %v216_v63  ;;  %v219_v6 = vsel %vm211_vm3, %v1252_v3, %v1393_v10  ;;  %v218_v17 = vsel %vm211_vm3, %v1251_v7, %v1388_v9  ;;  %v46_v9 = vld [vmem:[%s1913_s1 + $0x50] sm:$0xff] }
  0x8f   :  { %v1257_v18 = vunpack.i.h.bf16 %v1255_v8  ;;  %v1256_v23 = vunpack.i.l.bf16 %v1255_v8  ;;  %v1260_v24 = vpop.permute.xlu1 %1259  ;;  %v1115_v26 = vpack.c.bf16 %v219_v6, %v218_v17 }
  0x90   :  { %1086 = vmatpush3.bf16.msk.msra.mxu1 %vm1499_vm2, %v1084_v38  ;;  %v1262_v28 = vunpack.i.h.bf16 %v1260_v24  ;;  %v1261_v29 = vunpack.i.l.bf16 %v1260_v24 }
  0x91   :  { %1088 = vmatprep.subr.bf16.mxu1 %v1087_v39  ;;  %v221_v10 = vsel %vm211_vm3, %v1257_v18, %v1409_v14  ;;  %v220_v27 = vsel %vm211_vm3, %v1256_v23, %v1404_v13  ;;  %v49_v13 = vld [vmem:[%s1913_s1 + $0x68] sm:$0xff]  ;;  %v48_v39 = vld [vmem:[%s1913_s1 + $0x60] sm:$0xff] }
  0x92   :  { %v1265_v30 = vpop.permute.xlu0 %1264  ;;  %v1121_v32 = vpack.c.bf16 %v221_v10, %v220_v27  ;;  %v223_v14 = vsel %vm211_vm3, %v1262_v28, %v1419_v16  ;;  %v222_v33 = vsel %vm211_vm3, %v1261_v29, %v1414_v15  ;;  %v52_v15 = vld [vmem:[%s1913_s1 + $0x80] sm:$0xff]  ;;  %v1318_v28 = vmov 0.0|0.0  }
  0x93   :  { %v1267_v34 = vunpack.i.h.bf16 %v1265_v30  ;;  %v1266_v35 = vunpack.i.l.bf16 %v1265_v30  ;;  %v1270_v38 = vpop.permute.xlu1 %1269  ;;  %v1127_v40 = vpack.c.bf16 %v223_v14, %v222_v33  ;;  %1145 = vmatprep.subr.bf16.mxu0 %v1318_v28 }
  0x94   :  { %1091 = vmatpush3.bf16.msk.msra.mxu1 %vm1499_vm2, %v1089_v48  ;;  %v1272_v42 = vunpack.i.h.bf16 %v1270_v38  ;;  %v1271_v43 = vunpack.i.l.bf16 %v1270_v38  ;;  %v54_v48 = vld [vmem:[%s1913_s1 + $0x90] sm:$0xff] }
  0x95   :  { %1093 = vmatprep.subr.bf16.mxu1 %v1092_v51  ;;  %v225_v16 = vsel %vm211_vm3, %v1267_v34, %v1435_v20  ;;  %v224_v41 = vsel %vm211_vm3, %v1266_v35, %v1430_v19  ;;  %v55_v20 = vld [vmem:[%s1913_s1 + $0x98] sm:$0xff]  ;;  %v41_v51 = vld [vmem:[%s1913_s1 + $0x28] sm:$0xff] }
  0x96   :  { %v1133_v45 = vpack.c.bf16 %v225_v16, %v224_v41  ;;  %v227_v19 = vsel %vm211_vm3, %v1272_v42, %v1445_v22  ;;  %v226_v47 = vsel %vm211_vm3, %v1271_v43, %v1440_v21  ;;  %v58_v22 = vld [vmem:[%s1913_s1 + $0xb0] sm:$0xff]  ;;  %v57_v21 = vld [vmem:[%s1913_s1 + $0xa8] sm:$0xff] }
  0x97   :  { %v1139_v49 = vpack.c.bf16 %v227_v19, %v226_v47 }
  0x98   :  { %1096 = vmatpush3.bf16.msk.msra.mxu1 %vm1499_vm2, %v1094_v57  ;;  %v59_v57 = vld [vmem:[%s1913_s1 + $0xb8] sm:$0xff] }
  0x99   :  { %1099 = vmatprep.subr.msk.bf16.mxu1 %vm1565_vm5, %v1097_v58 }
  0x9b   :  { %371 = vmatmul.mubr.f32.vlgmr.msra.gmra.mrb[0].mxu1 %v36_v61 }
  0x9c   :  { %1102 = vmatpush3.bf16.msk.msra.mxu1 %vm1565_vm5, %v1097_v58  ;;  %375 = vmatprep.mubr.f32.mxu1 %v40_v4 }
  0x9d   :  { %1105 = vmatprep.subr.msk.bf16.mxu1 %vm1565_vm5, %v1103_v62 }
  0x9f   :  { %376 = vmatmul.mubr.f32.gmra.mrb[2].mxu1 %v39_v11 }
  0xa0   :  { %1108 = vmatpush3.bf16.msk.msra.mxu1 %vm1565_vm5, %v1103_v62  ;;  %380 = vmatprep.mubr.f32.mxu1 %v43_v5 }
  0xa1   :  { %1111 = vmatprep.subr.msk.bf16.mxu1 %vm1565_vm5, %v1109_v12 }
  0xa3   :  { %381 = vmatmul.mubr.f32.gmra.mrb[4].mxu1 %v42_v25  ;;  %v269_v25 = vpop.permute.xlu0 %268 }
  0xa4   :  { %1114 = vmatpush3.bf16.msk.msra.mxu1 %vm1565_vm5, %v1109_v12  ;;  %385 = vmatprep.mubr.f32.mxu1 %v46_v9  ;;  %v274_v24 = vpop.permute.xlu1 %273 }
  0xa5   :  { %1117 = vmatprep.subr.msk.bf16.mxu1 %vm1565_vm5, %v1115_v26 }
  0xa7   :  { %386 = vmatmul.mubr.f32.gmra.mrb[6].mxu1 %v45_v31  ;;  %v284_v30 = vpop.permute.xlu0 %283 }
  0xa8   :  { %1120 = vmatpush3.bf16.msk.msra.mxu1 %vm1565_vm5, %v1115_v26  ;;  %390 = vmatprep.mubr.f32.mxu1 %v49_v13 }
  0xa9   :  { %1123 = vmatprep.subr.msk.bf16.mxu1 %vm1565_vm5, %v1121_v32 }
  0xab   :  { %391 = vmatmul.mubr.f32.gmra.mrb[8].mxu1 %v48_v39  ;;  %v294_v39 = vpop.permute.xlu0 %293 }
  0xac   :  { %1126 = vmatpush3.bf16.msk.msra.mxu1 %vm1565_vm5, %v1121_v32  ;;  %395 = vmatprep.mubr.f32.mxu1 %v52_v15  ;;  %v279_v32 = vpop.permute.xlu1 %278 }
  0xad   :  { %1129 = vmatprep.subr.msk.bf16.mxu1 %vm1565_vm5, %v1127_v40 }
  0xaf   :  { %396 = vmatmul.mubr.f32.gmra.mrb[10].mxu1 %v51_v44  ;;  %v304_v47 = vpop.permute.xlu0 %303 }
  0xb0   :  { %1132 = vmatpush3.bf16.msk.msra.mxu1 %vm1565_vm5, %v1127_v40  ;;  %400 = vmatprep.mubr.f32.mxu1 %v55_v20  ;;  %v289_v16 = vpop.permute.xlu1 %288 }
  0xb1   :  { %1135 = vmatprep.subr.msk.bf16.mxu1 %vm1565_vm5, %v1133_v45 }
  0xb3   :  { %401 = vmatmul.mubr.f32.gmra.mrb[12].mxu1 %v54_v48 }
  0xb4   :  { %1138 = vmatpush3.bf16.msk.msra.mxu1 %vm1565_vm5, %v1133_v45  ;;  %405 = vmatprep.mubr.f32.mxu1 %v58_v22  ;;  %v299_v22 = vpop.permute.xlu1 %298 }
  0xb5   :  { %1141 = vmatprep.subr.msk.bf16.mxu1 %vm1565_vm5, %v1139_v49 }
  0xb7   :  { %406 = vmatmul.mubr.f32.gmra.mrb[14].mxu1 %v57_v21 }
  0xb8   :  { %1144 = vmatpush3.bf16.msk.msra.mxu1 %vm1565_vm5, %v1139_v49  ;;  %1045 = vmatprep.mubr.f32.mxu1 %v38_v50 }
  0xbb   :  { %1046 = vmatmul.mubr.f32.vlgmr.msra.gmra.mrb[16].mxu1 %v41_v51 }
  0xbc   :  { %1048 = vmatprep.mubr.f32.mxu1 %v44_v52 }
  0xbf   :  { %1049 = vmatmul.mubr.f32.gmra.mrb[18].mxu1 %v47_v53 }
  0xc0   :  { %1051 = vmatprep.mubr.f32.mxu1 %v50_v54 }
  0xc3   :  { %1052 = vmatmul.mubr.f32.gmra.mrb[20].mxu1 %v53_v55 }
  0xc4   :  { %1054 = vmatprep.mubr.f32.mxu1 %v56_v56 }
  0xc7   :  { %1055 = vmatmul.mubr.f32.gmra.mrb[22].mxu1 %v59_v57 }
 0x16e   :  { %v965_v58 = vpop.f32.mrb[0].mxu1 }
 0x16f   :  { %v966_v1 = vpop.f32.mrb[1].mxu1 }
 0x170   :  { %v967_v0 = vadd.f32 %v966_v1, %v965_v58 }
 0x172   :  { %v968_v60 = vpop.f32.mrb[2].mxu1  ;;  %v373_v29 = vadd.f32 %v967_v0, %v269_v25 }
 0x173   :  { %v969_v36 = vpop.f32.mrb[3].mxu1 }
 0x174   :  { %v970_v37 = vadd.f32 %v969_v36, %v968_v60 }
 0x176   :  { %v971_v61 = vpop.f32.mrb[4].mxu1  ;;  %v378_v27 = vadd.f32 %v970_v37, %v274_v24 }
 0x177   :  { %v972_v62 = vpop.f32.mrb[5].mxu1 }
 0x178   :  { %v973_v4 = vadd.f32 %v972_v62, %v971_v61  ;;  %v540_v62 = vld [vmem:[%s1915_s4] sm:$0xff] }
 0x17a   :  { %v974_v2 = vpop.f32.mrb[6].mxu1  ;;  %v383_v38 = vadd.f32 %v973_v4, %v279_v32  ;;  %v541_v4 = vld [vmem:[%s1915_s4 + $0x8] sm:$0xff] }
 0x17b   :  { %v975_v63 = vpop.f32.mrb[7].mxu1 }
 0x17c   :  { %v976_v3 = vadd.f32 %v975_v63, %v974_v2  ;;  %v542_v2 = vld [vmem:[%s1915_s4 + $0x10] sm:$0xff]  ;;  %v543_v63 = vld [vmem:[%s1915_s4 + $0x18] sm:$0xff] }
 0x17e   :  { %v977_v7 = vpop.f32.mrb[8].mxu1  ;;  %v388_v34 = vadd.f32 %v976_v3, %v284_v30  ;;  %v544_v3 = vld [vmem:[%s1915_s4 + $0x20] sm:$0xff] }
 0x17f   :  { %v978_v8 = vpop.f32.mrb[9].mxu1 }
 0x180   :  { %v979_v11 = vadd.f32 %v978_v8, %v977_v7  ;;  %v545_v7 = vld [vmem:[%s1915_s4 + $0x28] sm:$0xff]  ;;  %v546_v8 = vld [vmem:[%s1915_s4 + $0x30] sm:$0xff] }
 0x182   :  { %v980_v12 = vpop.f32.mrb[10].mxu1  ;;  %v393_v19 = vadd.f32 %v979_v11, %v289_v16  ;;  %v547_v11 = vld [vmem:[%s1915_s4 + $0x38] sm:$0xff] }
 0x183   :  { %v981_v5 = vpop.f32.mrb[11].mxu1 }
 0x184   :  { %v982_v6 = vadd.f32 %v981_v5, %v980_v12  ;;  %v525_v12 = vld [vmem:[%s1916_s3 + $0x8] sm:$0xff] }
 0x185   :  { %923 = vmatprep.mubr.msk.f32.mxu0 %vm676_vm6, %v525_v12  ;;  %v537_v12 = vld [vmem:[%s1916_s3 + $0x68] sm:$0xff] }
 0x186   :  { %v983_v17 = vpop.f32.mrb[12].mxu1  ;;  %v398_v45 = vadd.f32 %v982_v6, %v294_v39 }
 0x187   :  { %v984_v18 = vpop.f32.mrb[13].mxu1 }
 0x188   :  { %v985_v23 = vadd.f32 %v984_v18, %v983_v17 }
 0x18a   :  { %v986_v26 = vpop.f32.mrb[14].mxu1  ;;  %v403_v55 = vadd.f32 %v985_v23, %v299_v22 }
 0x18b   :  { %v987_v9 = vpop.f32.mrb[15].mxu1 }
 0x18c   :  { %v988_v10 = vadd.f32 %v987_v9, %v986_v26 }
 0x18e   :  { %v1047_v31 = vpop.f32.mrb[16].mxu1  ;;  %v408_v53 = vadd.f32 %v988_v10, %v304_v47 }
 0x18f   :  { %v483_v13 = vadd.f32 %v1047_v31, %v378_v27  ;;  %v477_v14 = vpop.f32.mrb[17].mxu1 }
 0x190   :  { %v478_v33 = vadd.f32 %v477_v14, %v373_v29 }
 0x191   :  { %v1701_v35 = vmax.f32 %v483_v13, 0.0 }
 0x192   :  { %v1703_v40 = vmax.f32 %v478_v33, 0.0  ;;  %v1050_v15 = vpop.f32.mrb[18].mxu1 }
 0x193   :  { %v493_v41 = vadd.f32 %v1050_v15, %v388_v34  ;;  %v487_v42 = vpop.f32.mrb[19].mxu1 }
 0x194   :  { %v488_v43 = vadd.f32 %v487_v42, %v383_v38  ;;  %v1275_v44 = vpack.i.bf16 %v1701_v35, %v1703_v40  ;;  %v1162_v42 = vpack.c.bf16 %v1701_v35, %v1703_v40 }
 0x195   :  { %v1707_v20 = vmax.f32 %v493_v41, 0.0 }
 0x196   :  { %v1709_v48 = vmax.f32 %v488_v43, 0.0  ;;  %v1053_v49 = vpop.f32.mrb[20].mxu1  ;;  %1276 = vrot.lane.b32.xlu1 %v1275_v44, %s1315_s9 }
 0x197   :  { %v503_v21 = vadd.f32 %v1053_v49, %v398_v45  ;;  %v497_v50 = vpop.f32.mrb[21].mxu1 }
 0x198   :  { %v498_v51 = vadd.f32 %v497_v50, %v393_v19  ;;  %v1280_v52 = vpack.i.bf16 %v1707_v20, %v1709_v48  ;;  %v1165_v43 = vpack.c.bf16 %v1707_v20, %v1709_v48 }
 0x199   :  { %v1714_v54 = vmax.f32 %v503_v21, 0.0 }
 0x19a   :  { %v1716_v56 = vmax.f32 %v498_v51, 0.0  ;;  %v1056_v57 = vpop.f32.mrb[22].mxu1  ;;  %1281 = vrot.lane.b32.xlu0 %v1280_v52, %s1315_s9 }
 0x19b   :  { %v513_v58 = vadd.f32 %v1056_v57, %v408_v53  ;;  %v507_v1 = vpop.f32.mrb[23].mxu1 }
 0x19c   :  { %v508_v0 = vadd.f32 %v507_v1, %v403_v55  ;;  %v1285_v60 = vpack.i.bf16 %v1714_v54, %v1716_v56  ;;  %v1168_v45 = vpack.c.bf16 %v1714_v54, %v1716_v56 }
 0x19d   :  { %v1721_v36 = vmax.f32 %v513_v58, 0.0 }
 0x19e   :  { %v1723_v37 = vmax.f32 %v508_v0, 0.0  ;;  %1286 = vrot.lane.b32.xlu1 %v1285_v60, %s1315_s9 }
 0x1a0   :  { %v1290_v61 = vpack.i.bf16 %v1721_v36, %v1723_v37  ;;  %v1171_v49 = vpack.c.bf16 %v1721_v36, %v1723_v37 }
 0x1a2   :  { %1291 = vrot.lane.b32.xlu0 %v1290_v61, %s1315_s9  ;;  %1296 = vrot.lane.b32.xlu1 %v1275_v44, %s1316_s26 }
 0x1a6   :  { %1301 = vrot.lane.b32.xlu0 %v1280_v52, %s1316_s26  ;;  %1306 = vrot.lane.b32.xlu1 %v1285_v60, %s1316_s26 }
 0x1aa   :  { %1311 = vrot.lane.b32.xlu0 %v1290_v61, %s1316_s26  ;;  %638 = vperm.xlu1 %1274, %v540_v62  }
 0x1ae   :  { %643 = vperm.xlu0 %1273, %v541_v4   ;;  %648 = vperm.xlu1 %1274, %v542_v2   ;;  %v531_v2 = vld [vmem:[%s1916_s3 + $0x38] sm:$0xff] }
 0x1b2   :  { %653 = vperm.xlu0 %1273, %v543_v63   ;;  %658 = vperm.xlu1 %1274, %v544_v3   ;;  %v530_v63 = vld [vmem:[%s1916_s3 + $0x30] sm:$0xff]  ;;  %v533_v3 = vld [vmem:[%s1916_s3 + $0x48] sm:$0xff] }
 0x1b6   :  { %663 = vperm.xlu0 %1273, %v545_v7   ;;  %668 = vperm.xlu1 %1274, %v546_v8   ;;  %v532_v7 = vld [vmem:[%s1916_s3 + $0x40] sm:$0xff]  ;;  %v535_v8 = vld [vmem:[%s1916_s3 + $0x58] sm:$0xff] }
 0x1ba   :  { %673 = vperm.xlu0 %1273, %v547_v11   ;;  %v534_v11 = vld [vmem:[%s1916_s3 + $0x50] sm:$0xff] }
 0x208   :  { %v1277_v5 = vpop.permute.xlu1 %1276 }
 0x209   :  { %v1279_v6 = vunpack.i.h.bf16 %v1277_v5  ;;  %v1278_v17 = vunpack.i.l.bf16 %v1277_v5  ;;  %v536_v5 = vld [vmem:[%s1916_s3 + $0x60] sm:$0xff] }
 0x20b   :  { %v580_v18 = vsel %vm146_vm0, %v1703_v40, %v1278_v17  ;;  %v581_v23 = vsel %vm146_vm0, %v1701_v35, %v1279_v6  ;;  %v539_v6 = vld [vmem:[%s1916_s3 + $0x78] sm:$0xff]  ;;  %v538_v17 = vld [vmem:[%s1916_s3 + $0x70] sm:$0xff] }
 0x20c   :  { %v1282_v24 = vpop.permute.xlu0 %1281  ;;  %v1146_v25 = vpack.c.bf16 %v581_v23, %v580_v18 }
 0x20d   :  { %v1284_v26 = vunpack.i.h.bf16 %v1282_v24  ;;  %v1283_v9 = vunpack.i.l.bf16 %v1282_v24 }
 0x20e   :  { %1148 = vmatpush1.bf16.msk.msra.mxu0 %vm1499_vm2, %v1146_v25 }
 0x20f   :  { %v583_v10 = vsel %vm146_vm0, %v1707_v20, %v1284_v26  ;;  %v582_v27 = vsel %vm146_vm0, %v1709_v48, %v1283_v9  ;;  %1149 = vmatprep.subr.bf16.mxu0 %v1318_v28 }
 0x210   :  { %v1150_v29 = vpack.c.bf16 %v583_v10, %v582_v27  ;;  %v1287_v30 = vpop.permute.xlu1 %1286 }
 0x211   :  { %v1289_v31 = vunpack.i.h.bf16 %v1287_v30  ;;  %v1288_v32 = vunpack.i.l.bf16 %v1287_v30 }
 0x212   :  { %1152 = vmatpush1.bf16.msk.msra.mxu0 %vm1499_vm2, %v1150_v29 }
 0x213   :  { %v585_v13 = vsel %vm146_vm0, %v1714_v54, %v1289_v31  ;;  %v584_v14 = vsel %vm146_vm0, %v1716_v56, %v1288_v32  ;;  %1153 = vmatprep.subr.bf16.mxu0 %v1318_v28 }
 0x214   :  { %v1154_v33 = vpack.c.bf16 %v585_v13, %v584_v14  ;;  %v1292_v34 = vpop.permute.xlu0 %1291  ;;  %v1297_v44 = vpop.permute.xlu1 %1296 }
 0x215   :  { %v1294_v38 = vunpack.i.h.bf16 %v1292_v34  ;;  %v1293_v39 = vunpack.i.l.bf16 %v1292_v34  ;;  %v1299_v46 = vunpack.i.h.bf16 %v1297_v44  ;;  %v1298_v19 = vunpack.i.l.bf16 %v1297_v44 }
 0x216   :  { %1156 = vmatpush1.bf16.msk.msra.mxu0 %vm1499_vm2, %v1154_v33 }
 0x217   :  { %v587_v15 = vsel %vm146_vm0, %v1721_v36, %v1294_v38  ;;  %v586_v16 = vsel %vm146_vm0, %v1723_v37, %v1293_v39  ;;  %1157 = vmatprep.subr.bf16.mxu0 %v1318_v28  ;;  %v613_v22 = vsel %vm211_vm3, %v1299_v46, %v1701_v35  ;;  %v612_v21 = vsel %vm211_vm3, %v1298_v19, %v1703_v40 }
 0x218   :  { %v1158_v41 = vpack.c.bf16 %v587_v15, %v586_v16  ;;  %v1302_v47 = vpop.permute.xlu0 %1301  ;;  %v1307_v52 = vpop.permute.xlu1 %1306  ;;  %v1174_v53 = vpack.c.bf16 %v613_v22, %v612_v21 }
 0x219   :  { %v1304_v50 = vunpack.i.h.bf16 %v1302_v47  ;;  %v1303_v51 = vunpack.i.l.bf16 %v1302_v47  ;;  %v1309_v58 = vunpack.i.h.bf16 %v1307_v52  ;;  %v1308_v1 = vunpack.i.l.bf16 %v1307_v52 }
 0x21a   :  { %1160 = vmatpush1.bf16.msk.msra.mxu0 %vm1499_vm2, %v1158_v41 }
 0x21b   :  { %1161 = vmatprep.subr.bf16.mxu0 %v1318_v28  ;;  %v615_v55 = vsel %vm211_vm3, %v1304_v50, %v1707_v20  ;;  %v614_v57 = vsel %vm211_vm3, %v1303_v51, %v1709_v48  ;;  %v617_v40 = vsel %vm211_vm3, %v1309_v58, %v1714_v54  ;;  %v616_v60 = vsel %vm211_vm3, %v1308_v1, %v1716_v56  ;;  %v524_v56 = vld [vmem:[%s1916_s3] sm:$0xff] }
 0x21c   :  { %v1312_v0 = vpop.permute.xlu0 %1311  ;;  %v1178_v35 = vpack.c.bf16 %v615_v55, %v614_v57  ;;  %v1182_v48 = vpack.c.bf16 %v617_v40, %v616_v60 }
 0x21d   :  { %v1314_v61 = vunpack.i.h.bf16 %v1312_v0  ;;  %v1313_v20 = vunpack.i.l.bf16 %v1312_v0 }
 0x21e   :  { %1163 = vmatpush1.bf16.msra.mxu0 %v1162_v42 }
 0x21f   :  { %1164 = vmatprep.subr.bf16.mxu0 %v1318_v28  ;;  %v619_v62 = vsel %vm211_vm3, %v1314_v61, %v1721_v36  ;;  %v618_v4 = vsel %vm211_vm3, %v1313_v20, %v1723_v37  ;;  %v527_v36 = vld [vmem:[%s1916_s3 + $0x18] sm:$0xff]  ;;  %v526_v37 = vld [vmem:[%s1916_s3 + $0x10] sm:$0xff] }
 0x220   :  { %v1186_v54 = vpack.c.bf16 %v619_v62, %v618_v4 }
 0x222   :  { %1166 = vmatpush1.bf16.msra.mxu0 %v1165_v43 }
 0x223   :  { %1167 = vmatprep.subr.bf16.mxu0 %v1318_v28 }
 0x226   :  { %1169 = vmatpush1.bf16.msra.mxu0 %v1168_v45 }
 0x227   :  { %1170 = vmatprep.subr.bf16.mxu0 %v1318_v28 }
 0x229   :  { %v639_v18 = vpop.permute.xlu1 %638 }
 0x22a   :  { %1172 = vmatpush1.bf16.msra.mxu0 %v1171_v49 }
 0x22b   :  { %1173 = vmatprep.subr.bf16.mxu0 %v1318_v28 }
 0x22d   :  { %v644_v9 = vpop.permute.xlu0 %643  ;;  %v649_v31 = vpop.permute.xlu1 %648 }
 0x22e   :  { %1176 = vmatpush1.bf16.msk.msra.mxu0 %vm1565_vm5, %v1174_v53 }
 0x22f   :  { %1177 = vmatprep.subr.bf16.mxu0 %v1318_v28 }
 0x231   :  { %v654_v34 = vpop.permute.xlu0 %653  ;;  %v659_v41 = vpop.permute.xlu1 %658 }
 0x232   :  { %1180 = vmatpush1.bf16.msk.msra.mxu0 %vm1565_vm5, %v1178_v35 }
 0x233   :  { %1181 = vmatprep.subr.bf16.mxu0 %v1318_v28 }
 0x235   :  { %v664_v46 = vpop.permute.xlu0 %663  ;;  %v669_v21 = vpop.permute.xlu1 %668 }
 0x236   :  { %1184 = vmatpush1.bf16.msk.msra.mxu0 %vm1565_vm5, %v1182_v48 }
 0x237   :  { %1185 = vmatprep.subr.bf16.mxu0 %v1318_v28  ;;  %v528_v28 = vld [vmem:[%s1916_s3 + $0x20] sm:$0xff] }
 0x239   :  { %v674_v55 = vpop.permute.xlu0 %673 }
 0x23a   :  { %1188 = vmatpush1.bf16.msk.msra.mxu0 %vm1565_vm5, %v1186_v54 }
 0x23d   :  { %766 = vmatmul.mubr.f32.vlgmr.msra.gmra.mrb[0].mxu0 %v524_v56 }
 0x23e   :  { %924 = vmatprep.mubr.msk.f32.mxu0 %vm676_vm6, %v527_v36 }
 0x241   :  { %771 = vmatmul.mubr.f32.gmra.mrb[2].mxu0 %v526_v37 }
 0x242   :  { %925 = vmatprep.mubr.msk.f32.mxu0 %vm676_vm6, %v529_v59 }
 0x245   :  { %776 = vmatmul.mubr.f32.gmra.mrb[4].mxu0 %v528_v28 }
 0x246   :  { %926 = vmatprep.mubr.msk.f32.mxu0 %vm676_vm6, %v531_v2 }
 0x249   :  { %781 = vmatmul.mubr.f32.gmra.mrb[6].mxu0 %v530_v63 }
 0x24a   :  { %927 = vmatprep.mubr.msk.f32.mxu0 %vm676_vm6, %v533_v3 }
 0x24d   :  { %786 = vmatmul.mubr.f32.gmra.mrb[8].mxu0 %v532_v7 }
 0x24e   :  { %928 = vmatprep.mubr.msk.f32.mxu0 %vm676_vm6, %v535_v8 }
 0x251   :  { %791 = vmatmul.mubr.f32.gmra.mrb[10].mxu0 %v534_v11 }
 0x252   :  { %929 = vmatprep.mubr.msk.f32.mxu0 %vm676_vm6, %v537_v12 }
 0x255   :  { %796 = vmatmul.mubr.f32.gmra.mrb[12].mxu0 %v536_v5 }
 0x256   :  { %930 = vmatprep.mubr.msk.f32.mxu0 %vm676_vm6, %v539_v6 }
 0x259   :  { %801 = vmatmul.mubr.f32.gmra.mrb[14].mxu0 %v538_v17 }
 0x310   :  { %v767_v23 = vpop.f32.mrb[0].mxu0 }
 0x311   :  { %v768_v24 = vadd.f32 %v767_v23, %v639_v18  ;;  %v769_v25 = vpop.f32.mrb[1].mxu0 }
 0x313   :  { %v806_v26 = vmax.f32 %v768_v24, 0.0 }
 0x314   :  { %v772_v10 = vpop.f32.mrb[2].mxu0 }
 0x315   :  { %815 = vst.msk [vmem:[%s1917_s5] sm:$0xff] %vm814_vm7, %v806_v26  ;;  %v773_v27 = vadd.f32 %v772_v10, %v644_v9  ;;  %v774_v29 = vpop.f32.mrb[3].mxu0 }
 0x317   :  { %v807_v30 = vmax.f32 %v773_v27, 0.0 }
 0x318   :  { %v777_v32 = vpop.f32.mrb[4].mxu0 }
 0x319   :  { %816 = vst.msk [vmem:[%s1917_s5 + $0x8] sm:$0xff] %vm814_vm7, %v807_v30  ;;  %v778_v13 = vadd.f32 %v777_v32, %v649_v31  ;;  %v779_v14 = vpop.f32.mrb[5].mxu0 }
 0x31b   :  { %v808_v33 = vmax.f32 %v778_v13, 0.0 }
 0x31c   :  { %v782_v38 = vpop.f32.mrb[6].mxu0 }
 0x31d   :  { %817 = vst.msk [vmem:[%s1917_s5 + $0x10] sm:$0xff] %vm814_vm7, %v808_v33  ;;  %v783_v39 = vadd.f32 %v782_v38, %v654_v34  ;;  %v784_v15 = vpop.f32.mrb[7].mxu0 }
 0x31f   :  { %v809_v16 = vmax.f32 %v783_v39, 0.0 }
 0x320   :  { %v787_v42 = vpop.f32.mrb[8].mxu0 }
 0x321   :  { %818 = vst.msk [vmem:[%s1917_s5 + $0x18] sm:$0xff] %vm814_vm7, %v809_v16  ;;  %v788_v43 = vadd.f32 %v787_v42, %v659_v41  ;;  %v789_v44 = vpop.f32.mrb[9].mxu0 }
 0x323   :  { %v810_v45 = vmax.f32 %v788_v43, 0.0 }
 0x324   :  { %v792_v19 = vpop.f32.mrb[10].mxu0 }
 0x325   :  { %819 = vst.msk [vmem:[%s1917_s5 + $0x20] sm:$0xff] %vm814_vm7, %v810_v45  ;;  %v793_v47 = vadd.f32 %v792_v19, %v664_v46  ;;  %v794_v49 = vpop.f32.mrb[11].mxu0 }
 0x327   :  { %v811_v22 = vmax.f32 %v793_v47, 0.0 }
 0x328   :  { %v797_v50 = vpop.f32.mrb[12].mxu0 }
 0x329   :  { %820 = vst.msk [vmem:[%s1917_s5 + $0x28] sm:$0xff] %vm814_vm7, %v811_v22  ;;  %v798_v51 = vadd.f32 %v797_v50, %v669_v21  ;;  %v799_v52 = vpop.f32.mrb[13].mxu0 }
 0x32b   :  { %v812_v53 = vmax.f32 %v798_v51, 0.0 }
 0x32c   :  { %v802_v57 = vpop.f32.mrb[14].mxu0 }
 0x32d   :  { %821 = vst.msk [vmem:[%s1917_s5 + $0x30] sm:$0xff] %vm814_vm7, %v812_v53  ;;  %v803_v58 = vadd.f32 %v802_v57, %v674_v55  ;;  %v804_v1 = vpop.f32.mrb[15].mxu0 }
 0x32f   :  { %v813_v0 = vmax.f32 %v803_v58, 0.0 }
 0x331   :  { %822 = vst.msk [vmem:[%s1917_s5 + $0x38] sm:$0xff] %vm814_vm7, %v813_v0 }

// kernel: _lambda_.13
= control target key start
LH: loop header
LB: loop body
LE: loop exit
PB: predicated region body
PF: predicated region fallthrough
CT: control target
= control target key end

     0   :  { %v300_v3 = vmov 0   ;;  %vm78_vm0 = vcmask 523264   ;;  %vm208_vm1 = vcmask 130048   ;;  %s433_s0 = inlined_call_operand.vmem [shape: f32[64,16], index: 0, kind: input, shape index: {}]   ;;  %s434_s1 = inlined_call_operand.vmem [shape: f32[64,64], index: 1, kind: input, shape index: {}]   ;;  %s435_s2 = inlined_call_operand.vmem [shape: f32[64,1], index: 2, kind: input, shape index: {}]   ;;  %s436_s3 = inlined_call_operand.vmem [shape: f32[64,16], index: 3, kind: output, shape index: {}]  }
   0x1   :  { %v22_v0 = vld [vmem:[%s433_s0] sm:$0xff]  ;;  %v23_v1 = vld [vmem:[%s433_s0 + $0x8] sm:$0xff]  ;;  %v24_v2 = vld [vmem:[%s433_s0 + $0x10] sm:$0xff]  ;;  %299 = vset.pattern.permute.xlu1 %v300_v3  ;;  %298 = vset.pattern.permute.xlu0 %v300_v3 }
   0x2   :  { %v273_v4 = vpack.c.bf16 %v23_v1, %v22_v0  ;;  %v25_v5 = vld [vmem:[%s433_s0 + $0x18] sm:$0xff]  ;;  %v26_v7 = vld [vmem:[%s433_s0 + $0x20] sm:$0xff]  ;;  %v27_v8 = vld [vmem:[%s433_s0 + $0x28] sm:$0xff] }
   0x3   :  { %v277_v6 = vpack.c.bf16 %v25_v5, %v24_v2  ;;  %v14_v9 = vld [vmem:[%s434_s1] sm:$0xff]  ;;  %v281_v11 = vpack.c.bf16 %v27_v8, %v26_v7  ;;  %v32_v12 = vld [vmem:[%s435_s2 + $0x10] sm:$0xff]  ;;  %v29_v15 = vld [vmem:[%s433_s0 + $0x38] sm:$0xff] }
   0x4   :  { %274 = vmatprep.subr.bf16.mxu0 %v273_v4  ;;  %289 = vmatprep.subr.bf16.mxu1 %v273_v4  ;;  %v18_v10 = vld [vmem:[%s434_s1 + $0x20] sm:$0xff]  ;;  %v28_v14 = vld [vmem:[%s433_s0 + $0x30] sm:$0xff]  ;;  %v33_v16 = vld [vmem:[%s435_s2 + $0x18] sm:$0xff] }
   0x5   :  { %276 = vmatpush3.bf16.msra.mxu0 %v273_v4  ;;  %293 = vmatpush3.bf16.msra.mxu1 %v273_v4  ;;  %v30_v13 = vld [vmem:[%s435_s2] sm:$0xff]  ;;  %v31_v17 = vld [vmem:[%s435_s2 + $0x8] sm:$0xff]  ;;  %v285_v18 = vpack.c.bf16 %v29_v15, %v28_v14  ;;  %v16_v23 = vld [vmem:[%s434_s1 + $0x10] sm:$0xff] }
   0x6   :  { %278 = vmatprep.subr.bf16.mxu0 %v277_v6  ;;  %290 = vmatprep.subr.bf16.mxu1 %v277_v6  ;;  %v35_v19 = vld [vmem:[%s435_s2 + $0x28] sm:$0xff]  ;;  %v34_v20 = vld [vmem:[%s435_s2 + $0x20] sm:$0xff]  ;;  %v20_v24 = vld [vmem:[%s434_s1 + $0x30] sm:$0xff] }
   0x7   :  { %261 = vmatprep.mubr.msk.f32.mxu0 %vm78_vm0, %v14_v9  ;;  %267 = vmatprep.mubr.msk.f32.mxu1 %vm78_vm0, %v18_v10  ;;  %v15_v21 = vld [vmem:[%s434_s1 + $0x8] sm:$0xff]  ;;  %v37_v25 = vld [vmem:[%s435_s2 + $0x38] sm:$0xff]  ;;  %v36_v26 = vld [vmem:[%s435_s2 + $0x30] sm:$0xff] }
   0x8   :  { %50 = vperm.xlu1 %299, %v32_v12   ;;  %40 = vperm.xlu0 %298, %v30_v13   ;;  %v19_v22 = vld [vmem:[%s434_s1 + $0x28] sm:$0xff]  ;;  %v17_v27 = vld [vmem:[%s434_s1 + $0x18] sm:$0xff] }
   0x9   :  { %280 = vmatpush3.bf16.msra.mxu0 %v277_v6  ;;  %294 = vmatpush3.bf16.msra.mxu1 %v277_v6  ;;  %v21_v28 = vld [vmem:[%s434_s1 + $0x38] sm:$0xff] }
   0xa   :  { %282 = vmatprep.subr.bf16.mxu0 %v281_v11  ;;  %291 = vmatprep.subr.bf16.mxu1 %v281_v11 }
   0xc   :  { %55 = vperm.xlu1 %299, %v33_v16   ;;  %45 = vperm.xlu0 %298, %v31_v17  }
   0xd   :  { %284 = vmatpush3.bf16.msra.mxu0 %v281_v11  ;;  %295 = vmatpush3.bf16.msra.mxu1 %v281_v11 }
   0xe   :  { %286 = vmatprep.subr.bf16.mxu0 %v285_v18  ;;  %292 = vmatprep.subr.bf16.mxu1 %v285_v18 }
  0x10   :  { %65 = vperm.xlu1 %299, %v35_v19   ;;  %60 = vperm.xlu0 %298, %v34_v20  }
  0x11   :  { %288 = vmatpush3.bf16.msra.mxu0 %v285_v18  ;;  %296 = vmatpush3.bf16.msra.mxu1 %v285_v18 }
  0x14   :  { %262 = vmatmul.mubr.msk.f32.vlgmr.msra.gmra.mrb[0].mxu0 %vm78_vm0, %v15_v21  ;;  %268 = vmatmul.mubr.msk.f32.vlgmr.msra.gmra.mrb[0].mxu1 %vm78_vm0, %v19_v22 }
  0x15   :  { %264 = vmatprep.mubr.msk.f32.mxu0 %vm78_vm0, %v16_v23  ;;  %270 = vmatprep.mubr.msk.f32.mxu1 %vm78_vm0, %v20_v24 }
  0x16   :  { %75 = vperm.xlu1 %299, %v37_v25   ;;  %70 = vperm.xlu0 %298, %v36_v26  }
  0x18   :  { %265 = vmatmul.mubr.msk.f32.gmra.mrb[2].mxu0 %vm78_vm0, %v17_v27  ;;  %271 = vmatmul.mubr.msk.f32.gmra.mrb[2].mxu1 %vm78_vm0, %v21_v28 }
  0x87   :  { %v51_v29 = vpop.permute.xlu1 %50  ;;  %v41_v30 = vpop.permute.xlu0 %40 }
  0x8b   :  { %v56_v31 = vpop.permute.xlu1 %55  ;;  %v46_v32 = vpop.permute.xlu0 %45 }
  0x8f   :  { %v66_v33 = vpop.permute.xlu1 %65  ;;  %v61_v34 = vpop.permute.xlu0 %60 }
  0x95   :  { %v76_v43 = vpop.permute.xlu1 %75  ;;  %v71_v44 = vpop.permute.xlu0 %70 }
  0xe7   :  { %v263_v35 = vpop.f32.mrb[0].mxu0  ;;  %v269_v36 = vpop.f32.mrb[0].mxu1 }
  0xe8   :  { %v175_v37 = vadd.f32 %v263_v35, %v46_v32  ;;  %v195_v38 = vadd.f32 %v269_v36, %v66_v33  ;;  %v169_v39 = vpop.f32.mrb[1].mxu0  ;;  %v189_v40 = vpop.f32.mrb[1].mxu1 }
  0xe9   :  { %v170_v41 = vadd.f32 %v169_v39, %v41_v30  ;;  %v190_v42 = vadd.f32 %v189_v40, %v61_v34 }
  0xea   :  { %210 = vst.msk [vmem:[%s436_s3 + $0x8] sm:$0xff] %vm208_vm1, %v175_v37  ;;  %214 = vst.msk [vmem:[%s436_s3 + $0x28] sm:$0xff] %vm208_vm1, %v195_v38 }
  0xeb   :  { %209 = vst.msk [vmem:[%s436_s3] sm:$0xff] %vm208_vm1, %v170_v41  ;;  %213 = vst.msk [vmem:[%s436_s3 + $0x20] sm:$0xff] %vm208_vm1, %v190_v42  ;;  %v266_v45 = vpop.f32.mrb[2].mxu0  ;;  %v272_v46 = vpop.f32.mrb[2].mxu1 }
  0xec   :  { %v185_v47 = vadd.f32 %v266_v45, %v56_v31  ;;  %v205_v48 = vadd.f32 %v272_v46, %v76_v43  ;;  %v179_v49 = vpop.f32.mrb[3].mxu0  ;;  %v199_v50 = vpop.f32.mrb[3].mxu1 }
  0xed   :  { %v180_v51 = vadd.f32 %v179_v49, %v51_v29  ;;  %v200_v52 = vadd.f32 %v199_v50, %v71_v44 }
  0xee   :  { %212 = vst.msk [vmem:[%s436_s3 + $0x18] sm:$0xff] %vm208_vm1, %v185_v47  ;;  %216 = vst.msk [vmem:[%s436_s3 + $0x38] sm:$0xff] %vm208_vm1, %v205_v48 }
  0xef   :  { %211 = vst.msk [vmem:[%s436_s3 + $0x10] sm:$0xff] %vm208_vm1, %v180_v51  ;;  %215 = vst.msk [vmem:[%s436_s3 + $0x30] sm:$0xff] %vm208_vm1, %v200_v52 }

// kernel: _lambda_.15
= control target key start
LH: loop header
LB: loop body
LE: loop exit
PB: predicated region body
PF: predicated region fallthrough
CT: control target
= control target key end

     0   :  { %v133_v0 = vmov 0.0|0.0   ;;  %vm134_vm0 = vmmov 0   ;;  %v135_v4 = vmov 0.0   ;;  %v136_v7 = vmov 0   ;;  %s178_s0 = inlined_call_operand.vmem [shape: f32[32,32], index: 0, kind: input, shape index: {}]   ;;  %s179_s2 = inlined_call_operand.vmem [shape: f32[3,1], index: 2, kind: input, shape index: {}]   ;;  %s180_s1 = inlined_call_operand.vmem [shape: f32[3,32], index: 1, kind: input, shape index: {}]   ;;  %s181_s3 = inlined_call_operand.vmem [shape: f32[3,32], index: 3, kind: output, shape index: {}]  }
   0x1   :  { %122 = vmatprep.subr.bf16.mxu0 %v133_v0  ;;  %v15_v1 = vld [vmem:[%s178_s0] sm:$0xff]  ;;  %v16_v2 = vld [vmem:[%s178_s0 + $0x8] sm:$0xff]  ;;  %v17_v3 = vld [vmem:[%s178_s0 + $0x10] sm:$0xff]  ;;  %119 = vmatprep.mubr.msk.f32.mxu0 %vm134_vm0, %v135_v4  ;;  %vm25_vm1 = vcmask 261120   ;;  %vm99_vm2 = vcmask 256000  }
   0x2   :  { %v123_v5 = vpack.c.bf16 %v16_v2, %v15_v1  ;;  %v18_v6 = vld [vmem:[%s178_s0 + $0x18] sm:$0xff]  ;;  %132 = vset.pattern.permute.xlu0 %v136_v7  ;;  %v19_v8 = vld [vmem:[%s179_s2] sm:$0x7] }
   0x3   :  { %22 = vperm.xlu0 %132, %v19_v8   ;;  %v126_v9 = vpack.c.bf16 %v18_v6, %v17_v3  ;;  %v14_v10 = vld [vmem:[%s180_s1] sm:$0x7] }
   0x4   :  { %124 = vmatpush3.bf16.msra.mxu0 %v123_v5 }
   0x5   :  { %125 = vmatprep.subr.bf16.mxu0 %v133_v0 }
   0x8   :  { %127 = vmatpush3.bf16.msra.mxu0 %v126_v9 }
   0xb   :  { %120 = vmatmul.mubr.msk.f32.vlgmr.msra.gmra.mrb[0].mxu0 %vm25_vm1, %v14_v10 }
  0x82   :  { %v23_v11 = vpop.permute.xlu0 %22 }
  0xde   :  { %v95_v12 = vpop.f32.mrb[0].mxu0 }
  0xdf   :  { %v96_v13 = vadd.f32 %v95_v12, %v23_v11  ;;  %v121_v14 = vpop.f32.mrb[1].mxu0 }
  0xe1   :  { %100 = vst.msk [vmem:[%s181_s3] sm:$0x7] %vm99_vm2, %v96_v13 }

// kernel: _lambda_.14
= control target key start
LH: loop header
LB: loop body
LE: loop exit
PB: predicated region body
PF: predicated region fallthrough
CT: control target
= control target key end

     0   :  { %v701_v3 = vmov 0.0|0.0   ;;  %s702_s9 = smov 1   ;;  %s703_s10 = smov 127   ;;  %vm170_vm0 = vcmask 523264   ;;  %v704_v14 = vmov 0   ;;  %v40_v19 = vlaneseq  ;;  %s975_s0 = inlined_call_operand.vmem [shape: f32[64,32], index: 0, kind: input, shape index: {}]   ;;  %s976_s1 = inlined_call_operand.vmem [shape: f32[32,192], index: 1, kind: input, shape index: {}]   ;;  %s977_s2 = inlined_call_operand.vmem [shape: f32[32,1], index: 2, kind: input, shape index: {}]   ;;  %s978_s4 = inlined_call_operand.vmem [shape: f32[32,1], index: 4, kind: input, shape index: {}]   ;;  %s979_s3 = inlined_call_operand.vmem [shape: f32[32,96], index: 3, kind: input, shape index: {}]   ;;  %s980_s5 = inlined_call_operand.vmem [shape: f32[32,32], index: 5, kind: output, shape index: {}]  }
   0x1   :  { %v738_v0 = vld [vmem:[%s975_s0] sm:$0xff]  ;;  %v743_v1 = vld [vmem:[%s975_s0 + $0x8] sm:$0xff]  ;;  %v748_v2 = vld [vmem:[%s975_s0 + $0x10] sm:$0xff]  ;;  %559 = vmatprep.subr.bf16.mxu0 %v701_v3  ;;  %679 = vset.pattern.permute.xlu0 %v704_v14  ;;  %vm86_vm1 = vcmask 7168   ;;  %vm119_vm4 = vcmask 252928   ;;  %vm344_vm7 = vcmask 785408  }
   0x2   :  { %v639_v4 = vpack.i.bf16 %v743_v1, %v738_v0  ;;  %v756_v5 = vld [vmem:[%s975_s0 + $0x18] sm:$0xff]  ;;  %v761_v6 = vld [vmem:[%s975_s0 + $0x20] sm:$0xff]  ;;  %v766_v7 = vld [vmem:[%s975_s0 + $0x28] sm:$0xff]  ;;  %680 = vset.pattern.permute.xlu1 %v704_v14  ;;  %v41_v20 = vand.u32 127, %v40_v19  ;;  %v576_v47 = vpack.c.bf16 %v743_v1, %v738_v0  ;;  %vm446_vm8 = vcmask 261120  }
   0x3   :  { %v649_v8 = vpack.i.bf16 %v766_v7, %v761_v6  ;;  %v773_v9 = vld [vmem:[%s975_s0 + $0x30] sm:$0xff]  ;;  %v778_v10 = vld [vmem:[%s975_s0 + $0x38] sm:$0xff]  ;;  %v644_v11 = vpack.i.bf16 %v756_v5, %v748_v2  ;;  %v29_v13 = vld [vmem:[%s976_s1 + $0x8] sm:$0xff]  ;;  %v579_v48 = vpack.c.bf16 %v756_v5, %v748_v2  ;;  %v582_v50 = vpack.c.bf16 %v766_v7, %v761_v6 }
   0x4   :  { %640 = vrot.lane.b32.xlu0 %v639_v4, %s702_s9  ;;  %v654_v12 = vpack.i.bf16 %v778_v10, %v773_v9  ;;  %487 = vmatprep.mubr.msk.f32.mxu0 %vm170_vm0, %v29_v13  ;;  %v36_v15 = vld [vmem:[%s977_s2] sm:$0xff]  ;;  %v37_v16 = vld [vmem:[%s977_s2 + $0x8] sm:$0xff]  ;;  %v38_v17 = vld [vmem:[%s977_s2 + $0x10] sm:$0xff]  ;;  %v46_v21 = vand.u32 15, %v41_v20  ;;  %v585_v54 = vpack.c.bf16 %v778_v10, %v773_v9 }
   0x5   :  { %650 = vrot.lane.b32.xlu1 %v649_v8, %s702_s9  ;;  %v39_v18 = vld [vmem:[%s977_s2 + $0x18] sm:$0xff] }
   0x6   :  { %vm511_vm2 = vcmp.ne.s32.totalorder %v46_v21, 0  ;;  %vm512_vm5 = vcmp.ne.s32.totalorder %v46_v21, 15 }
   0x7   :  { %vm812_vm3 = vmpackc.low %vm511_vm2, %vm511_vm2 }
   0x8   :  { %645 = vrot.lane.b32.xlu0 %v644_v11, %s702_s9  ;;  %vm860_vm6 = vmpackc.low %vm512_vm5, %vm512_vm5 }
   0x9   :  { %655 = vrot.lane.b32.xlu1 %v654_v12, %s702_s9 }
   0xc   :  { %660 = vrot.lane.b32.xlu0 %v639_v4, %s703_s10 }
   0xd   :  { %665 = vrot.lane.b32.xlu1 %v644_v11, %s703_s10 }
  0x10   :  { %670 = vrot.lane.b32.xlu0 %v649_v8, %s703_s10 }
  0x11   :  { %675 = vrot.lane.b32.xlu1 %v654_v12, %s703_s10 }
  0x14   :  { %152 = vperm.xlu0 %679, %v36_v15  }
  0x15   :  { %157 = vperm.xlu1 %680, %v37_v16   ;;  %v32_v16 = vld [vmem:[%s976_s1 + $0x20] sm:$0xff] }
  0x18   :  { %167 = vperm.xlu0 %679, %v39_v18   ;;  %v34_v18 = vld [vmem:[%s976_s1 + $0x30] sm:$0xff] }
  0x19   :  { %162 = vperm.xlu1 %680, %v38_v17   ;;  %v35_v17 = vld [vmem:[%s976_s1 + $0x38] sm:$0xff] }
  0x76   :  { %v641_v22 = vpop.permute.xlu0 %640 }
  0x77   :  { %v643_v23 = vunpack.i.h.bf16 %v641_v22  ;;  %v642_v24 = vunpack.i.l.bf16 %v641_v22  ;;  %v651_v25 = vpop.permute.xlu1 %650 }
  0x78   :  { %v653_v26 = vunpack.i.h.bf16 %v651_v25  ;;  %v652_v27 = vunpack.i.l.bf16 %v651_v25 }
  0x79   :  { %v87_v28 = vsel %vm86_vm1, %v738_v0, %v642_v24  ;;  %v88_v29 = vsel %vm86_vm1, %v743_v1, %v643_v23 }
  0x7a   :  { %v646_v31 = vpop.permute.xlu0 %645  ;;  %v560_v32 = vpack.c.bf16 %v88_v29, %v87_v28  ;;  %v92_v36 = vsel %vm86_vm1, %v766_v7, %v653_v26  ;;  %v91_v37 = vsel %vm86_vm1, %v761_v6, %v652_v27 }
  0x7b   :  { %v648_v33 = vunpack.i.h.bf16 %v646_v31  ;;  %v647_v34 = vunpack.i.l.bf16 %v646_v31  ;;  %v656_v35 = vpop.permute.xlu1 %655  ;;  %v568_v43 = vpack.c.bf16 %v92_v36, %v91_v37 }
  0x7c   :  { %562 = vmatpush1.bf16.msk.msra.mxu0 %vm812_vm3, %v560_v32  ;;  %v658_v40 = vunpack.i.h.bf16 %v656_v35  ;;  %v657_v41 = vunpack.i.l.bf16 %v656_v35 }
  0x7d   :  { %v90_v38 = vsel %vm86_vm1, %v756_v5, %v648_v33  ;;  %v89_v39 = vsel %vm86_vm1, %v748_v2, %v647_v34  ;;  %563 = vmatprep.subr.bf16.mxu0 %v701_v3 }
  0x7e   :  { %v564_v42 = vpack.c.bf16 %v90_v38, %v89_v39  ;;  %v94_v44 = vsel %vm86_vm1, %v778_v10, %v658_v40  ;;  %v93_v45 = vsel %vm86_vm1, %v773_v9, %v657_v41  ;;  %v661_v49 = vpop.permute.xlu0 %660  ;;  %v276_v41 = vld [vmem:[%s978_s4] sm:$0xff] }
  0x7f   :  { %v572_v46 = vpack.c.bf16 %v94_v44, %v93_v45  ;;  %v663_v51 = vunpack.i.h.bf16 %v661_v49  ;;  %v662_v52 = vunpack.i.l.bf16 %v661_v49  ;;  %v666_v53 = vpop.permute.xlu1 %665  ;;  %v277_v44 = vld [vmem:[%s978_s4 + $0x8] sm:$0xff]  ;;  %v279_v45 = vld [vmem:[%s978_s4 + $0x18] sm:$0xff] }
  0x80   :  { %566 = vmatpush1.bf16.msk.msra.mxu0 %vm812_vm3, %v564_v42  ;;  %v668_v57 = vunpack.i.h.bf16 %v666_v53  ;;  %v667_v58 = vunpack.i.l.bf16 %v666_v53 }
  0x81   :  { %567 = vmatprep.subr.bf16.mxu0 %v701_v3  ;;  %v121_v55 = vsel %vm119_vm4, %v663_v51, %v743_v1  ;;  %v120_v56 = vsel %vm119_vm4, %v662_v52, %v738_v0 }
  0x82   :  { %v671_v59 = vpop.permute.xlu0 %670  ;;  %v588_v60 = vpack.c.bf16 %v121_v55, %v120_v56  ;;  %v123_v61 = vsel %vm119_vm4, %v668_v57, %v756_v5  ;;  %v122_v62 = vsel %vm119_vm4, %v667_v58, %v748_v2 }
  0x83   :  { %v673_v0 = vunpack.i.h.bf16 %v671_v59  ;;  %v672_v1 = vunpack.i.l.bf16 %v671_v59  ;;  %v676_v4 = vpop.permute.xlu1 %675  ;;  %v592_v8 = vpack.c.bf16 %v123_v61, %v122_v62 }
  0x84   :  { %570 = vmatpush1.bf16.msk.msra.mxu0 %vm812_vm3, %v568_v43  ;;  %v678_v2 = vunpack.i.h.bf16 %v676_v4  ;;  %v677_v12 = vunpack.i.l.bf16 %v676_v4  ;;  %v278_v43 = vld [vmem:[%s978_s4 + $0x10] sm:$0xff] }
  0x85   :  { %571 = vmatprep.subr.bf16.mxu0 %v701_v3  ;;  %v125_v11 = vsel %vm119_vm4, %v673_v0, %v766_v7  ;;  %v124_v5 = vsel %vm119_vm4, %v672_v1, %v761_v6  ;;  %v28_v6 = vld [vmem:[%s976_s1] sm:$0xff] }
  0x86   :  { %v596_v13 = vpack.c.bf16 %v125_v11, %v124_v5  ;;  %v127_v14 = vsel %vm119_vm4, %v678_v2, %v778_v10  ;;  %v126_v15 = vsel %vm119_vm4, %v677_v12, %v773_v9  ;;  %v31_v10 = vld [vmem:[%s976_s1 + $0x18] sm:$0xff]  ;;  %v30_v9 = vld [vmem:[%s976_s1 + $0x10] sm:$0xff] }
  0x87   :  { %v600_v7 = vpack.c.bf16 %v127_v14, %v126_v15  ;;  %v273_v14 = vld [vmem:[%s979_s3 + $0x8] sm:$0xff]  ;;  %v274_v15 = vld [vmem:[%s979_s3 + $0x10] sm:$0xff] }
  0x88   :  { %574 = vmatpush1.bf16.msk.msra.mxu0 %vm812_vm3, %v572_v46  ;;  %v272_v46 = vld [vmem:[%s979_s3] sm:$0xff] }
  0x89   :  { %575 = vmatprep.subr.bf16.mxu0 %v701_v3  ;;  %553 = vmatprep.mubr.msk.f32.mxu1 %vm344_vm7, %v272_v46 }
  0x8c   :  { %577 = vmatpush1.bf16.msra.mxu0 %v576_v47 }
  0x8d   :  { %578 = vmatprep.subr.bf16.mxu0 %v701_v3 }
  0x90   :  { %580 = vmatpush1.bf16.msra.mxu0 %v579_v48 }
  0x91   :  { %581 = vmatprep.subr.bf16.mxu0 %v701_v3 }
  0x93   :  { %v153_v19 = vpop.permute.xlu0 %152 }
  0x94   :  { %583 = vmatpush1.bf16.msra.mxu0 %v582_v50  ;;  %v158_v22 = vpop.permute.xlu1 %157 }
  0x95   :  { %584 = vmatprep.subr.bf16.mxu0 %v701_v3 }
  0x97   :  { %v168_v35 = vpop.permute.xlu0 %167 }
  0x98   :  { %586 = vmatpush1.bf16.msra.mxu0 %v585_v54  ;;  %v163_v29 = vpop.permute.xlu1 %162 }
  0x99   :  { %587 = vmatprep.subr.bf16.mxu0 %v701_v3 }
  0x9c   :  { %590 = vmatpush1.bf16.msk.msra.mxu0 %vm860_vm6, %v588_v60 }
  0x9d   :  { %591 = vmatprep.subr.bf16.mxu0 %v701_v3 }
  0xa0   :  { %594 = vmatpush1.bf16.msk.msra.mxu0 %vm860_vm6, %v592_v8 }
  0xa1   :  { %595 = vmatprep.subr.bf16.mxu0 %v701_v3 }
  0xa4   :  { %598 = vmatpush1.bf16.msk.msra.mxu0 %vm860_vm6, %v596_v13 }
  0xa5   :  { %599 = vmatprep.subr.bf16.mxu0 %v701_v3  ;;  %v33_v3 = vld [vmem:[%s976_s1 + $0x28] sm:$0xff] }
  0xa8   :  { %602 = vmatpush1.bf16.msk.msra.mxu0 %vm860_vm6, %v600_v7  ;;  %v275_v7 = vld [vmem:[%s979_s3 + $0x18] sm:$0xff] }
  0xab   :  { %248 = vmatmul.mubr.f32.vlgmr.msra.gmra.mrb[0].mxu0 %v28_v6 }
  0xac   :  { %488 = vmatprep.mubr.msk.f32.mxu0 %vm170_vm0, %v31_v10 }
  0xaf   :  { %253 = vmatmul.mubr.f32.gmra.mrb[2].mxu0 %v30_v9 }
  0xb0   :  { %489 = vmatprep.mubr.msk.f32.mxu0 %vm170_vm0, %v33_v3 }
  0xb3   :  { %258 = vmatmul.mubr.f32.gmra.mrb[4].mxu0 %v32_v16 }
  0xb4   :  { %490 = vmatprep.mubr.msk.f32.mxu0 %vm170_vm0, %v35_v17 }
  0xb7   :  { %263 = vmatmul.mubr.f32.gmra.mrb[6].mxu0 %v34_v18 }
 0x17e   :  { %v249_v20 = vpop.f32.mrb[0].mxu0 }
 0x17f   :  { %v251_v21 = vpop.f32.mrb[1].mxu0  ;;  %v250_v23 = vadd.f32 %v249_v20, %v153_v19 }
 0x181   :  { %v268_v27 = vmax.f32 %v250_v23, 0.0 }
 0x182   :  { %v254_v24 = vpop.f32.mrb[2].mxu0 }
 0x183   :  { %v255_v25 = vadd.f32 %v254_v24, %v158_v22  ;;  %v256_v26 = vpop.f32.mrb[3].mxu0 }
 0x185   :  { %v269_v28 = vmax.f32 %v255_v25, 0.0 }
 0x186   :  { %v259_v31 = vpop.f32.mrb[4].mxu0 }
 0x187   :  { %v261_v32 = vpop.f32.mrb[5].mxu0  ;;  %v681_v33 = vpack.i.bf16 %v269_v28, %v268_v27  ;;  %v260_v34 = vadd.f32 %v259_v31, %v163_v29  ;;  %v615_v60 = vpack.c.bf16 %v269_v28, %v268_v27 }
 0x189   :  { %682 = vrot.lane.b32.xlu1 %v681_v33, %s702_s9  ;;  %v270_v39 = vmax.f32 %v260_v34, 0.0 }
 0x18a   :  { %v264_v36 = vpop.f32.mrb[6].mxu0 }
 0x18b   :  { %v265_v37 = vadd.f32 %v264_v36, %v168_v35  ;;  %v266_v38 = vpop.f32.mrb[7].mxu0 }
 0x18d   :  { %v271_v40 = vmax.f32 %v265_v37, 0.0  ;;  %692 = vrot.lane.b32.xlu1 %v681_v33, %s703_s10 }
 0x18f   :  { %v686_v42 = vpack.i.bf16 %v271_v40, %v270_v39  ;;  %v619_v1 = vpack.c.bf16 %v271_v40, %v270_v39 }
 0x191   :  { %687 = vrot.lane.b32.xlu0 %v686_v42, %s702_s9  ;;  %326 = vperm.xlu1 %680, %v276_v41  }
 0x195   :  { %697 = vrot.lane.b32.xlu0 %v686_v42, %s703_s10  ;;  %336 = vperm.xlu1 %680, %v278_v43  }
 0x199   :  { %331 = vperm.xlu0 %679, %v277_v44  }
 0x19d   :  { %341 = vperm.xlu0 %679, %v279_v45  }
 0x1fb   :  { %v683_v47 = vpop.permute.xlu1 %682 }
 0x1fc   :  { %v685_v48 = vunpack.i.h.bf16 %v683_v47  ;;  %v684_v49 = vunpack.i.l.bf16 %v683_v47 }
 0x1fe   :  { %v296_v50 = vsel %vm86_vm1, %v268_v27, %v684_v49  ;;  %v297_v51 = vsel %vm86_vm1, %v269_v28, %v685_v48 }
 0x1ff   :  { %v603_v52 = vpack.c.bf16 %v297_v51, %v296_v50  ;;  %v693_v58 = vpop.permute.xlu1 %692 }
 0x200   :  { %v695_v61 = vunpack.i.h.bf16 %v693_v58  ;;  %v694_v62 = vunpack.i.l.bf16 %v693_v58 }
 0x201   :  { %605 = vmatprep.subr.msk.bf16.mxu1 %vm812_vm3, %v603_v52 }
 0x202   :  { %608 = vmatpush3.bf16.msk.msra.mxu1 %vm812_vm3, %v603_v52  ;;  %v313_v4 = vsel %vm119_vm4, %v695_v61, %v269_v28  ;;  %v312_v8 = vsel %vm119_vm4, %v694_v62, %v268_v27 }
 0x203   :  { %v688_v53 = vpop.permute.xlu0 %687  ;;  %v623_v2 = vpack.c.bf16 %v313_v4, %v312_v8 }
 0x204   :  { %v690_v54 = vunpack.i.h.bf16 %v688_v53  ;;  %v689_v55 = vunpack.i.l.bf16 %v688_v53 }
 0x206   :  { %v299_v56 = vsel %vm86_vm1, %v271_v40, %v690_v54  ;;  %v298_v57 = vsel %vm86_vm1, %v270_v39, %v689_v55 }
 0x207   :  { %v609_v59 = vpack.c.bf16 %v299_v56, %v298_v57  ;;  %v698_v0 = vpop.permute.xlu0 %697 }
 0x208   :  { %v700_v11 = vunpack.i.h.bf16 %v698_v0  ;;  %v699_v5 = vunpack.i.l.bf16 %v698_v0 }
 0x209   :  { %611 = vmatprep.subr.msk.bf16.mxu1 %vm812_vm3, %v609_v59 }
 0x20a   :  { %614 = vmatpush3.bf16.msk.msra.mxu1 %vm812_vm3, %v609_v59  ;;  %v315_v12 = vsel %vm119_vm4, %v700_v11, %v271_v40  ;;  %v314_v13 = vsel %vm119_vm4, %v699_v5, %v270_v39 }
 0x20b   :  { %616 = vmatprep.subr.bf16.mxu1 %v615_v60  ;;  %v629_v30 = vpack.c.bf16 %v315_v12, %v314_v13 }
 0x20e   :  { %618 = vmatpush3.bf16.msra.mxu1 %v615_v60 }
 0x20f   :  { %620 = vmatprep.subr.bf16.mxu1 %v619_v1 }
 0x210   :  { %v327_v6 = vpop.permute.xlu1 %326 }
 0x212   :  { %622 = vmatpush3.bf16.msra.mxu1 %v619_v1 }
 0x213   :  { %625 = vmatprep.subr.msk.bf16.mxu1 %vm860_vm6, %v623_v2 }
 0x214   :  { %v337_v21 = vpop.permute.xlu1 %336 }
 0x216   :  { %628 = vmatpush3.bf16.msk.msra.mxu1 %vm860_vm6, %v623_v2 }
 0x217   :  { %631 = vmatprep.subr.msk.bf16.mxu1 %vm860_vm6, %v629_v30 }
 0x218   :  { %v332_v63 = vpop.permute.xlu0 %331 }
 0x21a   :  { %634 = vmatpush3.bf16.msk.msra.mxu1 %vm860_vm6, %v629_v30 }
 0x21c   :  { %v342_v18 = vpop.permute.xlu0 %341 }
 0x21d   :  { %554 = vmatmul.mubr.msk.f32.vlgmr.msra.gmra.mrb[0].mxu1 %vm344_vm7, %v273_v14 }
 0x21e   :  { %556 = vmatprep.mubr.msk.f32.mxu1 %vm344_vm7, %v274_v15 }
 0x221   :  { %557 = vmatmul.mubr.msk.f32.gmra.mrb[2].mxu1 %vm344_vm7, %v275_v7 }
 0x2f0   :  { %v555_v10 = vpop.f32.mrb[0].mxu1 }
 0x2f1   :  { %v429_v9 = vadd.f32 %v555_v10, %v332_v63  ;;  %v423_v3 = vpop.f32.mrb[1].mxu1 }
 0x2f2   :  { %v424_v16 = vadd.f32 %v423_v3, %v327_v6 }
 0x2f3   :  { %v443_v17 = vmax.f32 %v429_v9, 0.0 }
 0x2f4   :  { %v442_v19 = vmax.f32 %v424_v16, 0.0  ;;  %v558_v20 = vpop.f32.mrb[2].mxu1 }
 0x2f5   :  { %448 = vst.msk [vmem:[%s980_s5 + $0x8] sm:$0xff] %vm446_vm8, %v443_v17  ;;  %v439_v22 = vadd.f32 %v558_v20, %v342_v18  ;;  %v433_v23 = vpop.f32.mrb[3].mxu1 }
 0x2f6   :  { %447 = vst.msk [vmem:[%s980_s5] sm:$0xff] %vm446_vm8, %v442_v19  ;;  %v434_v24 = vadd.f32 %v433_v23, %v337_v21 }
 0x2f7   :  { %v445_v25 = vmax.f32 %v439_v22, 0.0 }
 0x2f8   :  { %v444_v26 = vmax.f32 %v434_v24, 0.0 }
 0x2f9   :  { %450 = vst.msk [vmem:[%s980_s5 + $0x18] sm:$0xff] %vm446_vm8, %v445_v25 }
 0x2fa   :  { %449 = vst.msk [vmem:[%s980_s5 + $0x10] sm:$0xff] %vm446_vm8, %v444_v26 }

</bundles_post_ra>
